<compile_context>
chip_gen: v7x
topology: tpu7x:2x2x1
jax: 0.10.0
libtpu: 0.0.40
codegen_flags: <defaults>
</compile_context>

<pallas_src>
import functools

import jax
import jax.numpy as jnp
from jax.experimental import pallas as pl
from jax.experimental.pallas import tpu as pltpu


def _log_sigmoid(x):
    # numerically stable log(sigmoid(x)), identical in kernel and reference
    return jnp.minimum(x, 0.0) - jnp.log1p(jnp.exp(-jnp.abs(x)))


def _const_spec(a):
    # Whole-array constant block (same tile for every grid step of a 1-D grid).
    # NOTE: single-buffering these (pipeline_mode=pl.Buffered(1)) would save a
    # second copy of w_out on v7x; left default-buffered for portability.
    return pl.BlockSpec(a.shape, lambda i, _nd=a.ndim: (0,) * _nd)


def _pick_time_chunk(T, cap):
    """Largest Tc <= cap with T % Tc == 0 and (Tc % 8 == 0 or Tc == T)."""
    cap = max(1, cap)
    if T <= cap:
        return T
    best = 0
    for d in range(8, cap + 1, 8):
        if T % d == 0:
            best = d
    return best if best else T


def _pick_row_tile(M, cap, gran=16):
    """(tile_m, M_padded): tile_m a multiple of `gran` (or == M) dividing M_padded."""
    cap = max(1, cap)
    if M <= cap:
        return M, M
    best = 0
    for d in range(gran, cap + 1, gran):
        if M % d == 0:
            best = d
    if best:
        return best, M
    tile = max(gran, cap - cap % gran)
    return tile, ((M + tile - 1) // tile) * tile


# --------------------------------------------------------------------------- #
# Kernel 1: multi-layer GRU recurrence over a chunk of timesteps               #
# --------------------------------------------------------------------------- #
def _gru_kernel(num_layers, fuse_gates, emb_ref, keep_ref, fb_ref, ctx_ref, *refs):
    """One grid step == one chunk of decoder timesteps (grid axis 'arbitrary')."""
    L = num_layers
    n_per = 4 if fuse_gates else 10
    w_refs = refs[:n_per * L]
    states_ref = refs[n_per * L]                 # (B, Tc, H) f32 output block
    h_scr = refs[n_per * L + 1]                  # (L, B, H) f32 persistent hidden state

    Tc, B, E = emb_ref.shape
    H = ctx_ref.shape[1]

    @pl.when(pl.program_id(0) == 0)
    def _init():
        ctx0 = ctx_ref[...]                      # h_0 = context_state for every layer
        for l in range(L):
            h_scr[l] = ctx0

    # Hoist only the small biases; weight matrices are re-read from VMEM at every
    # use inside the unrolled loop (vld bandwidth covers it, keeps vregs free).
    if fuse_gates:
        biases = [(w_refs[4 * l + 2][...], w_refs[4 * l + 3][...]) for l in range(L)]
    else:
        biases = [tuple(w_refs[10 * l + 6 + g][...] for g in range(4)) for l in range(L)]

    # Layer-0 input projections for the whole chunk: one (Tc*B, E) matmul per
    # gate (or one fused 3H matmul) instead of Tc tiny matmuls per step.
    x0 = emb_ref[...].reshape(Tc * B, E).astype(jnp.bfloat16)
    if fuse_gates:
        gi0 = jnp.dot(x0, w_refs[0][...],
                      preferred_element_type=jnp.float32).reshape(Tc, B, 3 * H)
    else:
        gi0_r = jnp.dot(x0, w_refs[0][...],
                        preferred_element_type=jnp.float32).reshape(Tc, B, H)
        gi0_z = jnp.dot(x0, w_refs[1][...],
                        preferred_element_type=jnp.float32).reshape(Tc, B, H)
        gi0_n = jnp.dot(x0, w_refs[2][...],
                        preferred_element_type=jnp.float32).reshape(Tc, B, H)

    hs = [h_scr[l] for l in range(L)]            # per-layer f32 carry

    for t in range(Tc):                          # static unroll of the chunk
        x = None
        for l in range(L):
            h = hs[l]
            hb = h.astype(jnp.bfloat16)          # bf16 MXU operand, f32 carry
            if fuse_gates:
                b_i, b_h = biases[l]
                if l == 0:
                    gi = gi0[t]
                else:
                    gi = jnp.dot(x, w_refs[4 * l][...],
                                 preferred_element_type=jnp.float32)
                gi = gi + b_i
                gh = jnp.dot(hb, w_refs[4 * l + 1][...],
                             preferred_element_type=jnp.float32) + b_h
                r = jax.nn.sigmoid(gi[:, :H] + gh[:, :H])
                z = jax.nn.sigmoid(gi[:, H:2 * H] + gh[:, H:2 * H])
                n = jnp.tanh(gi[:, 2 * H:] + r * gh[:, 2 * H:])
            else:
                b_r, b_z, b_in, b_hn = biases[l]
                if l == 0:
                    gi_r, gi_z, gi_n = gi0_r[t], gi0_z[t], gi0_n[t]
                else:
                    gi_r = jnp.dot(x, w_refs[10 * l + 0][...],
                                   preferred_element_type=jnp.float32)
                    gi_z = jnp.dot(x, w_refs[10 * l + 1][...],
                                   preferred_element_type=jnp.float32)
                    gi_n = jnp.dot(x, w_refs[10 * l + 2][...],
                                   preferred_element_type=jnp.float32)
                r = jax.nn.sigmoid(
                    gi_r + jnp.dot(hb, w_refs[10 * l + 3][...],
                                   preferred_element_type=jnp.float32) + b_r)
                z = jax.nn.sigmoid(
                    gi_z + jnp.dot(hb, w_refs[10 * l + 4][...],
                                   preferred_element_type=jnp.float32) + b_z)
                n = jnp.tanh(
                    gi_n + b_in
                    + r * (jnp.dot(hb, w_refs[10 * l + 5][...],
                                   preferred_element_type=jnp.float32) + b_hn))
            h_new = (1.0 - z) * n + z * h
            hs[l] = h_new
            x = h_new.astype(jnp.bfloat16)       # bf16 input to the next layer

        # pack/pad_packed + pad-tensor semantics:
        #   t < len_i -> state, len_i <= t < max(len) -> 0.0, else pad_token_idx
        masked = jnp.where(keep_ref[t] > 0.5, hs[L - 1], fb_ref[t])
        states_ref[:, t, :] = masked.astype(states_ref.dtype)   # (B, T, H) layout

    for l in range(L):
        h_scr[l] = hs[l]


# --------------------------------------------------------------------------- #
# Kernel 2: batched vocab + switch heads, single (M, V+1) output slab          #
# --------------------------------------------------------------------------- #
def _head_kernel(vocab_size, states_ref, swb_ref, w_out_ref, b_out_ref,
                 w_swh_ref, out_ref):
    V = vocab_size
    s_f32 = states_ref[...]                                                # (tile_m, H) f32
    s_bf = s_f32.astype(jnp.bfloat16)
    # vocab head: bf16 x bf16 MXU matmul, f32 accumulation
    lang = jnp.dot(s_bf, w_out_ref[...],
                   preferred_element_type=jnp.float32) + b_out_ref[...]    # (tile_m, V)
    m = jnp.max(lang, axis=-1, keepdims=True)
    # exp on the EUP in bf16 (v6e/v7x); max / log-sum-exp stay f32
    p = jnp.exp((lang - m).astype(jnp.bfloat16)).astype(jnp.float32)
    log_sm = (lang - m) - jnp.log(jnp.sum(p, axis=-1, keepdims=True))

    # switch head: (ctx @ w_sw_c + b_sw) is precomputed per row in the wrapper
    sw = swb_ref[...] + jnp.dot(s_f32, w_swh_ref[...],
                                preferred_element_type=jnp.float32)        # (tile_m, 1)

    out_ref[:, :V] = (_log_sigmoid(sw) + log_sm).astype(out_ref.dtype)
    out_ref[:, V:] = _log_sigmoid(-sw).astype(out_ref.dtype)


# --------------------------------------------------------------------------- #
# Parameter preparation (one-time casts / splits / bias merges)                #
# --------------------------------------------------------------------------- #
def prepare_params(params, *, hidden_size, num_layers):
    H, L = hidden_size, num_layers
    fuse = (H % 128 == 0)          # fused (., 3H) gate matmuls stay lane-aligned
    gru_flat = []
    for l in range(L):
        w_ih, w_hh = params["w_ih"][l], params["w_hh"][l]
        b_ih, b_hh = params["b_ih"][l], params["b_hh"][l]
        if fuse:
            gru_flat += [w_ih.astype(jnp.bfloat16), w_hh.astype(jnp.bfloat16),
                         b_ih.astype(jnp.float32), b_hh.astype(jnp.float32)]
        else:
            gru_flat += [w_ih[:, :H].astype(jnp.bfloat16),
                         w_ih[:, H:2 * H].astype(jnp.bfloat16),
                         w_ih[:, 2 * H:].astype(jnp.bfloat16),
                         w_hh[:, :H].astype(jnp.bfloat16),
                         w_hh[:, H:2 * H].astype(jnp.bfloat16),
                         w_hh[:, 2 * H:].astype(jnp.bfloat16),
                         (b_ih[:, :H] + b_hh[:, :H]).astype(jnp.float32),          # b_r
                         (b_ih[:, H:2 * H] + b_hh[:, H:2 * H]).astype(jnp.float32),  # b_z
                         b_ih[:, 2 * H:].astype(jnp.float32),                      # b_in
                         b_hh[:, 2 * H:].astype(jnp.float32)]                      # b_hn
    return {
        "fuse_gates": fuse,
        "gru_flat": gru_flat,
        "emb_bf16": params["embedding"].astype(jnp.bfloat16),
        "w_out_bf": params["w_out"].astype(jnp.bfloat16),
        "b_out": params["b_out"].astype(jnp.float32),
        "w_sw_c": params["w_sw_c"].astype(jnp.float32),
        "w_sw_h": params["w_sw_h"].astype(jnp.float32),
        "b_sw": params["b_sw"].astype(jnp.float32),
    }


# --------------------------------------------------------------------------- #
# Wrapper                                                                      #
# --------------------------------------------------------------------------- #
def switching_decoder_forward(request, request_lengths, context_state, prep, *,
                              num_layers, hidden_size, pad_token_idx,
                              time_chunk=32, head_tile_rows=256,
                              head_out_dtype=jnp.bfloat16):
    B, T = request.shape
    H, L = hidden_size, num_layers
    E = prep["emb_bf16"].shape[1]
    V = prep["w_out_bf"].shape[1]

    Tc = _pick_time_chunk(T, time_chunk)

    # ---- glue: embedding gather directly in time-major (T, B, E) order, bf16 ----
    # TODO(synk): nn.Embedding row gather stays wrapper glue (an in-kernel version
    # would need a manual per-token HBM DMA gather).
    emb = jnp.take(prep["emb_bf16"], request.T, axis=0)                      # (T, B, E)

    lengths = request_lengths.astype(jnp.int32)
    max_len = jnp.max(lengths)                      # computed once, not per step
    t_idx = jnp.arange(T, dtype=jnp.int32)[:, None, None]                    # (T,1,1)
    keep = (t_idx < lengths[None, :, None]).astype(jnp.float32)              # (T,B,1)
    fallback = jnp.broadcast_to(
        jnp.where(t_idx < max_len, 0.0, float(pad_token_idx)).astype(jnp.float32),
        (T, B, 1))                                                           # (T,B,1)
    ctx = context_state.astype(jnp.float32)

    fuse = prep["fuse_gates"]
    gru_flat = prep["gru_flat"]

    gru_inputs = [emb, keep, fallback, ctx] + list(gru_flat)
    gru_in_specs = [pl.BlockSpec((Tc, B, E), lambda c: (c, 0, 0)),
                    pl.BlockSpec((Tc, B, 1), lambda c: (c, 0, 0)),
                    pl.BlockSpec((Tc, B, 1), lambda c: (c, 0, 0)),
                    _const_spec(ctx)]
    gru_in_specs += [_const_spec(a) for a in gru_flat]

    w_bytes = sum(int(a.size) * a.dtype.itemsize for a in gru_flat)
    est1 = (2 * w_bytes + 2 * Tc * B * (E * 2 + 8 + H * 4)
            + L * B * H * 4 + 4 * Tc * B * H * 4)
    vmem1 = int(min(32 * 1024 * 1024, max(8 * 1024 * 1024, 2 * est1)))

    states = pl.pallas_call(
        functools.partial(_gru_kernel, L, fuse),
        out_shape=jax.ShapeDtypeStruct((B, T, H), jnp.float32),
        grid_spec=pltpu.PrefetchScalarGridSpec(
            num_scalar_prefetch=0,
            grid=(T // Tc,),
            in_specs=gru_in_specs,
            out_specs=pl.BlockSpec((B, Tc, H), lambda c: (0, c, 0)),
            scratch_shapes=[pltpu.VMEM((L, B, H), jnp.float32)]),
        compiler_params=pltpu.CompilerParams(
            dimension_semantics=("arbitrary",),         # GRU recurrence is sequential
            vmem_limit_bytes=vmem1),
    )(*gru_inputs)                                      # (B, T, H) f32

    # ---- kernel 2: heads over row tiles of M = B*T, direct (M, V+1) output ----
    M = B * T
    tile_m, M_pad = _pick_row_tile(M, head_tile_rows)   # multiple-of-16 rows (or == M)

    states_flat = states.reshape(M, H)                  # free reshape (B-major rows)
    sw_rows = jnp.broadcast_to(
        (ctx @ prep["w_sw_c"] + prep["b_sw"])[:, None, :], (B, T, 1)).reshape(M, 1)

    if M_pad != M:                                      # rare: pad rows, discarded below
        states_flat = jnp.concatenate(
            [states_flat, jnp.zeros((M_pad - M, H), states_flat.dtype)], axis=0)
        sw_rows = jnp.concatenate(
            [sw_rows, jnp.zeros((M_pad - M, 1), sw_rows.dtype)], axis=0)

    out_bytes = jnp.dtype(head_out_dtype).itemsize
    est2 = (2 * tile_m * (H * 4 + 4)                    # double-buffered states + switch col
            + 2 * tile_m * (V + 1) * out_bytes          # double-buffered output block
            + 2 * (H * V * 2 + V * 4 + H * 4)           # constants
            + 4 * tile_m * V * 4)                       # in-kernel f32 logits / exp temps
    vmem2 = int(min(48 * 1024 * 1024, max(16 * 1024 * 1024, 2 * est2)))

    head_inputs = [states_flat, sw_rows, prep["w_out_bf"], prep["b_out"],
                   prep["w_sw_h"]]
    head_in_specs = [pl.BlockSpec((tile_m, H), lambda i: (i, 0)),
                     pl.BlockSpec((tile_m, 1), lambda i: (i, 0))]
    head_in_specs += [_const_spec(a) for a in head_inputs[2:]]

    # TODO(synk): at production vocab (~24k) on v6e/v7x, additionally tile V with a
    # second grid axis + two-pass (online) log-softmax; at this vocab the full (H,V)
    # weight and (tile_m, V) logits fit comfortably.  On v7x keep >= 2 grid steps so
    # both TensorCores are occupied.
    out_flat = pl.pallas_call(
        functools.partial(_head_kernel, V),
        out_shape=jax.ShapeDtypeStruct((M_pad, V + 1), head_out_dtype),
        grid_spec=pltpu.PrefetchScalarGridSpec(
            num_scalar_prefetch=0,
            grid=(M_pad // tile_m,),
            in_specs=head_in_specs,
            out_specs=pl.BlockSpec((tile_m, V + 1), lambda i: (i, 0))),
        compiler_params=pltpu.CompilerParams(
            dimension_semantics=("parallel",),          # row tiles are independent
            vmem_limit_bytes=vmem2),
    )(*head_inputs)

    if M_pad != M:
        out_flat = out_flat[:M]
    return out_flat.reshape(B, T, V + 1)                # free reshape; no concat/transpose


# --------------------------------------------------------------------------- #
# Parameters + pure-JAX reference                                              #
# --------------------------------------------------------------------------- #
def init_params(key, vocab_size, embedding_dim, hidden_size, context_size, num_layers):
    H = hidden_size
    keys = jax.random.split(key, 2 + num_layers)
    params = {"embedding": jax.random.normal(keys[0], (vocab_size, embedding_dim),
                                             jnp.float32) * 0.1}
    w_ih, w_hh, b_ih, b_hh = [], [], [], []
    for l in range(num_layers):
        in_dim = embedding_dim if l == 0 else H
        k = jax.random.split(keys[1 + l], 4)
        w_ih.append(jax.random.normal(k[0], (in_dim, 3 * H), jnp.float32) * 0.1)
        w_hh.append(jax.random.normal(k[1], (H, 3 * H), jnp.float32) * 0.1)
        b_ih.append(jax.random.normal(k[2], (1, 3 * H), jnp.float32) * 0.1)
        b_hh.append(jax.random.normal(k[3], (1, 3 * H), jnp.float32) * 0.1)
    params.update(w_ih=w_ih, w_hh=w_hh, b_ih=b_ih, b_hh=b_hh)
    kh = jax.random.split(keys[-1], 5)
    params["w_out"] = jax.random.normal(kh[0], (H, vocab_size), jnp.float32) * 0.1
    params["b_out"] = jax.random.normal(kh[1], (1, vocab_size), jnp.float32) * 0.1
    params["w_sw_c"] = jax.random.normal(kh[2], (context_size, 1), jnp.float32) * 0.1
    params["w_sw_h"] = jax.random.normal(kh[3], (H, 1), jnp.float32) * 0.1
    params["b_sw"] = jax.random.normal(kh[4], (1, 1), jnp.float32) * 0.1
    return params


def reference_forward(request, request_lengths, context_state, params,
                      *, num_layers, hidden_size, pad_token_idx):
    # pure-JAX f32 reference with identical math (correctness check)
    B, T = request.shape
    H, L = hidden_size, num_layers
    emb = jnp.take(params["embedding"], request, axis=0)
    h = [context_state.astype(jnp.float32) for _ in range(L)]
    states = []
    for t in range(T):
        inp = emb[:, t, :]
        for l in range(L):
            gi = inp @ params["w_ih"][l] + params["b_ih"][l]
            gh = h[l] @ params["w_hh"][l] + params["b_hh"][l]
            r = jax.nn.sigmoid(gi[:, :H] + gh[:, :H])
            z = jax.nn.sigmoid(gi[:, H:2 * H] + gh[:, H:2 * H])
            n = jnp.tanh(gi[:, 2 * H:] + r * gh[:, 2 * H:])
            h[l] = (1.0 - z) * n + z * h[l]
            inp = h[l]
        states.append(inp)
    vs = jnp.stack(states, axis=1)                                  # (B, T, H)
    lengths = request_lengths.astype(jnp.int32)
    max_len = jnp.max(lengths)
    t_idx = jnp.arange(T)[None, :, None]
    fallback = jnp.where(t_idx < max_len, 0.0, float(pad_token_idx))
    vs = jnp.where(t_idx < lengths[:, None, None], vs, fallback)
    lang = vs @ params["w_out"] + params["b_out"]
    log_sm = jax.nn.log_softmax(lang, axis=-1)
    sw = ((context_state @ params["w_sw_c"])[:, None, :]
          + vs @ params["w_sw_h"] + params["b_sw"])
    return jnp.concatenate([_log_sigmoid(sw) + log_sm, _log_sigmoid(-sw)], axis=-1)


if __name__ == "__main__":
    key = jax.random.PRNGKey(0)
    pad_token_idx = 3
    num_layers = 2
    embedding_dim = 16

    # ---- config 1: per-gate GRU path (H % 128 != 0), f32 head output, ----
    # ----           multi-chunk time grid and multi-tile head grid      ----
    B, T = 2, 16
    hidden_size = context_size = 32
    vocab_size = 128

    k_param, k_req, k_ctx, k2 = jax.random.split(key, 4)
    params = init_params(k_param, vocab_size, embedding_dim, hidden_size,
                         context_size, num_layers)
    prep = prepare_params(params, hidden_size=hidden_size, num_layers=num_layers)
    request = jax.random.randint(k_req, (B, T), 1, vocab_size, dtype=jnp.int32)
    request_lengths = jnp.array([9, 13], dtype=jnp.int32)
    context_state = jax.random.normal(k_ctx, (B, context_size), jnp.float32)

    out = switching_decoder_forward(
        request, request_lengths, context_state, prep,
        num_layers=num_layers, hidden_size=hidden_size, pad_token_idx=pad_token_idx,
        time_chunk=8, head_tile_rows=16, head_out_dtype=jnp.float32)
    out = jax.block_until_ready(out)
    assert out.shape == (B, T, vocab_size + 1), out.shape

    ref = reference_forward(request, request_lengths, context_state, params,
                            num_layers=num_layers, hidden_size=hidden_size,
                            pad_token_idx=pad_token_idx)
    err = float(jnp.max(jnp.abs(out - ref)))
    # bf16 GRU / vocab-head matmul operands + bf16 exp (f32 accumulation) vs f32 ref
    assert jnp.allclose(out, ref, atol=4e-2, rtol=4e-2), f"config1 max abs err {err}"

    # ---- config 2: fused-gate GRU path (H % 128 == 0), default bf16 head ----
    # ----           output, single-chunk / single-tile grids              ----
    B2, T2 = 2, 8
    hidden_size2 = context_size2 = 128
    vocab_size2 = 256
    k_param2, k_req2, k_ctx2 = jax.random.split(k2, 3)
    params2 = init_params(k_param2, vocab_size2, embedding_dim, hidden_size2,
                          context_size2, num_layers)
    prep2 = prepare_params(params2, hidden_size=hidden_size2, num_layers=num_layers)
    request2 = jax.random.randint(k_req2, (B2, T2), 1, vocab_size2, dtype=jnp.int32)
    request_lengths2 = jnp.array([4, 7], dtype=jnp.int32)
    context_state2 = jax.random.normal(k_ctx2, (B2, context_size2), jnp.float32)

    out2 = switching_decoder_forward(
        request2, request_lengths2, context_state2, prep2,
        num_layers=num_layers, hidden_size=hidden_size2, pad_token_idx=pad_token_idx)
    out2 = jax.block_until_ready(out2)
    assert out2.shape == (B2, T2, vocab_size2 + 1), out2.shape

    ref2 = reference_forward(request2, request_lengths2, context_state2, params2,
                             num_layers=num_layers, hidden_size=hidden_size2,
                             pad_token_idx=pad_token_idx)
    err2 = float(jnp.max(jnp.abs(out2.astype(jnp.float32) - ref2)))
    # bf16 output storage on top of the bf16 compute path -> looser tolerance
    assert jnp.allclose(out2.astype(jnp.float32), ref2, atol=8e-2, rtol=8e-2), \
        f"config2 max abs err {err2}"

    print("KERNEL_OK")
</pallas_src>

<mosaic_0001>
module attributes {stable_mosaic.version = 11 : i64} {
  func.func @_gru_kernel(%arg0: i32, %arg1: memref<8x2x16xbf16, #tpu.memory_space<vmem>>, %arg2: memref<8x2x1xf32, #tpu.memory_space<vmem>>, %arg3: memref<8x2x1xf32, #tpu.memory_space<vmem>>, %arg4: memref<2x32xf32, #tpu.memory_space<vmem>>, %arg5: memref<16x32xbf16, #tpu.memory_space<vmem>>, %arg6: memref<16x32xbf16, #tpu.memory_space<vmem>>, %arg7: memref<16x32xbf16, #tpu.memory_space<vmem>>, %arg8: memref<32x32xbf16, #tpu.memory_space<vmem>>, %arg9: memref<32x32xbf16, #tpu.memory_space<vmem>>, %arg10: memref<32x32xbf16, #tpu.memory_space<vmem>>, %arg11: memref<1x32xf32, #tpu.memory_space<vmem>>, %arg12: memref<1x32xf32, #tpu.memory_space<vmem>>, %arg13: memref<1x32xf32, #tpu.memory_space<vmem>>, %arg14: memref<1x32xf32, #tpu.memory_space<vmem>>, %arg15: memref<32x32xbf16, #tpu.memory_space<vmem>>, %arg16: memref<32x32xbf16, #tpu.memory_space<vmem>>, %arg17: memref<32x32xbf16, #tpu.memory_space<vmem>>, %arg18: memref<32x32xbf16, #tpu.memory_space<vmem>>, %arg19: memref<32x32xbf16, #tpu.memory_space<vmem>>, %arg20: memref<32x32xbf16, #tpu.memory_space<vmem>>, %arg21: memref<1x32xf32, #tpu.memory_space<vmem>>, %arg22: memref<1x32xf32, #tpu.memory_space<vmem>>, %arg23: memref<1x32xf32, #tpu.memory_space<vmem>>, %arg24: memref<1x32xf32, #tpu.memory_space<vmem>>, %arg25: memref<2x8x32xf32, #tpu.memory_space<vmem>>, %arg26: memref<2x2x32xf32, #tpu.memory_space<vmem>>) attributes {dimension_semantics = [#tpu.dimension_semantics<arbitrary>], iteration_bounds = array<i64: 2>, scalar_prefetch = 0 : i64, scratch_operands = 1 : i64, tpu.core_type = #tpu.core_type<tc>, window_params = [{transform_indices = @transform_0, window_bounds = array<i64: 8, 2, 16>}, {transform_indices = @transform_1, window_bounds = array<i64: 8, 2, 1>}, {transform_indices = @transform_2, window_bounds = array<i64: 8, 2, 1>}, {pipeline_mode = #tpu.pipeline_mode<synchronous>, transform_indices = @transform_3, window_bounds = array<i64: 2, 32>}, {pipeline_mode = #tpu.pipeline_mode<synchronous>, transform_indices = @transform_4, window_bounds = array<i64: 16, 32>}, {pipeline_mode = #tpu.pipeline_mode<synchronous>, transform_indices = @transform_5, window_bounds = array<i64: 16, 32>}, {pipeline_mode = #tpu.pipeline_mode<synchronous>, transform_indices = @transform_6, window_bounds = array<i64: 16, 32>}, {pipeline_mode = #tpu.pipeline_mode<synchronous>, transform_indices = @transform_7, window_bounds = array<i64: 32, 32>}, {pipeline_mode = #tpu.pipeline_mode<synchronous>, transform_indices = @transform_8, window_bounds = array<i64: 32, 32>}, {pipeline_mode = #tpu.pipeline_mode<synchronous>, transform_indices = @transform_9, window_bounds = array<i64: 32, 32>}, {pipeline_mode = #tpu.pipeline_mode<synchronous>, transform_indices = @transform_10, window_bounds = array<i64: 1, 32>}, {pipeline_mode = #tpu.pipeline_mode<synchronous>, transform_indices = @transform_11, window_bounds = array<i64: 1, 32>}, {pipeline_mode = #tpu.pipeline_mode<synchronous>, transform_indices = @transform_12, window_bounds = array<i64: 1, 32>}, {pipeline_mode = #tpu.pipeline_mode<synchronous>, transform_indices = @transform_13, window_bounds = array<i64: 1, 32>}, {pipeline_mode = #tpu.pipeline_mode<synchronous>, transform_indices = @transform_14, window_bounds = array<i64: 32, 32>}, {pipeline_mode = #tpu.pipeline_mode<synchronous>, transform_indices = @transform_15, window_bounds = array<i64: 32, 32>}, {pipeline_mode = #tpu.pipeline_mode<synchronous>, transform_indices = @transform_16, window_bounds = array<i64: 32, 32>}, {pipeline_mode = #tpu.pipeline_mode<synchronous>, transform_indices = @transform_17, window_bounds = array<i64: 32, 32>}, {pipeline_mode = #tpu.pipeline_mode<synchronous>, transform_indices = @transform_18, window_bounds = array<i64: 32, 32>}, {pipeline_mode = #tpu.pipeline_mode<synchronous>, transform_indices = @transform_19, window_bounds = array<i64: 32, 32>}, {pipeline_mode = #tpu.pipeline_mode<synchronous>, transform_indices = @transform_20, window_bounds = array<i64: 1, 32>}, {pipeline_mode = #tpu.pipeline_mode<synchronous>, transform_indices = @transform_21, window_bounds = array<i64: 1, 32>}, {pipeline_mode = #tpu.pipeline_mode<synchronous>, transform_indices = @transform_22, window_bounds = array<i64: 1, 32>}, {pipeline_mode = #tpu.pipeline_mode<synchronous>, transform_indices = @transform_23, window_bounds = array<i64: 1, 32>}, {transform_indices = @transform_24, window_bounds = array<i64: 2, 8, 32>}]} {
    %c0_i32 = arith.constant 0 : i32
    %0 = arith.cmpi eq, %arg0, %c0_i32 : i32
    %1 = arith.extui %0 : i1 to i32
    %c0_i32_0 = arith.constant 0 : i32
    %2 = arith.cmpi ne, %1, %c0_i32_0 : i32
    scf.if %2 {
      %c0_376 = arith.constant 0 : index
      %c0_377 = arith.constant 0 : index
      %808 = vector.load %arg4[%c0_376, %c0_377] : memref<2x32xf32, #tpu.memory_space<vmem>>, vector<2x32xf32>
      %c0_378 = arith.constant 0 : index
      %c0_379 = arith.constant 0 : index
      %c0_380 = arith.constant 0 : index
      %809 = vector.load %arg26[%c0_378, %c0_379, %c0_380] : memref<2x2x32xf32, #tpu.memory_space<vmem>>, vector<1x2x32xf32>
      %810 = vector.shape_cast %809 : vector<1x2x32xf32> to vector<2x32xf32>
      %811 = vector.shape_cast %808 : vector<2x32xf32> to vector<1x2x32xf32>
      tpu.vector_store %arg26[%c0_378, %c0_379, %c0_380], %811 {strides = array<i32>} : memref<2x2x32xf32, #tpu.memory_space<vmem>>, vector<1x2x32xf32>,
      %c1_381 = arith.constant 1 : index
      %c0_382 = arith.constant 0 : index
      %c0_383 = arith.constant 0 : index
      %812 = vector.load %arg26[%c1_381, %c0_382, %c0_383] : memref<2x2x32xf32, #tpu.memory_space<vmem>>, vector<1x2x32xf32>
      %813 = vector.shape_cast %812 : vector<1x2x32xf32> to vector<2x32xf32>
      %814 = vector.shape_cast %808 : vector<2x32xf32> to vector<1x2x32xf32>
      tpu.vector_store %arg26[%c1_381, %c0_382, %c0_383], %814 {strides = array<i32>} : memref<2x2x32xf32, #tpu.memory_space<vmem>>, vector<1x2x32xf32>,
    } else {
    }
    %c0 = arith.constant 0 : index
    %c0_1 = arith.constant 0 : index
    %3 = vector.load %arg11[%c0, %c0_1] : memref<1x32xf32, #tpu.memory_space<vmem>>, vector<1x32xf32>
    %c0_2 = arith.constant 0 : index
    %c0_3 = arith.constant 0 : index
    %4 = vector.load %arg12[%c0_2, %c0_3] : memref<1x32xf32, #tpu.memory_space<vmem>>, vector<1x32xf32>
    %c0_4 = arith.constant 0 : index
    %c0_5 = arith.constant 0 : index
    %5 = vector.load %arg13[%c0_4, %c0_5] : memref<1x32xf32, #tpu.memory_space<vmem>>, vector<1x32xf32>
    %c0_6 = arith.constant 0 : index
    %c0_7 = arith.constant 0 : index
    %6 = vector.load %arg14[%c0_6, %c0_7] : memref<1x32xf32, #tpu.memory_space<vmem>>, vector<1x32xf32>
    %c0_8 = arith.constant 0 : index
    %c0_9 = arith.constant 0 : index
    %7 = vector.load %arg21[%c0_8, %c0_9] : memref<1x32xf32, #tpu.memory_space<vmem>>, vector<1x32xf32>
    %c0_10 = arith.constant 0 : index
    %c0_11 = arith.constant 0 : index
    %8 = vector.load %arg22[%c0_10, %c0_11] : memref<1x32xf32, #tpu.memory_space<vmem>>, vector<1x32xf32>
    %c0_12 = arith.constant 0 : index
    %c0_13 = arith.constant 0 : index
    %9 = vector.load %arg23[%c0_12, %c0_13] : memref<1x32xf32, #tpu.memory_space<vmem>>, vector<1x32xf32>
    %c0_14 = arith.constant 0 : index
    %c0_15 = arith.constant 0 : index
    %10 = vector.load %arg24[%c0_14, %c0_15] : memref<1x32xf32, #tpu.memory_space<vmem>>, vector<1x32xf32>
    %c0_16 = arith.constant 0 : index
    %c0_17 = arith.constant 0 : index
    %c0_18 = arith.constant 0 : index
    %11 = vector.load %arg1[%c0_16, %c0_17, %c0_18] : memref<8x2x16xbf16, #tpu.memory_space<vmem>>, vector<8x2x16xbf16>
    %12 = vector.shape_cast %11 : vector<8x2x16xbf16> to vector<16x16xbf16>
    %c0_19 = arith.constant 0 : index
    %c0_20 = arith.constant 0 : index
    %13 = vector.load %arg5[%c0_19, %c0_20] : memref<16x32xbf16, #tpu.memory_space<vmem>>, vector<16x32xbf16>
    %cst = arith.constant dense<0.000000e+00> : vector<16x32xf32>
    %14 = tpu.matmul %12, %13, %cst {dimension_numbers = #tpu.dot_dimension_numbers<[1], [0], [0], [1], [0, 0, 1, 1], [], []>} : vector<16x16xbf16>, vector<16x32xbf16>, vector<16x32xf32> -> vector<16x32xf32>
    %15 = vector.shape_cast %14 : vector<16x32xf32> to vector<8x2x32xf32>
    %c0_21 = arith.constant 0 : index
    %c0_22 = arith.constant 0 : index
    %16 = vector.load %arg6[%c0_21, %c0_22] : memref<16x32xbf16, #tpu.memory_space<vmem>>, vector<16x32xbf16>
    %cst_23 = arith.constant dense<0.000000e+00> : vector<16x32xf32>
    %17 = tpu.matmul %12, %16, %cst_23 {dimension_numbers = #tpu.dot_dimension_numbers<[1], [0], [0], [1], [0, 0, 1, 1], [], []>} : vector<16x16xbf16>, vector<16x32xbf16>, vector<16x32xf32> -> vector<16x32xf32>
    %18 = vector.shape_cast %17 : vector<16x32xf32> to vector<8x2x32xf32>
    %c0_24 = arith.constant 0 : index
    %c0_25 = arith.constant 0 : index
    %19 = vector.load %arg7[%c0_24, %c0_25] : memref<16x32xbf16, #tpu.memory_space<vmem>>, vector<16x32xbf16>
    %cst_26 = arith.constant dense<0.000000e+00> : vector<16x32xf32>
    %20 = tpu.matmul %12, %19, %cst_26 {dimension_numbers = #tpu.dot_dimension_numbers<[1], [0], [0], [1], [0, 0, 1, 1], [], []>} : vector<16x16xbf16>, vector<16x32xbf16>, vector<16x32xf32> -> vector<16x32xf32>
    %21 = vector.shape_cast %20 : vector<16x32xf32> to vector<8x2x32xf32>
    %c0_27 = arith.constant 0 : index
    %c0_28 = arith.constant 0 : index
    %c0_29 = arith.constant 0 : index
    %22 = vector.load %arg26[%c0_27, %c0_28, %c0_29] : memref<2x2x32xf32, #tpu.memory_space<vmem>>, vector<1x2x32xf32>
    %23 = vector.shape_cast %22 : vector<1x2x32xf32> to vector<2x32xf32>
    %c1 = arith.constant 1 : index
    %c0_30 = arith.constant 0 : index
    %c0_31 = arith.constant 0 : index
    %24 = vector.load %arg26[%c1, %c0_30, %c0_31] : memref<2x2x32xf32, #tpu.memory_space<vmem>>, vector<1x2x32xf32>
    %25 = vector.shape_cast %24 : vector<1x2x32xf32> to vector<2x32xf32>
    %26 = arith.truncf %23 : vector<2x32xf32> to vector<2x32xbf16>
    %27 = vector.extract_strided_slice %15 {offsets = [0, 0, 0], sizes = [1, 2, 32], strides = [1, 1, 1]} : vector<8x2x32xf32> to vector<1x2x32xf32>
    %28 = vector.shape_cast %27 : vector<1x2x32xf32> to vector<2x32xf32>
    %29 = vector.extract_strided_slice %18 {offsets = [0, 0, 0], sizes = [1, 2, 32], strides = [1, 1, 1]} : vector<8x2x32xf32> to vector<1x2x32xf32>
    %30 = vector.shape_cast %29 : vector<1x2x32xf32> to vector<2x32xf32>
    %31 = vector.extract_strided_slice %21 {offsets = [0, 0, 0], sizes = [1, 2, 32], strides = [1, 1, 1]} : vector<8x2x32xf32> to vector<1x2x32xf32>
    %32 = vector.shape_cast %31 : vector<1x2x32xf32> to vector<2x32xf32>
    %c0_32 = arith.constant 0 : index
    %c0_33 = arith.constant 0 : index
    %33 = vector.load %arg8[%c0_32, %c0_33] : memref<32x32xbf16, #tpu.memory_space<vmem>>, vector<32x32xbf16>
    %cst_34 = arith.constant dense<0.000000e+00> : vector<2x32xf32>
    %34 = tpu.matmul %26, %33, %cst_34 {dimension_numbers = #tpu.dot_dimension_numbers<[1], [0], [0], [1], [0, 0, 1, 1], [], []>} : vector<2x32xbf16>, vector<32x32xbf16>, vector<2x32xf32> -> vector<2x32xf32>
    %35 = arith.addf %28, %34 : vector<2x32xf32>
    %36 = vector.broadcast %3 : vector<1x32xf32> to vector<2x32xf32>
    %37 = arith.addf %35, %36 : vector<2x32xf32>
    %38 = arith.negf %37 : vector<2x32xf32>
    %39 = math.exp %38 : vector<2x32xf32>
    %cst_35 = arith.constant 1.000000e+00 : f32
    %40 = vector.broadcast %cst_35 : f32 to vector<2x32xf32>
    %41 = arith.addf %40, %39 : vector<2x32xf32>
    %42 = arith.divf %40, %41 : vector<2x32xf32>
    %c0_36 = arith.constant 0 : index
    %c0_37 = arith.constant 0 : index
    %43 = vector.load %arg9[%c0_36, %c0_37] : memref<32x32xbf16, #tpu.memory_space<vmem>>, vector<32x32xbf16>
    %cst_38 = arith.constant dense<0.000000e+00> : vector<2x32xf32>
    %44 = tpu.matmul %26, %43, %cst_38 {dimension_numbers = #tpu.dot_dimension_numbers<[1], [0], [0], [1], [0, 0, 1, 1], [], []>} : vector<2x32xbf16>, vector<32x32xbf16>, vector<2x32xf32> -> vector<2x32xf32>
    %45 = arith.addf %30, %44 : vector<2x32xf32>
    %46 = vector.broadcast %4 : vector<1x32xf32> to vector<2x32xf32>
    %47 = arith.addf %45, %46 : vector<2x32xf32>
    %48 = arith.negf %47 : vector<2x32xf32>
    %49 = math.exp %48 : vector<2x32xf32>
    %cst_39 = arith.constant 1.000000e+00 : f32
    %50 = vector.broadcast %cst_39 : f32 to vector<2x32xf32>
    %51 = arith.addf %50, %49 : vector<2x32xf32>
    %52 = arith.divf %50, %51 : vector<2x32xf32>
    %53 = vector.broadcast %5 : vector<1x32xf32> to vector<2x32xf32>
    %54 = arith.addf %32, %53 : vector<2x32xf32>
    %c0_40 = arith.constant 0 : index
    %c0_41 = arith.constant 0 : index
    %55 = vector.load %arg10[%c0_40, %c0_41] : memref<32x32xbf16, #tpu.memory_space<vmem>>, vector<32x32xbf16>
    %cst_42 = arith.constant dense<0.000000e+00> : vector<2x32xf32>
    %56 = tpu.matmul %26, %55, %cst_42 {dimension_numbers = #tpu.dot_dimension_numbers<[1], [0], [0], [1], [0, 0, 1, 1], [], []>} : vector<2x32xbf16>, vector<32x32xbf16>, vector<2x32xf32> -> vector<2x32xf32>
    %57 = vector.broadcast %6 : vector<1x32xf32> to vector<2x32xf32>
    %58 = arith.addf %56, %57 : vector<2x32xf32>
    %59 = arith.mulf %42, %58 : vector<2x32xf32>
    %60 = arith.addf %54, %59 : vector<2x32xf32>
    %61 = math.tanh %60 : vector<2x32xf32>
    %cst_43 = arith.constant 1.000000e+00 : f32
    %62 = vector.broadcast %cst_43 : f32 to vector<2x32xf32>
    %63 = arith.subf %62, %52 : vector<2x32xf32>
    %64 = arith.mulf %63, %61 : vector<2x32xf32>
    %65 = arith.mulf %52, %23 : vector<2x32xf32>
    %66 = arith.addf %64, %65 : vector<2x32xf32>
    %67 = arith.truncf %66 : vector<2x32xf32> to vector<2x32xbf16>
    %68 = arith.truncf %25 : vector<2x32xf32> to vector<2x32xbf16>
    %c0_44 = arith.constant 0 : index
    %c0_45 = arith.constant 0 : index
    %69 = vector.load %arg15[%c0_44, %c0_45] : memref<32x32xbf16, #tpu.memory_space<vmem>>, vector<32x32xbf16>
    %cst_46 = arith.constant dense<0.000000e+00> : vector<2x32xf32>
    %70 = tpu.matmul %67, %69, %cst_46 {dimension_numbers = #tpu.dot_dimension_numbers<[1], [0], [0], [1], [0, 0, 1, 1], [], []>} : vector<2x32xbf16>, vector<32x32xbf16>, vector<2x32xf32> -> vector<2x32xf32>
    %c0_47 = arith.constant 0 : index
    %c0_48 = arith.constant 0 : index
    %71 = vector.load %arg16[%c0_47, %c0_48] : memref<32x32xbf16, #tpu.memory_space<vmem>>, vector<32x32xbf16>
    %cst_49 = arith.constant dense<0.000000e+00> : vector<2x32xf32>
    %72 = tpu.matmul %67, %71, %cst_49 {dimension_numbers = #tpu.dot_dimension_numbers<[1], [0], [0], [1], [0, 0, 1, 1], [], []>} : vector<2x32xbf16>, vector<32x32xbf16>, vector<2x32xf32> -> vector<2x32xf32>
    %c0_50 = arith.constant 0 : index
    %c0_51 = arith.constant 0 : index
    %73 = vector.load %arg17[%c0_50, %c0_51] : memref<32x32xbf16, #tpu.memory_space<vmem>>, vector<32x32xbf16>
    %cst_52 = arith.constant dense<0.000000e+00> : vector<2x32xf32>
    %74 = tpu.matmul %67, %73, %cst_52 {dimension_numbers = #tpu.dot_dimension_numbers<[1], [0], [0], [1], [0, 0, 1, 1], [], []>} : vector<2x32xbf16>, vector<32x32xbf16>, vector<2x32xf32> -> vector<2x32xf32>
    %c0_53 = arith.constant 0 : index
    %c0_54 = arith.constant 0 : index
    %75 = vector.load %arg18[%c0_53, %c0_54] : memref<32x32xbf16, #tpu.memory_space<vmem>>, vector<32x32xbf16>
    %cst_55 = arith.constant dense<0.000000e+00> : vector<2x32xf32>
    %76 = tpu.matmul %68, %75, %cst_55 {dimension_numbers = #tpu.dot_dimension_numbers<[1], [0], [0], [1], [0, 0, 1, 1], [], []>} : vector<2x32xbf16>, vector<32x32xbf16>, vector<2x32xf32> -> vector<2x32xf32>
    %77 = arith.addf %70, %76 : vector<2x32xf32>
    %78 = vector.broadcast %7 : vector<1x32xf32> to vector<2x32xf32>
    %79 = arith.addf %77, %78 : vector<2x32xf32>
    %80 = arith.negf %79 : vector<2x32xf32>
    %81 = math.exp %80 : vector<2x32xf32>
    %cst_56 = arith.constant 1.000000e+00 : f32
    %82 = vector.broadcast %cst_56 : f32 to vector<2x32xf32>
    %83 = arith.addf %82, %81 : vector<2x32xf32>
    %84 = arith.divf %82, %83 : vector<2x32xf32>
    %c0_57 = arith.constant 0 : index
    %c0_58 = arith.constant 0 : index
    %85 = vector.load %arg19[%c0_57, %c0_58] : memref<32x32xbf16, #tpu.memory_space<vmem>>, vector<32x32xbf16>
    %cst_59 = arith.constant dense<0.000000e+00> : vector<2x32xf32>
    %86 = tpu.matmul %68, %85, %cst_59 {dimension_numbers = #tpu.dot_dimension_numbers<[1], [0], [0], [1], [0, 0, 1, 1], [], []>} : vector<2x32xbf16>, vector<32x32xbf16>, vector<2x32xf32> -> vector<2x32xf32>
    %87 = arith.addf %72, %86 : vector<2x32xf32>
    %88 = vector.broadcast %8 : vector<1x32xf32> to vector<2x32xf32>
    %89 = arith.addf %87, %88 : vector<2x32xf32>
    %90 = arith.negf %89 : vector<2x32xf32>
    %91 = math.exp %90 : vector<2x32xf32>
    %cst_60 = arith.constant 1.000000e+00 : f32
    %92 = vector.broadcast %cst_60 : f32 to vector<2x32xf32>
    %93 = arith.addf %92, %91 : vector<2x32xf32>
    %94 = arith.divf %92, %93 : vector<2x32xf32>
    %95 = vector.broadcast %9 : vector<1x32xf32> to vector<2x32xf32>
    %96 = arith.addf %74, %95 : vector<2x32xf32>
    %c0_61 = arith.constant 0 : index
    %c0_62 = arith.constant 0 : index
    %97 = vector.load %arg20[%c0_61, %c0_62] : memref<32x32xbf16, #tpu.memory_space<vmem>>, vector<32x32xbf16>
    %cst_63 = arith.constant dense<0.000000e+00> : vector<2x32xf32>
    %98 = tpu.matmul %68, %97, %cst_63 {dimension_numbers = #tpu.dot_dimension_numbers<[1], [0], [0], [1], [0, 0, 1, 1], [], []>} : vector<2x32xbf16>, vector<32x32xbf16>, vector<2x32xf32> -> vector<2x32xf32>
    %99 = vector.broadcast %10 : vector<1x32xf32> to vector<2x32xf32>
    %100 = arith.addf %98, %99 : vector<2x32xf32>
    %101 = arith.mulf %84, %100 : vector<2x32xf32>
    %102 = arith.addf %96, %101 : vector<2x32xf32>
    %103 = math.tanh %102 : vector<2x32xf32>
    %cst_64 = arith.constant 1.000000e+00 : f32
    %104 = vector.broadcast %cst_64 : f32 to vector<2x32xf32>
    %105 = arith.subf %104, %94 : vector<2x32xf32>
    %106 = arith.mulf %105, %103 : vector<2x32xf32>
    %107 = arith.mulf %94, %25 : vector<2x32xf32>
    %108 = arith.addf %106, %107 : vector<2x32xf32>
    %c0_65 = arith.constant 0 : index
    %c0_66 = arith.constant 0 : index
    %c0_67 = arith.constant 0 : index
    %109 = vector.load %arg2[%c0_65, %c0_66, %c0_67] : memref<8x2x1xf32, #tpu.memory_space<vmem>>, vector<1x2x1xf32>
    %110 = vector.shape_cast %109 : vector<1x2x1xf32> to vector<2x1xf32>
    %cst_68 = arith.constant 5.000000e-01 : f32
    %111 = vector.broadcast %cst_68 : f32 to vector<2x1xf32>
    %112 = arith.cmpf ogt, %110, %111 : vector<2x1xf32>
    %c0_69 = arith.constant 0 : index
    %c0_70 = arith.constant 0 : index
    %c0_71 = arith.constant 0 : index
    %113 = vector.load %arg3[%c0_69, %c0_70, %c0_71] : memref<8x2x1xf32, #tpu.memory_space<vmem>>, vector<1x2x1xf32>
    %114 = vector.shape_cast %113 : vector<1x2x1xf32> to vector<2x1xf32>
    %115 = vector.shape_cast %112 : vector<2x1xi1> to vector<2x1xi1>
    %116 = vector.broadcast %115 : vector<2x1xi1> to vector<2x32xi1>
    %117 = vector.shape_cast %114 : vector<2x1xf32> to vector<2x1xf32>
    %118 = vector.broadcast %117 : vector<2x1xf32> to vector<2x32xf32>
    %119 = arith.select %116, %108, %118 : vector<2x32xi1>, vector<2x32xf32>
    %c0_72 = arith.constant 0 : index
    %c0_73 = arith.constant 0 : index
    %c0_74 = arith.constant 0 : index
    %120 = vector.load %arg25[%c0_72, %c0_73, %c0_74] : memref<2x8x32xf32, #tpu.memory_space<vmem>>, vector<2x1x32xf32>
    %121 = vector.shape_cast %120 : vector<2x1x32xf32> to vector<2x32xf32>
    %122 = vector.shape_cast %119 : vector<2x32xf32> to vector<2x1x32xf32>
    tpu.vector_store %arg25[%c0_72, %c0_73, %c0_74], %122 {strides = array<i32>} : memref<2x8x32xf32, #tpu.memory_space<vmem>>, vector<2x1x32xf32>,
    %123 = arith.truncf %66 : vector<2x32xf32> to vector<2x32xbf16>
    %124 = vector.extract_strided_slice %15 {offsets = [1, 0, 0], sizes = [1, 2, 32], strides = [1, 1, 1]} : vector<8x2x32xf32> to vector<1x2x32xf32>
    %125 = vector.shape_cast %124 : vector<1x2x32xf32> to vector<2x32xf32>
    %126 = vector.extract_strided_slice %18 {offsets = [1, 0, 0], sizes = [1, 2, 32], strides = [1, 1, 1]} : vector<8x2x32xf32> to vector<1x2x32xf32>
    %127 = vector.shape_cast %126 : vector<1x2x32xf32> to vector<2x32xf32>
    %128 = vector.extract_strided_slice %21 {offsets = [1, 0, 0], sizes = [1, 2, 32], strides = [1, 1, 1]} : vector<8x2x32xf32> to vector<1x2x32xf32>
    %129 = vector.shape_cast %128 : vector<1x2x32xf32> to vector<2x32xf32>
    %c0_75 = arith.constant 0 : index
    %c0_76 = arith.constant 0 : index
    %130 = vector.load %arg8[%c0_75, %c0_76] : memref<32x32xbf16, #tpu.memory_space<vmem>>, vector<32x32xbf16>
    %cst_77 = arith.constant dense<0.000000e+00> : vector<2x32xf32>
    %131 = tpu.matmul %123, %130, %cst_77 {dimension_numbers = #tpu.dot_dimension_numbers<[1], [0], [0], [1], [0, 0, 1, 1], [], []>} : vector<2x32xbf16>, vector<32x32xbf16>, vector<2x32xf32> -> vector<2x32xf32>
    %132 = arith.addf %125, %131 : vector<2x32xf32>
    %133 = vector.broadcast %3 : vector<1x32xf32> to vector<2x32xf32>
    %134 = arith.addf %132, %133 : vector<2x32xf32>
    %135 = arith.negf %134 : vector<2x32xf32>
    %136 = math.exp %135 : vector<2x32xf32>
    %cst_78 = arith.constant 1.000000e+00 : f32
    %137 = vector.broadcast %cst_78 : f32 to vector<2x32xf32>
    %138 = arith.addf %137, %136 : vector<2x32xf32>
    %139 = arith.divf %137, %138 : vector<2x32xf32>
    %c0_79 = arith.constant 0 : index
    %c0_80 = arith.constant 0 : index
    %140 = vector.load %arg9[%c0_79, %c0_80] : memref<32x32xbf16, #tpu.memory_space<vmem>>, vector<32x32xbf16>
    %cst_81 = arith.constant dense<0.000000e+00> : vector<2x32xf32>
    %141 = tpu.matmul %123, %140, %cst_81 {dimension_numbers = #tpu.dot_dimension_numbers<[1], [0], [0], [1], [0, 0, 1, 1], [], []>} : vector<2x32xbf16>, vector<32x32xbf16>, vector<2x32xf32> -> vector<2x32xf32>
    %142 = arith.addf %127, %141 : vector<2x32xf32>
    %143 = vector.broadcast %4 : vector<1x32xf32> to vector<2x32xf32>
    %144 = arith.addf %142, %143 : vector<2x32xf32>
    %145 = arith.negf %144 : vector<2x32xf32>
    %146 = math.exp %145 : vector<2x32xf32>
    %cst_82 = arith.constant 1.000000e+00 : f32
    %147 = vector.broadcast %cst_82 : f32 to vector<2x32xf32>
    %148 = arith.addf %147, %146 : vector<2x32xf32>
    %149 = arith.divf %147, %148 : vector<2x32xf32>
    %150 = vector.broadcast %5 : vector<1x32xf32> to vector<2x32xf32>
    %151 = arith.addf %129, %150 : vector<2x32xf32>
    %c0_83 = arith.constant 0 : index
    %c0_84 = arith.constant 0 : index
    %152 = vector.load %arg10[%c0_83, %c0_84] : memref<32x32xbf16, #tpu.memory_space<vmem>>, vector<32x32xbf16>
    %cst_85 = arith.constant dense<0.000000e+00> : vector<2x32xf32>
    %153 = tpu.matmul %123, %152, %cst_85 {dimension_numbers = #tpu.dot_dimension_numbers<[1], [0], [0], [1], [0, 0, 1, 1], [], []>} : vector<2x32xbf16>, vector<32x32xbf16>, vector<2x32xf32> -> vector<2x32xf32>
    %154 = vector.broadcast %6 : vector<1x32xf32> to vector<2x32xf32>
    %155 = arith.addf %153, %154 : vector<2x32xf32>
    %156 = arith.mulf %139, %155 : vector<2x32xf32>
    %157 = arith.addf %151, %156 : vector<2x32xf32>
    %158 = math.tanh %157 : vector<2x32xf32>
    %cst_86 = arith.constant 1.000000e+00 : f32
    %159 = vector.broadcast %cst_86 : f32 to vector<2x32xf32>
    %160 = arith.subf %159, %149 : vector<2x32xf32>
    %161 = arith.mulf %160, %158 : vector<2x32xf32>
    %162 = arith.mulf %149, %66 : vector<2x32xf32>
    %163 = arith.addf %161, %162 : vector<2x32xf32>
    %164 = arith.truncf %163 : vector<2x32xf32> to vector<2x32xbf16>
    %165 = arith.truncf %108 : vector<2x32xf32> to vector<2x32xbf16>
    %c0_87 = arith.constant 0 : index
    %c0_88 = arith.constant 0 : index
    %166 = vector.load %arg15[%c0_87, %c0_88] : memref<32x32xbf16, #tpu.memory_space<vmem>>, vector<32x32xbf16>
    %cst_89 = arith.constant dense<0.000000e+00> : vector<2x32xf32>
    %167 = tpu.matmul %164, %166, %cst_89 {dimension_numbers = #tpu.dot_dimension_numbers<[1], [0], [0], [1], [0, 0, 1, 1], [], []>} : vector<2x32xbf16>, vector<32x32xbf16>, vector<2x32xf32> -> vector<2x32xf32>
    %c0_90 = arith.constant 0 : index
    %c0_91 = arith.constant 0 : index
    %168 = vector.load %arg16[%c0_90, %c0_91] : memref<32x32xbf16, #tpu.memory_space<vmem>>, vector<32x32xbf16>
    %cst_92 = arith.constant dense<0.000000e+00> : vector<2x32xf32>
    %169 = tpu.matmul %164, %168, %cst_92 {dimension_numbers = #tpu.dot_dimension_numbers<[1], [0], [0], [1], [0, 0, 1, 1], [], []>} : vector<2x32xbf16>, vector<32x32xbf16>, vector<2x32xf32> -> vector<2x32xf32>
    %c0_93 = arith.constant 0 : index
    %c0_94 = arith.constant 0 : index
    %170 = vector.load %arg17[%c0_93, %c0_94] : memref<32x32xbf16, #tpu.memory_space<vmem>>, vector<32x32xbf16>
    %cst_95 = arith.constant dense<0.000000e+00> : vector<2x32xf32>
    %171 = tpu.matmul %164, %170, %cst_95 {dimension_numbers = #tpu.dot_dimension_numbers<[1], [0], [0], [1], [0, 0, 1, 1], [], []>} : vector<2x32xbf16>, vector<32x32xbf16>, vector<2x32xf32> -> vector<2x32xf32>
    %c0_96 = arith.constant 0 : index
    %c0_97 = arith.constant 0 : index
    %172 = vector.load %arg18[%c0_96, %c0_97] : memref<32x32xbf16, #tpu.memory_space<vmem>>, vector<32x32xbf16>
    %cst_98 = arith.constant dense<0.000000e+00> : vector<2x32xf32>
    %173 = tpu.matmul %165, %172, %cst_98 {dimension_numbers = #tpu.dot_dimension_numbers<[1], [0], [0], [1], [0, 0, 1, 1], [], []>} : vector<2x32xbf16>, vector<32x32xbf16>, vector<2x32xf32> -> vector<2x32xf32>
    %174 = arith.addf %167, %173 : vector<2x32xf32>
    %175 = vector.broadcast %7 : vector<1x32xf32> to vector<2x32xf32>
    %176 = arith.addf %174, %175 : vector<2x32xf32>
    %177 = arith.negf %176 : vector<2x32xf32>
    %178 = math.exp %177 : vector<2x32xf32>
    %cst_99 = arith.constant 1.000000e+00 : f32
    %179 = vector.broadcast %cst_99 : f32 to vector<2x32xf32>
    %180 = arith.addf %179, %178 : vector<2x32xf32>
    %181 = arith.divf %179, %180 : vector<2x32xf32>
    %c0_100 = arith.constant 0 : index
    %c0_101 = arith.constant 0 : index
    %182 = vector.load %arg19[%c0_100, %c0_101] : memref<32x32xbf16, #tpu.memory_space<vmem>>, vector<32x32xbf16>
    %cst_102 = arith.constant dense<0.000000e+00> : vector<2x32xf32>
    %183 = tpu.matmul %165, %182, %cst_102 {dimension_numbers = #tpu.dot_dimension_numbers<[1], [0], [0], [1], [0, 0, 1, 1], [], []>} : vector<2x32xbf16>, vector<32x32xbf16>, vector<2x32xf32> -> vector<2x32xf32>
    %184 = arith.addf %169, %183 : vector<2x32xf32>
    %185 = vector.broadcast %8 : vector<1x32xf32> to vector<2x32xf32>
    %186 = arith.addf %184, %185 : vector<2x32xf32>
    %187 = arith.negf %186 : vector<2x32xf32>
    %188 = math.exp %187 : vector<2x32xf32>
    %cst_103 = arith.constant 1.000000e+00 : f32
    %189 = vector.broadcast %cst_103 : f32 to vector<2x32xf32>
    %190 = arith.addf %189, %188 : vector<2x32xf32>
    %191 = arith.divf %189, %190 : vector<2x32xf32>
    %192 = vector.broadcast %9 : vector<1x32xf32> to vector<2x32xf32>
    %193 = arith.addf %171, %192 : vector<2x32xf32>
    %c0_104 = arith.constant 0 : index
    %c0_105 = arith.constant 0 : index
    %194 = vector.load %arg20[%c0_104, %c0_105] : memref<32x32xbf16, #tpu.memory_space<vmem>>, vector<32x32xbf16>
    %cst_106 = arith.constant dense<0.000000e+00> : vector<2x32xf32>
    %195 = tpu.matmul %165, %194, %cst_106 {dimension_numbers = #tpu.dot_dimension_numbers<[1], [0], [0], [1], [0, 0, 1, 1], [], []>} : vector<2x32xbf16>, vector<32x32xbf16>, vector<2x32xf32> -> vector<2x32xf32>
    %196 = vector.broadcast %10 : vector<1x32xf32> to vector<2x32xf32>
    %197 = arith.addf %195, %196 : vector<2x32xf32>
    %198 = arith.mulf %181, %197 : vector<2x32xf32>
    %199 = arith.addf %193, %198 : vector<2x32xf32>
    %200 = math.tanh %199 : vector<2x32xf32>
    %cst_107 = arith.constant 1.000000e+00 : f32
    %201 = vector.broadcast %cst_107 : f32 to vector<2x32xf32>
    %202 = arith.subf %201, %191 : vector<2x32xf32>
    %203 = arith.mulf %202, %200 : vector<2x32xf32>
    %204 = arith.mulf %191, %108 : vector<2x32xf32>
    %205 = arith.addf %203, %204 : vector<2x32xf32>
    %c1_108 = arith.constant 1 : index
    %c0_109 = arith.constant 0 : index
    %c0_110 = arith.constant 0 : index
    %206 = vector.load %arg2[%c1_108, %c0_109, %c0_110] : memref<8x2x1xf32, #tpu.memory_space<vmem>>, vector<1x2x1xf32>
    %207 = vector.shape_cast %206 : vector<1x2x1xf32> to vector<2x1xf32>
    %cst_111 = arith.constant 5.000000e-01 : f32
    %208 = vector.broadcast %cst_111 : f32 to vector<2x1xf32>
    %209 = arith.cmpf ogt, %207, %208 : vector<2x1xf32>
    %c1_112 = arith.constant 1 : index
    %c0_113 = arith.constant 0 : index
    %c0_114 = arith.constant 0 : index
    %210 = vector.load %arg3[%c1_112, %c0_113, %c0_114] : memref<8x2x1xf32, #tpu.memory_space<vmem>>, vector<1x2x1xf32>
    %211 = vector.shape_cast %210 : vector<1x2x1xf32> to vector<2x1xf32>
    %212 = vector.shape_cast %209 : vector<2x1xi1> to vector<2x1xi1>
    %213 = vector.broadcast %212 : vector<2x1xi1> to vector<2x32xi1>
    %214 = vector.shape_cast %211 : vector<2x1xf32> to vector<2x1xf32>
    %215 = vector.broadcast %214 : vector<2x1xf32> to vector<2x32xf32>
    %216 = arith.select %213, %205, %215 : vector<2x32xi1>, vector<2x32xf32>
    %c0_115 = arith.constant 0 : index
    %c1_116 = arith.constant 1 : index
    %c0_117 = arith.constant 0 : index
    %217 = vector.load %arg25[%c0_115, %c1_116, %c0_117] : memref<2x8x32xf32, #tpu.memory_space<vmem>>, vector<2x1x32xf32>
    %218 = vector.shape_cast %217 : vector<2x1x32xf32> to vector<2x32xf32>
    %219 = vector.shape_cast %216 : vector<2x32xf32> to vector<2x1x32xf32>
    tpu.vector_store %arg25[%c0_115, %c1_116, %c0_117], %219 {strides = array<i32>} : memref<2x8x32xf32, #tpu.memory_space<vmem>>, vector<2x1x32xf32>,
    %220 = arith.truncf %163 : vector<2x32xf32> to vector<2x32xbf16>
    %221 = vector.extract_strided_slice %15 {offsets = [2, 0, 0], sizes = [1, 2, 32], strides = [1, 1, 1]} : vector<8x2x32xf32> to vector<1x2x32xf32>
    %222 = vector.shape_cast %221 : vector<1x2x32xf32> to vector<2x32xf32>
    %223 = vector.extract_strided_slice %18 {offsets = [2, 0, 0], sizes = [1, 2, 32], strides = [1, 1, 1]} : vector<8x2x32xf32> to vector<1x2x32xf32>
    %224 = vector.shape_cast %223 : vector<1x2x32xf32> to vector<2x32xf32>
    %225 = vector.extract_strided_slice %21 {offsets = [2, 0, 0], sizes = [1, 2, 32], strides = [1, 1, 1]} : vector<8x2x32xf32> to vector<1x2x32xf32>
    %226 = vector.shape_cast %225 : vector<1x2x32xf32> to vector<2x32xf32>
    %c0_118 = arith.constant 0 : index
    %c0_119 = arith.constant 0 : index
    %227 = vector.load %arg8[%c0_118, %c0_119] : memref<32x32xbf16, #tpu.memory_space<vmem>>, vector<32x32xbf16>
    %cst_120 = arith.constant dense<0.000000e+00> : vector<2x32xf32>
    %228 = tpu.matmul %220, %227, %cst_120 {dimension_numbers = #tpu.dot_dimension_numbers<[1], [0], [0], [1], [0, 0, 1, 1], [], []>} : vector<2x32xbf16>, vector<32x32xbf16>, vector<2x32xf32> -> vector<2x32xf32>
    %229 = arith.addf %222, %228 : vector<2x32xf32>
    %230 = vector.broadcast %3 : vector<1x32xf32> to vector<2x32xf32>
    %231 = arith.addf %229, %230 : vector<2x32xf32>
    %232 = arith.negf %231 : vector<2x32xf32>
    %233 = math.exp %232 : vector<2x32xf32>
    %cst_121 = arith.constant 1.000000e+00 : f32
    %234 = vector.broadcast %cst_121 : f32 to vector<2x32xf32>
    %235 = arith.addf %234, %233 : vector<2x32xf32>
    %236 = arith.divf %234, %235 : vector<2x32xf32>
    %c0_122 = arith.constant 0 : index
    %c0_123 = arith.constant 0 : index
    %237 = vector.load %arg9[%c0_122, %c0_123] : memref<32x32xbf16, #tpu.memory_space<vmem>>, vector<32x32xbf16>
    %cst_124 = arith.constant dense<0.000000e+00> : vector<2x32xf32>
    %238 = tpu.matmul %220, %237, %cst_124 {dimension_numbers = #tpu.dot_dimension_numbers<[1], [0], [0], [1], [0, 0, 1, 1], [], []>} : vector<2x32xbf16>, vector<32x32xbf16>, vector<2x32xf32> -> vector<2x32xf32>
    %239 = arith.addf %224, %238 : vector<2x32xf32>
    %240 = vector.broadcast %4 : vector<1x32xf32> to vector<2x32xf32>
    %241 = arith.addf %239, %240 : vector<2x32xf32>
    %242 = arith.negf %241 : vector<2x32xf32>
    %243 = math.exp %242 : vector<2x32xf32>
    %cst_125 = arith.constant 1.000000e+00 : f32
    %244 = vector.broadcast %cst_125 : f32 to vector<2x32xf32>
    %245 = arith.addf %244, %243 : vector<2x32xf32>
    %246 = arith.divf %244, %245 : vector<2x32xf32>
    %247 = vector.broadcast %5 : vector<1x32xf32> to vector<2x32xf32>
    %248 = arith.addf %226, %247 : vector<2x32xf32>
    %c0_126 = arith.constant 0 : index
    %c0_127 = arith.constant 0 : index
    %249 = vector.load %arg10[%c0_126, %c0_127] : memref<32x32xbf16, #tpu.memory_space<vmem>>, vector<32x32xbf16>
    %cst_128 = arith.constant dense<0.000000e+00> : vector<2x32xf32>
    %250 = tpu.matmul %220, %249, %cst_128 {dimension_numbers = #tpu.dot_dimension_numbers<[1], [0], [0], [1], [0, 0, 1, 1], [], []>} : vector<2x32xbf16>, vector<32x32xbf16>, vector<2x32xf32> -> vector<2x32xf32>
    %251 = vector.broadcast %6 : vector<1x32xf32> to vector<2x32xf32>
    %252 = arith.addf %250, %251 : vector<2x32xf32>
    %253 = arith.mulf %236, %252 : vector<2x32xf32>
    %254 = arith.addf %248, %253 : vector<2x32xf32>
    %255 = math.tanh %254 : vector<2x32xf32>
    %cst_129 = arith.constant 1.000000e+00 : f32
    %256 = vector.broadcast %cst_129 : f32 to vector<2x32xf32>
    %257 = arith.subf %256, %246 : vector<2x32xf32>
    %258 = arith.mulf %257, %255 : vector<2x32xf32>
    %259 = arith.mulf %246, %163 : vector<2x32xf32>
    %260 = arith.addf %258, %259 : vector<2x32xf32>
    %261 = arith.truncf %260 : vector<2x32xf32> to vector<2x32xbf16>
    %262 = arith.truncf %205 : vector<2x32xf32> to vector<2x32xbf16>
    %c0_130 = arith.constant 0 : index
    %c0_131 = arith.constant 0 : index
    %263 = vector.load %arg15[%c0_130, %c0_131] : memref<32x32xbf16, #tpu.memory_space<vmem>>, vector<32x32xbf16>
    %cst_132 = arith.constant dense<0.000000e+00> : vector<2x32xf32>
    %264 = tpu.matmul %261, %263, %cst_132 {dimension_numbers = #tpu.dot_dimension_numbers<[1], [0], [0], [1], [0, 0, 1, 1], [], []>} : vector<2x32xbf16>, vector<32x32xbf16>, vector<2x32xf32> -> vector<2x32xf32>
    %c0_133 = arith.constant 0 : index
    %c0_134 = arith.constant 0 : index
    %265 = vector.load %arg16[%c0_133, %c0_134] : memref<32x32xbf16, #tpu.memory_space<vmem>>, vector<32x32xbf16>
    %cst_135 = arith.constant dense<0.000000e+00> : vector<2x32xf32>
    %266 = tpu.matmul %261, %265, %cst_135 {dimension_numbers = #tpu.dot_dimension_numbers<[1], [0], [0], [1], [0, 0, 1, 1], [], []>} : vector<2x32xbf16>, vector<32x32xbf16>, vector<2x32xf32> -> vector<2x32xf32>
    %c0_136 = arith.constant 0 : index
    %c0_137 = arith.constant 0 : index
    %267 = vector.load %arg17[%c0_136, %c0_137] : memref<32x32xbf16, #tpu.memory_space<vmem>>, vector<32x32xbf16>
    %cst_138 = arith.constant dense<0.000000e+00> : vector<2x32xf32>
    %268 = tpu.matmul %261, %267, %cst_138 {dimension_numbers = #tpu.dot_dimension_numbers<[1], [0], [0], [1], [0, 0, 1, 1], [], []>} : vector<2x32xbf16>, vector<32x32xbf16>, vector<2x32xf32> -> vector<2x32xf32>
    %c0_139 = arith.constant 0 : index
    %c0_140 = arith.constant 0 : index
    %269 = vector.load %arg18[%c0_139, %c0_140] : memref<32x32xbf16, #tpu.memory_space<vmem>>, vector<32x32xbf16>
    %cst_141 = arith.constant dense<0.000000e+00> : vector<2x32xf32>
    %270 = tpu.matmul %262, %269, %cst_141 {dimension_numbers = #tpu.dot_dimension_numbers<[1], [0], [0], [1], [0, 0, 1, 1], [], []>} : vector<2x32xbf16>, vector<32x32xbf16>, vector<2x32xf32> -> vector<2x32xf32>
    %271 = arith.addf %264, %270 : vector<2x32xf32>
    %272 = vector.broadcast %7 : vector<1x32xf32> to vector<2x32xf32>
    %273 = arith.addf %271, %272 : vector<2x32xf32>
    %274 = arith.negf %273 : vector<2x32xf32>
    %275 = math.exp %274 : vector<2x32xf32>
    %cst_142 = arith.constant 1.000000e+00 : f32
    %276 = vector.broadcast %cst_142 : f32 to vector<2x32xf32>
    %277 = arith.addf %276, %275 : vector<2x32xf32>
    %278 = arith.divf %276, %277 : vector<2x32xf32>
    %c0_143 = arith.constant 0 : index
    %c0_144 = arith.constant 0 : index
    %279 = vector.load %arg19[%c0_143, %c0_144] : memref<32x32xbf16, #tpu.memory_space<vmem>>, vector<32x32xbf16>
    %cst_145 = arith.constant dense<0.000000e+00> : vector<2x32xf32>
    %280 = tpu.matmul %262, %279, %cst_145 {dimension_numbers = #tpu.dot_dimension_numbers<[1], [0], [0], [1], [0, 0, 1, 1], [], []>} : vector<2x32xbf16>, vector<32x32xbf16>, vector<2x32xf32> -> vector<2x32xf32>
    %281 = arith.addf %266, %280 : vector<2x32xf32>
    %282 = vector.broadcast %8 : vector<1x32xf32> to vector<2x32xf32>
    %283 = arith.addf %281, %282 : vector<2x32xf32>
    %284 = arith.negf %283 : vector<2x32xf32>
    %285 = math.exp %284 : vector<2x32xf32>
    %cst_146 = arith.constant 1.000000e+00 : f32
    %286 = vector.broadcast %cst_146 : f32 to vector<2x32xf32>
    %287 = arith.addf %286, %285 : vector<2x32xf32>
    %288 = arith.divf %286, %287 : vector<2x32xf32>
    %289 = vector.broadcast %9 : vector<1x32xf32> to vector<2x32xf32>
    %290 = arith.addf %268, %289 : vector<2x32xf32>
    %c0_147 = arith.constant 0 : index
    %c0_148 = arith.constant 0 : index
    %291 = vector.load %arg20[%c0_147, %c0_148] : memref<32x32xbf16, #tpu.memory_space<vmem>>, vector<32x32xbf16>
    %cst_149 = arith.constant dense<0.000000e+00> : vector<2x32xf32>
    %292 = tpu.matmul %262, %291, %cst_149 {dimension_numbers = #tpu.dot_dimension_numbers<[1], [0], [0], [1], [0, 0, 1, 1], [], []>} : vector<2x32xbf16>, vector<32x32xbf16>, vector<2x32xf32> -> vector<2x32xf32>
    %293 = vector.broadcast %10 : vector<1x32xf32> to vector<2x32xf32>
    %294 = arith.addf %292, %293 : vector<2x32xf32>
    %295 = arith.mulf %278, %294 : vector<2x32xf32>
    %296 = arith.addf %290, %295 : vector<2x32xf32>
    %297 = math.tanh %296 : vector<2x32xf32>
    %cst_150 = arith.constant 1.000000e+00 : f32
    %298 = vector.broadcast %cst_150 : f32 to vector<2x32xf32>
    %299 = arith.subf %298, %288 : vector<2x32xf32>
    %300 = arith.mulf %299, %297 : vector<2x32xf32>
    %301 = arith.mulf %288, %205 : vector<2x32xf32>
    %302 = arith.addf %300, %301 : vector<2x32xf32>
    %c2 = arith.constant 2 : index
    %c0_151 = arith.constant 0 : index
    %c0_152 = arith.constant 0 : index
    %303 = vector.load %arg2[%c2, %c0_151, %c0_152] : memref<8x2x1xf32, #tpu.memory_space<vmem>>, vector<1x2x1xf32>
    %304 = vector.shape_cast %303 : vector<1x2x1xf32> to vector<2x1xf32>
    %cst_153 = arith.constant 5.000000e-01 : f32
    %305 = vector.broadcast %cst_153 : f32 to vector<2x1xf32>
    %306 = arith.cmpf ogt, %304, %305 : vector<2x1xf32>
    %c2_154 = arith.constant 2 : index
    %c0_155 = arith.constant 0 : index
    %c0_156 = arith.constant 0 : index
    %307 = vector.load %arg3[%c2_154, %c0_155, %c0_156] : memref<8x2x1xf32, #tpu.memory_space<vmem>>, vector<1x2x1xf32>
    %308 = vector.shape_cast %307 : vector<1x2x1xf32> to vector<2x1xf32>
    %309 = vector.shape_cast %306 : vector<2x1xi1> to vector<2x1xi1>
    %310 = vector.broadcast %309 : vector<2x1xi1> to vector<2x32xi1>
    %311 = vector.shape_cast %308 : vector<2x1xf32> to vector<2x1xf32>
    %312 = vector.broadcast %311 : vector<2x1xf32> to vector<2x32xf32>
    %313 = arith.select %310, %302, %312 : vector<2x32xi1>, vector<2x32xf32>
    %c0_157 = arith.constant 0 : index
    %c2_158 = arith.constant 2 : index
    %c0_159 = arith.constant 0 : index
    %314 = vector.load %arg25[%c0_157, %c2_158, %c0_159] : memref<2x8x32xf32, #tpu.memory_space<vmem>>, vector<2x1x32xf32>
    %315 = vector.shape_cast %314 : vector<2x1x32xf32> to vector<2x32xf32>
    %316 = vector.shape_cast %313 : vector<2x32xf32> to vector<2x1x32xf32>
    tpu.vector_store %arg25[%c0_157, %c2_158, %c0_159], %316 {strides = array<i32>} : memref<2x8x32xf32, #tpu.memory_space<vmem>>, vector<2x1x32xf32>,
    %317 = arith.truncf %260 : vector<2x32xf32> to vector<2x32xbf16>
    %318 = vector.extract_strided_slice %15 {offsets = [3, 0, 0], sizes = [1, 2, 32], strides = [1, 1, 1]} : vector<8x2x32xf32> to vector<1x2x32xf32>
    %319 = vector.shape_cast %318 : vector<1x2x32xf32> to vector<2x32xf32>
    %320 = vector.extract_strided_slice %18 {offsets = [3, 0, 0], sizes = [1, 2, 32], strides = [1, 1, 1]} : vector<8x2x32xf32> to vector<1x2x32xf32>
    %321 = vector.shape_cast %320 : vector<1x2x32xf32> to vector<2x32xf32>
    %322 = vector.extract_strided_slice %21 {offsets = [3, 0, 0], sizes = [1, 2, 32], strides = [1, 1, 1]} : vector<8x2x32xf32> to vector<1x2x32xf32>
    %323 = vector.shape_cast %322 : vector<1x2x32xf32> to vector<2x32xf32>
    %c0_160 = arith.constant 0 : index
    %c0_161 = arith.constant 0 : index
    %324 = vector.load %arg8[%c0_160, %c0_161] : memref<32x32xbf16, #tpu.memory_space<vmem>>, vector<32x32xbf16>
    %cst_162 = arith.constant dense<0.000000e+00> : vector<2x32xf32>
    %325 = tpu.matmul %317, %324, %cst_162 {dimension_numbers = #tpu.dot_dimension_numbers<[1], [0], [0], [1], [0, 0, 1, 1], [], []>} : vector<2x32xbf16>, vector<32x32xbf16>, vector<2x32xf32> -> vector<2x32xf32>
    %326 = arith.addf %319, %325 : vector<2x32xf32>
    %327 = vector.broadcast %3 : vector<1x32xf32> to vector<2x32xf32>
    %328 = arith.addf %326, %327 : vector<2x32xf32>
    %329 = arith.negf %328 : vector<2x32xf32>
    %330 = math.exp %329 : vector<2x32xf32>
    %cst_163 = arith.constant 1.000000e+00 : f32
    %331 = vector.broadcast %cst_163 : f32 to vector<2x32xf32>
    %332 = arith.addf %331, %330 : vector<2x32xf32>
    %333 = arith.divf %331, %332 : vector<2x32xf32>
    %c0_164 = arith.constant 0 : index
    %c0_165 = arith.constant 0 : index
    %334 = vector.load %arg9[%c0_164, %c0_165] : memref<32x32xbf16, #tpu.memory_space<vmem>>, vector<32x32xbf16>
    %cst_166 = arith.constant dense<0.000000e+00> : vector<2x32xf32>
    %335 = tpu.matmul %317, %334, %cst_166 {dimension_numbers = #tpu.dot_dimension_numbers<[1], [0], [0], [1], [0, 0, 1, 1], [], []>} : vector<2x32xbf16>, vector<32x32xbf16>, vector<2x32xf32> -> vector<2x32xf32>
    %336 = arith.addf %321, %335 : vector<2x32xf32>
    %337 = vector.broadcast %4 : vector<1x32xf32> to vector<2x32xf32>
    %338 = arith.addf %336, %337 : vector<2x32xf32>
    %339 = arith.negf %338 : vector<2x32xf32>
    %340 = math.exp %339 : vector<2x32xf32>
    %cst_167 = arith.constant 1.000000e+00 : f32
    %341 = vector.broadcast %cst_167 : f32 to vector<2x32xf32>
    %342 = arith.addf %341, %340 : vector<2x32xf32>
    %343 = arith.divf %341, %342 : vector<2x32xf32>
    %344 = vector.broadcast %5 : vector<1x32xf32> to vector<2x32xf32>
    %345 = arith.addf %323, %344 : vector<2x32xf32>
    %c0_168 = arith.constant 0 : index
    %c0_169 = arith.constant 0 : index
    %346 = vector.load %arg10[%c0_168, %c0_169] : memref<32x32xbf16, #tpu.memory_space<vmem>>, vector<32x32xbf16>
    %cst_170 = arith.constant dense<0.000000e+00> : vector<2x32xf32>
    %347 = tpu.matmul %317, %346, %cst_170 {dimension_numbers = #tpu.dot_dimension_numbers<[1], [0], [0], [1], [0, 0, 1, 1], [], []>} : vector<2x32xbf16>, vector<32x32xbf16>, vector<2x32xf32> -> vector<2x32xf32>
    %348 = vector.broadcast %6 : vector<1x32xf32> to vector<2x32xf32>
    %349 = arith.addf %347, %348 : vector<2x32xf32>
    %350 = arith.mulf %333, %349 : vector<2x32xf32>
    %351 = arith.addf %345, %350 : vector<2x32xf32>
    %352 = math.tanh %351 : vector<2x32xf32>
    %cst_171 = arith.constant 1.000000e+00 : f32
    %353 = vector.broadcast %cst_171 : f32 to vector<2x32xf32>
    %354 = arith.subf %353, %343 : vector<2x32xf32>
    %355 = arith.mulf %354, %352 : vector<2x32xf32>
    %356 = arith.mulf %343, %260 : vector<2x32xf32>
    %357 = arith.addf %355, %356 : vector<2x32xf32>
    %358 = arith.truncf %357 : vector<2x32xf32> to vector<2x32xbf16>
    %359 = arith.truncf %302 : vector<2x32xf32> to vector<2x32xbf16>
    %c0_172 = arith.constant 0 : index
    %c0_173 = arith.constant 0 : index
    %360 = vector.load %arg15[%c0_172, %c0_173] : memref<32x32xbf16, #tpu.memory_space<vmem>>, vector<32x32xbf16>
    %cst_174 = arith.constant dense<0.000000e+00> : vector<2x32xf32>
    %361 = tpu.matmul %358, %360, %cst_174 {dimension_numbers = #tpu.dot_dimension_numbers<[1], [0], [0], [1], [0, 0, 1, 1], [], []>} : vector<2x32xbf16>, vector<32x32xbf16>, vector<2x32xf32> -> vector<2x32xf32>
    %c0_175 = arith.constant 0 : index
    %c0_176 = arith.constant 0 : index
    %362 = vector.load %arg16[%c0_175, %c0_176] : memref<32x32xbf16, #tpu.memory_space<vmem>>, vector<32x32xbf16>
    %cst_177 = arith.constant dense<0.000000e+00> : vector<2x32xf32>
    %363 = tpu.matmul %358, %362, %cst_177 {dimension_numbers = #tpu.dot_dimension_numbers<[1], [0], [0], [1], [0, 0, 1, 1], [], []>} : vector<2x32xbf16>, vector<32x32xbf16>, vector<2x32xf32> -> vector<2x32xf32>
    %c0_178 = arith.constant 0 : index
    %c0_179 = arith.constant 0 : index
    %364 = vector.load %arg17[%c0_178, %c0_179] : memref<32x32xbf16, #tpu.memory_space<vmem>>, vector<32x32xbf16>
    %cst_180 = arith.constant dense<0.000000e+00> : vector<2x32xf32>
    %365 = tpu.matmul %358, %364, %cst_180 {dimension_numbers = #tpu.dot_dimension_numbers<[1], [0], [0], [1], [0, 0, 1, 1], [], []>} : vector<2x32xbf16>, vector<32x32xbf16>, vector<2x32xf32> -> vector<2x32xf32>
    %c0_181 = arith.constant 0 : index
    %c0_182 = arith.constant 0 : index
    %366 = vector.load %arg18[%c0_181, %c0_182] : memref<32x32xbf16, #tpu.memory_space<vmem>>, vector<32x32xbf16>
    %cst_183 = arith.constant dense<0.000000e+00> : vector<2x32xf32>
    %367 = tpu.matmul %359, %366, %cst_183 {dimension_numbers = #tpu.dot_dimension_numbers<[1], [0], [0], [1], [0, 0, 1, 1], [], []>} : vector<2x32xbf16>, vector<32x32xbf16>, vector<2x32xf32> -> vector<2x32xf32>
    %368 = arith.addf %361, %367 : vector<2x32xf32>
    %369 = vector.broadcast %7 : vector<1x32xf32> to vector<2x32xf32>
    %370 = arith.addf %368, %369 : vector<2x32xf32>
    %371 = arith.negf %370 : vector<2x32xf32>
    %372 = math.exp %371 : vector<2x32xf32>
    %cst_184 = arith.constant 1.000000e+00 : f32
    %373 = vector.broadcast %cst_184 : f32 to vector<2x32xf32>
    %374 = arith.addf %373, %372 : vector<2x32xf32>
    %375 = arith.divf %373, %374 : vector<2x32xf32>
    %c0_185 = arith.constant 0 : index
    %c0_186 = arith.constant 0 : index
    %376 = vector.load %arg19[%c0_185, %c0_186] : memref<32x32xbf16, #tpu.memory_space<vmem>>, vector<32x32xbf16>
    %cst_187 = arith.constant dense<0.000000e+00> : vector<2x32xf32>
    %377 = tpu.matmul %359, %376, %cst_187 {dimension_numbers = #tpu.dot_dimension_numbers<[1], [0], [0], [1], [0, 0, 1, 1], [], []>} : vector<2x32xbf16>, vector<32x32xbf16>, vector<2x32xf32> -> vector<2x32xf32>
    %378 = arith.addf %363, %377 : vector<2x32xf32>
    %379 = vector.broadcast %8 : vector<1x32xf32> to vector<2x32xf32>
    %380 = arith.addf %378, %379 : vector<2x32xf32>
    %381 = arith.negf %380 : vector<2x32xf32>
    %382 = math.exp %381 : vector<2x32xf32>
    %cst_188 = arith.constant 1.000000e+00 : f32
    %383 = vector.broadcast %cst_188 : f32 to vector<2x32xf32>
    %384 = arith.addf %383, %382 : vector<2x32xf32>
    %385 = arith.divf %383, %384 : vector<2x32xf32>
    %386 = vector.broadcast %9 : vector<1x32xf32> to vector<2x32xf32>
    %387 = arith.addf %365, %386 : vector<2x32xf32>
    %c0_189 = arith.constant 0 : index
    %c0_190 = arith.constant 0 : index
    %388 = vector.load %arg20[%c0_189, %c0_190] : memref<32x32xbf16, #tpu.memory_space<vmem>>, vector<32x32xbf16>
    %cst_191 = arith.constant dense<0.000000e+00> : vector<2x32xf32>
    %389 = tpu.matmul %359, %388, %cst_191 {dimension_numbers = #tpu.dot_dimension_numbers<[1], [0], [0], [1], [0, 0, 1, 1], [], []>} : vector<2x32xbf16>, vector<32x32xbf16>, vector<2x32xf32> -> vector<2x32xf32>
    %390 = vector.broadcast %10 : vector<1x32xf32> to vector<2x32xf32>
    %391 = arith.addf %389, %390 : vector<2x32xf32>
    %392 = arith.mulf %375, %391 : vector<2x32xf32>
    %393 = arith.addf %387, %392 : vector<2x32xf32>
    %394 = math.tanh %393 : vector<2x32xf32>
    %cst_192 = arith.constant 1.000000e+00 : f32
    %395 = vector.broadcast %cst_192 : f32 to vector<2x32xf32>
    %396 = arith.subf %395, %385 : vector<2x32xf32>
    %397 = arith.mulf %396, %394 : vector<2x32xf32>
    %398 = arith.mulf %385, %302 : vector<2x32xf32>
    %399 = arith.addf %397, %398 : vector<2x32xf32>
    %c3 = arith.constant 3 : index
    %c0_193 = arith.constant 0 : index
    %c0_194 = arith.constant 0 : index
    %400 = vector.load %arg2[%c3, %c0_193, %c0_194] : memref<8x2x1xf32, #tpu.memory_space<vmem>>, vector<1x2x1xf32>
    %401 = vector.shape_cast %400 : vector<1x2x1xf32> to vector<2x1xf32>
    %cst_195 = arith.constant 5.000000e-01 : f32
    %402 = vector.broadcast %cst_195 : f32 to vector<2x1xf32>
    %403 = arith.cmpf ogt, %401, %402 : vector<2x1xf32>
    %c3_196 = arith.constant 3 : index
    %c0_197 = arith.constant 0 : index
    %c0_198 = arith.constant 0 : index
    %404 = vector.load %arg3[%c3_196, %c0_197, %c0_198] : memref<8x2x1xf32, #tpu.memory_space<vmem>>, vector<1x2x1xf32>
    %405 = vector.shape_cast %404 : vector<1x2x1xf32> to vector<2x1xf32>
    %406 = vector.shape_cast %403 : vector<2x1xi1> to vector<2x1xi1>
    %407 = vector.broadcast %406 : vector<2x1xi1> to vector<2x32xi1>
    %408 = vector.shape_cast %405 : vector<2x1xf32> to vector<2x1xf32>
    %409 = vector.broadcast %408 : vector<2x1xf32> to vector<2x32xf32>
    %410 = arith.select %407, %399, %409 : vector<2x32xi1>, vector<2x32xf32>
    %c0_199 = arith.constant 0 : index
    %c3_200 = arith.constant 3 : index
    %c0_201 = arith.constant 0 : index
    %411 = vector.load %arg25[%c0_199, %c3_200, %c0_201] : memref<2x8x32xf32, #tpu.memory_space<vmem>>, vector<2x1x32xf32>
    %412 = vector.shape_cast %411 : vector<2x1x32xf32> to vector<2x32xf32>
    %413 = vector.shape_cast %410 : vector<2x32xf32> to vector<2x1x32xf32>
    tpu.vector_store %arg25[%c0_199, %c3_200, %c0_201], %413 {strides = array<i32>} : memref<2x8x32xf32, #tpu.memory_space<vmem>>, vector<2x1x32xf32>,
    %414 = arith.truncf %357 : vector<2x32xf32> to vector<2x32xbf16>
    %415 = vector.extract_strided_slice %15 {offsets = [4, 0, 0], sizes = [1, 2, 32], strides = [1, 1, 1]} : vector<8x2x32xf32> to vector<1x2x32xf32>
    %416 = vector.shape_cast %415 : vector<1x2x32xf32> to vector<2x32xf32>
    %417 = vector.extract_strided_slice %18 {offsets = [4, 0, 0], sizes = [1, 2, 32], strides = [1, 1, 1]} : vector<8x2x32xf32> to vector<1x2x32xf32>
    %418 = vector.shape_cast %417 : vector<1x2x32xf32> to vector<2x32xf32>
    %419 = vector.extract_strided_slice %21 {offsets = [4, 0, 0], sizes = [1, 2, 32], strides = [1, 1, 1]} : vector<8x2x32xf32> to vector<1x2x32xf32>
    %420 = vector.shape_cast %419 : vector<1x2x32xf32> to vector<2x32xf32>
    %c0_202 = arith.constant 0 : index
    %c0_203 = arith.constant 0 : index
    %421 = vector.load %arg8[%c0_202, %c0_203] : memref<32x32xbf16, #tpu.memory_space<vmem>>, vector<32x32xbf16>
    %cst_204 = arith.constant dense<0.000000e+00> : vector<2x32xf32>
    %422 = tpu.matmul %414, %421, %cst_204 {dimension_numbers = #tpu.dot_dimension_numbers<[1], [0], [0], [1], [0, 0, 1, 1], [], []>} : vector<2x32xbf16>, vector<32x32xbf16>, vector<2x32xf32> -> vector<2x32xf32>
    %423 = arith.addf %416, %422 : vector<2x32xf32>
    %424 = vector.broadcast %3 : vector<1x32xf32> to vector<2x32xf32>
    %425 = arith.addf %423, %424 : vector<2x32xf32>
    %426 = arith.negf %425 : vector<2x32xf32>
    %427 = math.exp %426 : vector<2x32xf32>
    %cst_205 = arith.constant 1.000000e+00 : f32
    %428 = vector.broadcast %cst_205 : f32 to vector<2x32xf32>
    %429 = arith.addf %428, %427 : vector<2x32xf32>
    %430 = arith.divf %428, %429 : vector<2x32xf32>
    %c0_206 = arith.constant 0 : index
    %c0_207 = arith.constant 0 : index
    %431 = vector.load %arg9[%c0_206, %c0_207] : memref<32x32xbf16, #tpu.memory_space<vmem>>, vector<32x32xbf16>
    %cst_208 = arith.constant dense<0.000000e+00> : vector<2x32xf32>
    %432 = tpu.matmul %414, %431, %cst_208 {dimension_numbers = #tpu.dot_dimension_numbers<[1], [0], [0], [1], [0, 0, 1, 1], [], []>} : vector<2x32xbf16>, vector<32x32xbf16>, vector<2x32xf32> -> vector<2x32xf32>
    %433 = arith.addf %418, %432 : vector<2x32xf32>
    %434 = vector.broadcast %4 : vector<1x32xf32> to vector<2x32xf32>
    %435 = arith.addf %433, %434 : vector<2x32xf32>
    %436 = arith.negf %435 : vector<2x32xf32>
    %437 = math.exp %436 : vector<2x32xf32>
    %cst_209 = arith.constant 1.000000e+00 : f32
    %438 = vector.broadcast %cst_209 : f32 to vector<2x32xf32>
    %439 = arith.addf %438, %437 : vector<2x32xf32>
    %440 = arith.divf %438, %439 : vector<2x32xf32>
    %441 = vector.broadcast %5 : vector<1x32xf32> to vector<2x32xf32>
    %442 = arith.addf %420, %441 : vector<2x32xf32>
    %c0_210 = arith.constant 0 : index
    %c0_211 = arith.constant 0 : index
    %443 = vector.load %arg10[%c0_210, %c0_211] : memref<32x32xbf16, #tpu.memory_space<vmem>>, vector<32x32xbf16>
    %cst_212 = arith.constant dense<0.000000e+00> : vector<2x32xf32>
    %444 = tpu.matmul %414, %443, %cst_212 {dimension_numbers = #tpu.dot_dimension_numbers<[1], [0], [0], [1], [0, 0, 1, 1], [], []>} : vector<2x32xbf16>, vector<32x32xbf16>, vector<2x32xf32> -> vector<2x32xf32>
    %445 = vector.broadcast %6 : vector<1x32xf32> to vector<2x32xf32>
    %446 = arith.addf %444, %445 : vector<2x32xf32>
    %447 = arith.mulf %430, %446 : vector<2x32xf32>
    %448 = arith.addf %442, %447 : vector<2x32xf32>
    %449 = math.tanh %448 : vector<2x32xf32>
    %cst_213 = arith.constant 1.000000e+00 : f32
    %450 = vector.broadcast %cst_213 : f32 to vector<2x32xf32>
    %451 = arith.subf %450, %440 : vector<2x32xf32>
    %452 = arith.mulf %451, %449 : vector<2x32xf32>
    %453 = arith.mulf %440, %357 : vector<2x32xf32>
    %454 = arith.addf %452, %453 : vector<2x32xf32>
    %455 = arith.truncf %454 : vector<2x32xf32> to vector<2x32xbf16>
    %456 = arith.truncf %399 : vector<2x32xf32> to vector<2x32xbf16>
    %c0_214 = arith.constant 0 : index
    %c0_215 = arith.constant 0 : index
    %457 = vector.load %arg15[%c0_214, %c0_215] : memref<32x32xbf16, #tpu.memory_space<vmem>>, vector<32x32xbf16>
    %cst_216 = arith.constant dense<0.000000e+00> : vector<2x32xf32>
    %458 = tpu.matmul %455, %457, %cst_216 {dimension_numbers = #tpu.dot_dimension_numbers<[1], [0], [0], [1], [0, 0, 1, 1], [], []>} : vector<2x32xbf16>, vector<32x32xbf16>, vector<2x32xf32> -> vector<2x32xf32>
    %c0_217 = arith.constant 0 : index
    %c0_218 = arith.constant 0 : index
    %459 = vector.load %arg16[%c0_217, %c0_218] : memref<32x32xbf16, #tpu.memory_space<vmem>>, vector<32x32xbf16>
    %cst_219 = arith.constant dense<0.000000e+00> : vector<2x32xf32>
    %460 = tpu.matmul %455, %459, %cst_219 {dimension_numbers = #tpu.dot_dimension_numbers<[1], [0], [0], [1], [0, 0, 1, 1], [], []>} : vector<2x32xbf16>, vector<32x32xbf16>, vector<2x32xf32> -> vector<2x32xf32>
    %c0_220 = arith.constant 0 : index
    %c0_221 = arith.constant 0 : index
    %461 = vector.load %arg17[%c0_220, %c0_221] : memref<32x32xbf16, #tpu.memory_space<vmem>>, vector<32x32xbf16>
    %cst_222 = arith.constant dense<0.000000e+00> : vector<2x32xf32>
    %462 = tpu.matmul %455, %461, %cst_222 {dimension_numbers = #tpu.dot_dimension_numbers<[1], [0], [0], [1], [0, 0, 1, 1], [], []>} : vector<2x32xbf16>, vector<32x32xbf16>, vector<2x32xf32> -> vector<2x32xf32>
    %c0_223 = arith.constant 0 : index
    %c0_224 = arith.constant 0 : index
    %463 = vector.load %arg18[%c0_223, %c0_224] : memref<32x32xbf16, #tpu.memory_space<vmem>>, vector<32x32xbf16>
    %cst_225 = arith.constant dense<0.000000e+00> : vector<2x32xf32>
    %464 = tpu.matmul %456, %463, %cst_225 {dimension_numbers = #tpu.dot_dimension_numbers<[1], [0], [0], [1], [0, 0, 1, 1], [], []>} : vector<2x32xbf16>, vector<32x32xbf16>, vector<2x32xf32> -> vector<2x32xf32>
    %465 = arith.addf %458, %464 : vector<2x32xf32>
    %466 = vector.broadcast %7 : vector<1x32xf32> to vector<2x32xf32>
    %467 = arith.addf %465, %466 : vector<2x32xf32>
    %468 = arith.negf %467 : vector<2x32xf32>
    %469 = math.exp %468 : vector<2x32xf32>
    %cst_226 = arith.constant 1.000000e+00 : f32
    %470 = vector.broadcast %cst_226 : f32 to vector<2x32xf32>
    %471 = arith.addf %470, %469 : vector<2x32xf32>
    %472 = arith.divf %470, %471 : vector<2x32xf32>
    %c0_227 = arith.constant 0 : index
    %c0_228 = arith.constant 0 : index
    %473 = vector.load %arg19[%c0_227, %c0_228] : memref<32x32xbf16, #tpu.memory_space<vmem>>, vector<32x32xbf16>
    %cst_229 = arith.constant dense<0.000000e+00> : vector<2x32xf32>
    %474 = tpu.matmul %456, %473, %cst_229 {dimension_numbers = #tpu.dot_dimension_numbers<[1], [0], [0], [1], [0, 0, 1, 1], [], []>} : vector<2x32xbf16>, vector<32x32xbf16>, vector<2x32xf32> -> vector<2x32xf32>
    %475 = arith.addf %460, %474 : vector<2x32xf32>
    %476 = vector.broadcast %8 : vector<1x32xf32> to vector<2x32xf32>
    %477 = arith.addf %475, %476 : vector<2x32xf32>
    %478 = arith.negf %477 : vector<2x32xf32>
    %479 = math.exp %478 : vector<2x32xf32>
    %cst_230 = arith.constant 1.000000e+00 : f32
    %480 = vector.broadcast %cst_230 : f32 to vector<2x32xf32>
    %481 = arith.addf %480, %479 : vector<2x32xf32>
    %482 = arith.divf %480, %481 : vector<2x32xf32>
    %483 = vector.broadcast %9 : vector<1x32xf32> to vector<2x32xf32>
    %484 = arith.addf %462, %483 : vector<2x32xf32>
    %c0_231 = arith.constant 0 : index
    %c0_232 = arith.constant 0 : index
    %485 = vector.load %arg20[%c0_231, %c0_232] : memref<32x32xbf16, #tpu.memory_space<vmem>>, vector<32x32xbf16>
    %cst_233 = arith.constant dense<0.000000e+00> : vector<2x32xf32>
    %486 = tpu.matmul %456, %485, %cst_233 {dimension_numbers = #tpu.dot_dimension_numbers<[1], [0], [0], [1], [0, 0, 1, 1], [], []>} : vector<2x32xbf16>, vector<32x32xbf16>, vector<2x32xf32> -> vector<2x32xf32>
    %487 = vector.broadcast %10 : vector<1x32xf32> to vector<2x32xf32>
    %488 = arith.addf %486, %487 : vector<2x32xf32>
    %489 = arith.mulf %472, %488 : vector<2x32xf32>
    %490 = arith.addf %484, %489 : vector<2x32xf32>
    %491 = math.tanh %490 : vector<2x32xf32>
    %cst_234 = arith.constant 1.000000e+00 : f32
    %492 = vector.broadcast %cst_234 : f32 to vector<2x32xf32>
    %493 = arith.subf %492, %482 : vector<2x32xf32>
    %494 = arith.mulf %493, %491 : vector<2x32xf32>
    %495 = arith.mulf %482, %399 : vector<2x32xf32>
    %496 = arith.addf %494, %495 : vector<2x32xf32>
    %c4 = arith.constant 4 : index
    %c0_235 = arith.constant 0 : index
    %c0_236 = arith.constant 0 : index
    %497 = vector.load %arg2[%c4, %c0_235, %c0_236] : memref<8x2x1xf32, #tpu.memory_space<vmem>>, vector<1x2x1xf32>
    %498 = vector.shape_cast %497 : vector<1x2x1xf32> to vector<2x1xf32>
    %cst_237 = arith.constant 5.000000e-01 : f32
    %499 = vector.broadcast %cst_237 : f32 to vector<2x1xf32>
    %500 = arith.cmpf ogt, %498, %499 : vector<2x1xf32>
    %c4_238 = arith.constant 4 : index
    %c0_239 = arith.constant 0 : index
    %c0_240 = arith.constant 0 : index
    %501 = vector.load %arg3[%c4_238, %c0_239, %c0_240] : memref<8x2x1xf32, #tpu.memory_space<vmem>>, vector<1x2x1xf32>
    %502 = vector.shape_cast %501 : vector<1x2x1xf32> to vector<2x1xf32>
    %503 = vector.shape_cast %500 : vector<2x1xi1> to vector<2x1xi1>
    %504 = vector.broadcast %503 : vector<2x1xi1> to vector<2x32xi1>
    %505 = vector.shape_cast %502 : vector<2x1xf32> to vector<2x1xf32>
    %506 = vector.broadcast %505 : vector<2x1xf32> to vector<2x32xf32>
    %507 = arith.select %504, %496, %506 : vector<2x32xi1>, vector<2x32xf32>
    %c0_241 = arith.constant 0 : index
    %c4_242 = arith.constant 4 : index
    %c0_243 = arith.constant 0 : index
    %508 = vector.load %arg25[%c0_241, %c4_242, %c0_243] : memref<2x8x32xf32, #tpu.memory_space<vmem>>, vector<2x1x32xf32>
    %509 = vector.shape_cast %508 : vector<2x1x32xf32> to vector<2x32xf32>
    %510 = vector.shape_cast %507 : vector<2x32xf32> to vector<2x1x32xf32>
    tpu.vector_store %arg25[%c0_241, %c4_242, %c0_243], %510 {strides = array<i32>} : memref<2x8x32xf32, #tpu.memory_space<vmem>>, vector<2x1x32xf32>,
    %511 = arith.truncf %454 : vector<2x32xf32> to vector<2x32xbf16>
    %512 = vector.extract_strided_slice %15 {offsets = [5, 0, 0], sizes = [1, 2, 32], strides = [1, 1, 1]} : vector<8x2x32xf32> to vector<1x2x32xf32>
    %513 = vector.shape_cast %512 : vector<1x2x32xf32> to vector<2x32xf32>
    %514 = vector.extract_strided_slice %18 {offsets = [5, 0, 0], sizes = [1, 2, 32], strides = [1, 1, 1]} : vector<8x2x32xf32> to vector<1x2x32xf32>
    %515 = vector.shape_cast %514 : vector<1x2x32xf32> to vector<2x32xf32>
    %516 = vector.extract_strided_slice %21 {offsets = [5, 0, 0], sizes = [1, 2, 32], strides = [1, 1, 1]} : vector<8x2x32xf32> to vector<1x2x32xf32>
    %517 = vector.shape_cast %516 : vector<1x2x32xf32> to vector<2x32xf32>
    %c0_244 = arith.constant 0 : index
    %c0_245 = arith.constant 0 : index
    %518 = vector.load %arg8[%c0_244, %c0_245] : memref<32x32xbf16, #tpu.memory_space<vmem>>, vector<32x32xbf16>
    %cst_246 = arith.constant dense<0.000000e+00> : vector<2x32xf32>
    %519 = tpu.matmul %511, %518, %cst_246 {dimension_numbers = #tpu.dot_dimension_numbers<[1], [0], [0], [1], [0, 0, 1, 1], [], []>} : vector<2x32xbf16>, vector<32x32xbf16>, vector<2x32xf32> -> vector<2x32xf32>
    %520 = arith.addf %513, %519 : vector<2x32xf32>
    %521 = vector.broadcast %3 : vector<1x32xf32> to vector<2x32xf32>
    %522 = arith.addf %520, %521 : vector<2x32xf32>
    %523 = arith.negf %522 : vector<2x32xf32>
    %524 = math.exp %523 : vector<2x32xf32>
    %cst_247 = arith.constant 1.000000e+00 : f32
    %525 = vector.broadcast %cst_247 : f32 to vector<2x32xf32>
    %526 = arith.addf %525, %524 : vector<2x32xf32>
    %527 = arith.divf %525, %526 : vector<2x32xf32>
    %c0_248 = arith.constant 0 : index
    %c0_249 = arith.constant 0 : index
    %528 = vector.load %arg9[%c0_248, %c0_249] : memref<32x32xbf16, #tpu.memory_space<vmem>>, vector<32x32xbf16>
    %cst_250 = arith.constant dense<0.000000e+00> : vector<2x32xf32>
    %529 = tpu.matmul %511, %528, %cst_250 {dimension_numbers = #tpu.dot_dimension_numbers<[1], [0], [0], [1], [0, 0, 1, 1], [], []>} : vector<2x32xbf16>, vector<32x32xbf16>, vector<2x32xf32> -> vector<2x32xf32>
    %530 = arith.addf %515, %529 : vector<2x32xf32>
    %531 = vector.broadcast %4 : vector<1x32xf32> to vector<2x32xf32>
    %532 = arith.addf %530, %531 : vector<2x32xf32>
    %533 = arith.negf %532 : vector<2x32xf32>
    %534 = math.exp %533 : vector<2x32xf32>
    %cst_251 = arith.constant 1.000000e+00 : f32
    %535 = vector.broadcast %cst_251 : f32 to vector<2x32xf32>
    %536 = arith.addf %535, %534 : vector<2x32xf32>
    %537 = arith.divf %535, %536 : vector<2x32xf32>
    %538 = vector.broadcast %5 : vector<1x32xf32> to vector<2x32xf32>
    %539 = arith.addf %517, %538 : vector<2x32xf32>
    %c0_252 = arith.constant 0 : index
    %c0_253 = arith.constant 0 : index
    %540 = vector.load %arg10[%c0_252, %c0_253] : memref<32x32xbf16, #tpu.memory_space<vmem>>, vector<32x32xbf16>
    %cst_254 = arith.constant dense<0.000000e+00> : vector<2x32xf32>
    %541 = tpu.matmul %511, %540, %cst_254 {dimension_numbers = #tpu.dot_dimension_numbers<[1], [0], [0], [1], [0, 0, 1, 1], [], []>} : vector<2x32xbf16>, vector<32x32xbf16>, vector<2x32xf32> -> vector<2x32xf32>
    %542 = vector.broadcast %6 : vector<1x32xf32> to vector<2x32xf32>
    %543 = arith.addf %541, %542 : vector<2x32xf32>
    %544 = arith.mulf %527, %543 : vector<2x32xf32>
    %545 = arith.addf %539, %544 : vector<2x32xf32>
    %546 = math.tanh %545 : vector<2x32xf32>
    %cst_255 = arith.constant 1.000000e+00 : f32
    %547 = vector.broadcast %cst_255 : f32 to vector<2x32xf32>
    %548 = arith.subf %547, %537 : vector<2x32xf32>
    %549 = arith.mulf %548, %546 : vector<2x32xf32>
    %550 = arith.mulf %537, %454 : vector<2x32xf32>
    %551 = arith.addf %549, %550 : vector<2x32xf32>
    %552 = arith.truncf %551 : vector<2x32xf32> to vector<2x32xbf16>
    %553 = arith.truncf %496 : vector<2x32xf32> to vector<2x32xbf16>
    %c0_256 = arith.constant 0 : index
    %c0_257 = arith.constant 0 : index
    %554 = vector.load %arg15[%c0_256, %c0_257] : memref<32x32xbf16, #tpu.memory_space<vmem>>, vector<32x32xbf16>
    %cst_258 = arith.constant dense<0.000000e+00> : vector<2x32xf32>
    %555 = tpu.matmul %552, %554, %cst_258 {dimension_numbers = #tpu.dot_dimension_numbers<[1], [0], [0], [1], [0, 0, 1, 1], [], []>} : vector<2x32xbf16>, vector<32x32xbf16>, vector<2x32xf32> -> vector<2x32xf32>
    %c0_259 = arith.constant 0 : index
    %c0_260 = arith.constant 0 : index
    %556 = vector.load %arg16[%c0_259, %c0_260] : memref<32x32xbf16, #tpu.memory_space<vmem>>, vector<32x32xbf16>
    %cst_261 = arith.constant dense<0.000000e+00> : vector<2x32xf32>
    %557 = tpu.matmul %552, %556, %cst_261 {dimension_numbers = #tpu.dot_dimension_numbers<[1], [0], [0], [1], [0, 0, 1, 1], [], []>} : vector<2x32xbf16>, vector<32x32xbf16>, vector<2x32xf32> -> vector<2x32xf32>
    %c0_262 = arith.constant 0 : index
    %c0_263 = arith.constant 0 : index
    %558 = vector.load %arg17[%c0_262, %c0_263] : memref<32x32xbf16, #tpu.memory_space<vmem>>, vector<32x32xbf16>
    %cst_264 = arith.constant dense<0.000000e+00> : vector<2x32xf32>
    %559 = tpu.matmul %552, %558, %cst_264 {dimension_numbers = #tpu.dot_dimension_numbers<[1], [0], [0], [1], [0, 0, 1, 1], [], []>} : vector<2x32xbf16>, vector<32x32xbf16>, vector<2x32xf32> -> vector<2x32xf32>
    %c0_265 = arith.constant 0 : index
    %c0_266 = arith.constant 0 : index
    %560 = vector.load %arg18[%c0_265, %c0_266] : memref<32x32xbf16, #tpu.memory_space<vmem>>, vector<32x32xbf16>
    %cst_267 = arith.constant dense<0.000000e+00> : vector<2x32xf32>
    %561 = tpu.matmul %553, %560, %cst_267 {dimension_numbers = #tpu.dot_dimension_numbers<[1], [0], [0], [1], [0, 0, 1, 1], [], []>} : vector<2x32xbf16>, vector<32x32xbf16>, vector<2x32xf32> -> vector<2x32xf32>
    %562 = arith.addf %555, %561 : vector<2x32xf32>
    %563 = vector.broadcast %7 : vector<1x32xf32> to vector<2x32xf32>
    %564 = arith.addf %562, %563 : vector<2x32xf32>
    %565 = arith.negf %564 : vector<2x32xf32>
    %566 = math.exp %565 : vector<2x32xf32>
    %cst_268 = arith.constant 1.000000e+00 : f32
    %567 = vector.broadcast %cst_268 : f32 to vector<2x32xf32>
    %568 = arith.addf %567, %566 : vector<2x32xf32>
    %569 = arith.divf %567, %568 : vector<2x32xf32>
    %c0_269 = arith.constant 0 : index
    %c0_270 = arith.constant 0 : index
    %570 = vector.load %arg19[%c0_269, %c0_270] : memref<32x32xbf16, #tpu.memory_space<vmem>>, vector<32x32xbf16>
    %cst_271 = arith.constant dense<0.000000e+00> : vector<2x32xf32>
    %571 = tpu.matmul %553, %570, %cst_271 {dimension_numbers = #tpu.dot_dimension_numbers<[1], [0], [0], [1], [0, 0, 1, 1], [], []>} : vector<2x32xbf16>, vector<32x32xbf16>, vector<2x32xf32> -> vector<2x32xf32>
    %572 = arith.addf %557, %571 : vector<2x32xf32>
    %573 = vector.broadcast %8 : vector<1x32xf32> to vector<2x32xf32>
    %574 = arith.addf %572, %573 : vector<2x32xf32>
    %575 = arith.negf %574 : vector<2x32xf32>
    %576 = math.exp %575 : vector<2x32xf32>
    %cst_272 = arith.constant 1.000000e+00 : f32
    %577 = vector.broadcast %cst_272 : f32 to vector<2x32xf32>
    %578 = arith.addf %577, %576 : vector<2x32xf32>
    %579 = arith.divf %577, %578 : vector<2x32xf32>
    %580 = vector.broadcast %9 : vector<1x32xf32> to vector<2x32xf32>
    %581 = arith.addf %559, %580 : vector<2x32xf32>
    %c0_273 = arith.constant 0 : index
    %c0_274 = arith.constant 0 : index
    %582 = vector.load %arg20[%c0_273, %c0_274] : memref<32x32xbf16, #tpu.memory_space<vmem>>, vector<32x32xbf16>
    %cst_275 = arith.constant dense<0.000000e+00> : vector<2x32xf32>
    %583 = tpu.matmul %553, %582, %cst_275 {dimension_numbers = #tpu.dot_dimension_numbers<[1], [0], [0], [1], [0, 0, 1, 1], [], []>} : vector<2x32xbf16>, vector<32x32xbf16>, vector<2x32xf32> -> vector<2x32xf32>
    %584 = vector.broadcast %10 : vector<1x32xf32> to vector<2x32xf32>
    %585 = arith.addf %583, %584 : vector<2x32xf32>
    %586 = arith.mulf %569, %585 : vector<2x32xf32>
    %587 = arith.addf %581, %586 : vector<2x32xf32>
    %588 = math.tanh %587 : vector<2x32xf32>
    %cst_276 = arith.constant 1.000000e+00 : f32
    %589 = vector.broadcast %cst_276 : f32 to vector<2x32xf32>
    %590 = arith.subf %589, %579 : vector<2x32xf32>
    %591 = arith.mulf %590, %588 : vector<2x32xf32>
    %592 = arith.mulf %579, %496 : vector<2x32xf32>
    %593 = arith.addf %591, %592 : vector<2x32xf32>
    %c5 = arith.constant 5 : index
    %c0_277 = arith.constant 0 : index
    %c0_278 = arith.constant 0 : index
    %594 = vector.load %arg2[%c5, %c0_277, %c0_278] : memref<8x2x1xf32, #tpu.memory_space<vmem>>, vector<1x2x1xf32>
    %595 = vector.shape_cast %594 : vector<1x2x1xf32> to vector<2x1xf32>
    %cst_279 = arith.constant 5.000000e-01 : f32
    %596 = vector.broadcast %cst_279 : f32 to vector<2x1xf32>
    %597 = arith.cmpf ogt, %595, %596 : vector<2x1xf32>
    %c5_280 = arith.constant 5 : index
    %c0_281 = arith.constant 0 : index
    %c0_282 = arith.constant 0 : index
    %598 = vector.load %arg3[%c5_280, %c0_281, %c0_282] : memref<8x2x1xf32, #tpu.memory_space<vmem>>, vector<1x2x1xf32>
    %599 = vector.shape_cast %598 : vector<1x2x1xf32> to vector<2x1xf32>
    %600 = vector.shape_cast %597 : vector<2x1xi1> to vector<2x1xi1>
    %601 = vector.broadcast %600 : vector<2x1xi1> to vector<2x32xi1>
    %602 = vector.shape_cast %599 : vector<2x1xf32> to vector<2x1xf32>
    %603 = vector.broadcast %602 : vector<2x1xf32> to vector<2x32xf32>
    %604 = arith.select %601, %593, %603 : vector<2x32xi1>, vector<2x32xf32>
    %c0_283 = arith.constant 0 : index
    %c5_284 = arith.constant 5 : index
    %c0_285 = arith.constant 0 : index
    %605 = vector.load %arg25[%c0_283, %c5_284, %c0_285] : memref<2x8x32xf32, #tpu.memory_space<vmem>>, vector<2x1x32xf32>
    %606 = vector.shape_cast %605 : vector<2x1x32xf32> to vector<2x32xf32>
    %607 = vector.shape_cast %604 : vector<2x32xf32> to vector<2x1x32xf32>
    tpu.vector_store %arg25[%c0_283, %c5_284, %c0_285], %607 {strides = array<i32>} : memref<2x8x32xf32, #tpu.memory_space<vmem>>, vector<2x1x32xf32>,
    %608 = arith.truncf %551 : vector<2x32xf32> to vector<2x32xbf16>
    %609 = vector.extract_strided_slice %15 {offsets = [6, 0, 0], sizes = [1, 2, 32], strides = [1, 1, 1]} : vector<8x2x32xf32> to vector<1x2x32xf32>
    %610 = vector.shape_cast %609 : vector<1x2x32xf32> to vector<2x32xf32>
    %611 = vector.extract_strided_slice %18 {offsets = [6, 0, 0], sizes = [1, 2, 32], strides = [1, 1, 1]} : vector<8x2x32xf32> to vector<1x2x32xf32>
    %612 = vector.shape_cast %611 : vector<1x2x32xf32> to vector<2x32xf32>
    %613 = vector.extract_strided_slice %21 {offsets = [6, 0, 0], sizes = [1, 2, 32], strides = [1, 1, 1]} : vector<8x2x32xf32> to vector<1x2x32xf32>
    %614 = vector.shape_cast %613 : vector<1x2x32xf32> to vector<2x32xf32>
    %c0_286 = arith.constant 0 : index
    %c0_287 = arith.constant 0 : index
    %615 = vector.load %arg8[%c0_286, %c0_287] : memref<32x32xbf16, #tpu.memory_space<vmem>>, vector<32x32xbf16>
    %cst_288 = arith.constant dense<0.000000e+00> : vector<2x32xf32>
    %616 = tpu.matmul %608, %615, %cst_288 {dimension_numbers = #tpu.dot_dimension_numbers<[1], [0], [0], [1], [0, 0, 1, 1], [], []>} : vector<2x32xbf16>, vector<32x32xbf16>, vector<2x32xf32> -> vector<2x32xf32>
    %617 = arith.addf %610, %616 : vector<2x32xf32>
    %618 = vector.broadcast %3 : vector<1x32xf32> to vector<2x32xf32>
    %619 = arith.addf %617, %618 : vector<2x32xf32>
    %620 = arith.negf %619 : vector<2x32xf32>
    %621 = math.exp %620 : vector<2x32xf32>
    %cst_289 = arith.constant 1.000000e+00 : f32
    %622 = vector.broadcast %cst_289 : f32 to vector<2x32xf32>
    %623 = arith.addf %622, %621 : vector<2x32xf32>
    %624 = arith.divf %622, %623 : vector<2x32xf32>
    %c0_290 = arith.constant 0 : index
    %c0_291 = arith.constant 0 : index
    %625 = vector.load %arg9[%c0_290, %c0_291] : memref<32x32xbf16, #tpu.memory_space<vmem>>, vector<32x32xbf16>
    %cst_292 = arith.constant dense<0.000000e+00> : vector<2x32xf32>
    %626 = tpu.matmul %608, %625, %cst_292 {dimension_numbers = #tpu.dot_dimension_numbers<[1], [0], [0], [1], [0, 0, 1, 1], [], []>} : vector<2x32xbf16>, vector<32x32xbf16>, vector<2x32xf32> -> vector<2x32xf32>
    %627 = arith.addf %612, %626 : vector<2x32xf32>
    %628 = vector.broadcast %4 : vector<1x32xf32> to vector<2x32xf32>
    %629 = arith.addf %627, %628 : vector<2x32xf32>
    %630 = arith.negf %629 : vector<2x32xf32>
    %631 = math.exp %630 : vector<2x32xf32>
    %cst_293 = arith.constant 1.000000e+00 : f32
    %632 = vector.broadcast %cst_293 : f32 to vector<2x32xf32>
    %633 = arith.addf %632, %631 : vector<2x32xf32>
    %634 = arith.divf %632, %633 : vector<2x32xf32>
    %635 = vector.broadcast %5 : vector<1x32xf32> to vector<2x32xf32>
    %636 = arith.addf %614, %635 : vector<2x32xf32>
    %c0_294 = arith.constant 0 : index
    %c0_295 = arith.constant 0 : index
    %637 = vector.load %arg10[%c0_294, %c0_295] : memref<32x32xbf16, #tpu.memory_space<vmem>>, vector<32x32xbf16>
    %cst_296 = arith.constant dense<0.000000e+00> : vector<2x32xf32>
    %638 = tpu.matmul %608, %637, %cst_296 {dimension_numbers = #tpu.dot_dimension_numbers<[1], [0], [0], [1], [0, 0, 1, 1], [], []>} : vector<2x32xbf16>, vector<32x32xbf16>, vector<2x32xf32> -> vector<2x32xf32>
    %639 = vector.broadcast %6 : vector<1x32xf32> to vector<2x32xf32>
    %640 = arith.addf %638, %639 : vector<2x32xf32>
    %641 = arith.mulf %624, %640 : vector<2x32xf32>
    %642 = arith.addf %636, %641 : vector<2x32xf32>
    %643 = math.tanh %642 : vector<2x32xf32>
    %cst_297 = arith.constant 1.000000e+00 : f32
    %644 = vector.broadcast %cst_297 : f32 to vector<2x32xf32>
    %645 = arith.subf %644, %634 : vector<2x32xf32>
    %646 = arith.mulf %645, %643 : vector<2x32xf32>
    %647 = arith.mulf %634, %551 : vector<2x32xf32>
    %648 = arith.addf %646, %647 : vector<2x32xf32>
    %649 = arith.truncf %648 : vector<2x32xf32> to vector<2x32xbf16>
    %650 = arith.truncf %593 : vector<2x32xf32> to vector<2x32xbf16>
    %c0_298 = arith.constant 0 : index
    %c0_299 = arith.constant 0 : index
    %651 = vector.load %arg15[%c0_298, %c0_299] : memref<32x32xbf16, #tpu.memory_space<vmem>>, vector<32x32xbf16>
    %cst_300 = arith.constant dense<0.000000e+00> : vector<2x32xf32>
    %652 = tpu.matmul %649, %651, %cst_300 {dimension_numbers = #tpu.dot_dimension_numbers<[1], [0], [0], [1], [0, 0, 1, 1], [], []>} : vector<2x32xbf16>, vector<32x32xbf16>, vector<2x32xf32> -> vector<2x32xf32>
    %c0_301 = arith.constant 0 : index
    %c0_302 = arith.constant 0 : index
    %653 = vector.load %arg16[%c0_301, %c0_302] : memref<32x32xbf16, #tpu.memory_space<vmem>>, vector<32x32xbf16>
    %cst_303 = arith.constant dense<0.000000e+00> : vector<2x32xf32>
    %654 = tpu.matmul %649, %653, %cst_303 {dimension_numbers = #tpu.dot_dimension_numbers<[1], [0], [0], [1], [0, 0, 1, 1], [], []>} : vector<2x32xbf16>, vector<32x32xbf16>, vector<2x32xf32> -> vector<2x32xf32>
    %c0_304 = arith.constant 0 : index
    %c0_305 = arith.constant 0 : index
    %655 = vector.load %arg17[%c0_304, %c0_305] : memref<32x32xbf16, #tpu.memory_space<vmem>>, vector<32x32xbf16>
    %cst_306 = arith.constant dense<0.000000e+00> : vector<2x32xf32>
    %656 = tpu.matmul %649, %655, %cst_306 {dimension_numbers = #tpu.dot_dimension_numbers<[1], [0], [0], [1], [0, 0, 1, 1], [], []>} : vector<2x32xbf16>, vector<32x32xbf16>, vector<2x32xf32> -> vector<2x32xf32>
    %c0_307 = arith.constant 0 : index
    %c0_308 = arith.constant 0 : index
    %657 = vector.load %arg18[%c0_307, %c0_308] : memref<32x32xbf16, #tpu.memory_space<vmem>>, vector<32x32xbf16>
    %cst_309 = arith.constant dense<0.000000e+00> : vector<2x32xf32>
    %658 = tpu.matmul %650, %657, %cst_309 {dimension_numbers = #tpu.dot_dimension_numbers<[1], [0], [0], [1], [0, 0, 1, 1], [], []>} : vector<2x32xbf16>, vector<32x32xbf16>, vector<2x32xf32> -> vector<2x32xf32>
    %659 = arith.addf %652, %658 : vector<2x32xf32>
    %660 = vector.broadcast %7 : vector<1x32xf32> to vector<2x32xf32>
    %661 = arith.addf %659, %660 : vector<2x32xf32>
    %662 = arith.negf %661 : vector<2x32xf32>
    %663 = math.exp %662 : vector<2x32xf32>
    %cst_310 = arith.constant 1.000000e+00 : f32
    %664 = vector.broadcast %cst_310 : f32 to vector<2x32xf32>
    %665 = arith.addf %664, %663 : vector<2x32xf32>
    %666 = arith.divf %664, %665 : vector<2x32xf32>
    %c0_311 = arith.constant 0 : index
    %c0_312 = arith.constant 0 : index
    %667 = vector.load %arg19[%c0_311, %c0_312] : memref<32x32xbf16, #tpu.memory_space<vmem>>, vector<32x32xbf16>
    %cst_313 = arith.constant dense<0.000000e+00> : vector<2x32xf32>
    %668 = tpu.matmul %650, %667, %cst_313 {dimension_numbers = #tpu.dot_dimension_numbers<[1], [0], [0], [1], [0, 0, 1, 1], [], []>} : vector<2x32xbf16>, vector<32x32xbf16>, vector<2x32xf32> -> vector<2x32xf32>
    %669 = arith.addf %654, %668 : vector<2x32xf32>
    %670 = vector.broadcast %8 : vector<1x32xf32> to vector<2x32xf32>
    %671 = arith.addf %669, %670 : vector<2x32xf32>
    %672 = arith.negf %671 : vector<2x32xf32>
    %673 = math.exp %672 : vector<2x32xf32>
    %cst_314 = arith.constant 1.000000e+00 : f32
    %674 = vector.broadcast %cst_314 : f32 to vector<2x32xf32>
    %675 = arith.addf %674, %673 : vector<2x32xf32>
    %676 = arith.divf %674, %675 : vector<2x32xf32>
    %677 = vector.broadcast %9 : vector<1x32xf32> to vector<2x32xf32>
    %678 = arith.addf %656, %677 : vector<2x32xf32>
    %c0_315 = arith.constant 0 : index
    %c0_316 = arith.constant 0 : index
    %679 = vector.load %arg20[%c0_315, %c0_316] : memref<32x32xbf16, #tpu.memory_space<vmem>>, vector<32x32xbf16>
    %cst_317 = arith.constant dense<0.000000e+00> : vector<2x32xf32>
    %680 = tpu.matmul %650, %679, %cst_317 {dimension_numbers = #tpu.dot_dimension_numbers<[1], [0], [0], [1], [0, 0, 1, 1], [], []>} : vector<2x32xbf16>, vector<32x32xbf16>, vector<2x32xf32> -> vector<2x32xf32>
    %681 = vector.broadcast %10 : vector<1x32xf32> to vector<2x32xf32>
    %682 = arith.addf %680, %681 : vector<2x32xf32>
    %683 = arith.mulf %666, %682 : vector<2x32xf32>
    %684 = arith.addf %678, %683 : vector<2x32xf32>
    %685 = math.tanh %684 : vector<2x32xf32>
    %cst_318 = arith.constant 1.000000e+00 : f32
    %686 = vector.broadcast %cst_318 : f32 to vector<2x32xf32>
    %687 = arith.subf %686, %676 : vector<2x32xf32>
    %688 = arith.mulf %687, %685 : vector<2x32xf32>
    %689 = arith.mulf %676, %593 : vector<2x32xf32>
    %690 = arith.addf %688, %689 : vector<2x32xf32>
    %c6 = arith.constant 6 : index
    %c0_319 = arith.constant 0 : index
    %c0_320 = arith.constant 0 : index
    %691 = vector.load %arg2[%c6, %c0_319, %c0_320] : memref<8x2x1xf32, #tpu.memory_space<vmem>>, vector<1x2x1xf32>
    %692 = vector.shape_cast %691 : vector<1x2x1xf32> to vector<2x1xf32>
    %cst_321 = arith.constant 5.000000e-01 : f32
    %693 = vector.broadcast %cst_321 : f32 to vector<2x1xf32>
    %694 = arith.cmpf ogt, %692, %693 : vector<2x1xf32>
    %c6_322 = arith.constant 6 : index
    %c0_323 = arith.constant 0 : index
    %c0_324 = arith.constant 0 : index
    %695 = vector.load %arg3[%c6_322, %c0_323, %c0_324] : memref<8x2x1xf32, #tpu.memory_space<vmem>>, vector<1x2x1xf32>
    %696 = vector.shape_cast %695 : vector<1x2x1xf32> to vector<2x1xf32>
    %697 = vector.shape_cast %694 : vector<2x1xi1> to vector<2x1xi1>
    %698 = vector.broadcast %697 : vector<2x1xi1> to vector<2x32xi1>
    %699 = vector.shape_cast %696 : vector<2x1xf32> to vector<2x1xf32>
    %700 = vector.broadcast %699 : vector<2x1xf32> to vector<2x32xf32>
    %701 = arith.select %698, %690, %700 : vector<2x32xi1>, vector<2x32xf32>
    %c0_325 = arith.constant 0 : index
    %c6_326 = arith.constant 6 : index
    %c0_327 = arith.constant 0 : index
    %702 = vector.load %arg25[%c0_325, %c6_326, %c0_327] : memref<2x8x32xf32, #tpu.memory_space<vmem>>, vector<2x1x32xf32>
    %703 = vector.shape_cast %702 : vector<2x1x32xf32> to vector<2x32xf32>
    %704 = vector.shape_cast %701 : vector<2x32xf32> to vector<2x1x32xf32>
    tpu.vector_store %arg25[%c0_325, %c6_326, %c0_327], %704 {strides = array<i32>} : memref<2x8x32xf32, #tpu.memory_space<vmem>>, vector<2x1x32xf32>,
    %705 = arith.truncf %648 : vector<2x32xf32> to vector<2x32xbf16>
    %706 = vector.extract_strided_slice %15 {offsets = [7, 0, 0], sizes = [1, 2, 32], strides = [1, 1, 1]} : vector<8x2x32xf32> to vector<1x2x32xf32>
    %707 = vector.shape_cast %706 : vector<1x2x32xf32> to vector<2x32xf32>
    %708 = vector.extract_strided_slice %18 {offsets = [7, 0, 0], sizes = [1, 2, 32], strides = [1, 1, 1]} : vector<8x2x32xf32> to vector<1x2x32xf32>
    %709 = vector.shape_cast %708 : vector<1x2x32xf32> to vector<2x32xf32>
    %710 = vector.extract_strided_slice %21 {offsets = [7, 0, 0], sizes = [1, 2, 32], strides = [1, 1, 1]} : vector<8x2x32xf32> to vector<1x2x32xf32>
    %711 = vector.shape_cast %710 : vector<1x2x32xf32> to vector<2x32xf32>
    %c0_328 = arith.constant 0 : index
    %c0_329 = arith.constant 0 : index
    %712 = vector.load %arg8[%c0_328, %c0_329] : memref<32x32xbf16, #tpu.memory_space<vmem>>, vector<32x32xbf16>
    %cst_330 = arith.constant dense<0.000000e+00> : vector<2x32xf32>
    %713 = tpu.matmul %705, %712, %cst_330 {dimension_numbers = #tpu.dot_dimension_numbers<[1], [0], [0], [1], [0, 0, 1, 1], [], []>} : vector<2x32xbf16>, vector<32x32xbf16>, vector<2x32xf32> -> vector<2x32xf32>
    %714 = arith.addf %707, %713 : vector<2x32xf32>
    %715 = vector.broadcast %3 : vector<1x32xf32> to vector<2x32xf32>
    %716 = arith.addf %714, %715 : vector<2x32xf32>
    %717 = arith.negf %716 : vector<2x32xf32>
    %718 = math.exp %717 : vector<2x32xf32>
    %cst_331 = arith.constant 1.000000e+00 : f32
    %719 = vector.broadcast %cst_331 : f32 to vector<2x32xf32>
    %720 = arith.addf %719, %718 : vector<2x32xf32>
    %721 = arith.divf %719, %720 : vector<2x32xf32>
    %c0_332 = arith.constant 0 : index
    %c0_333 = arith.constant 0 : index
    %722 = vector.load %arg9[%c0_332, %c0_333] : memref<32x32xbf16, #tpu.memory_space<vmem>>, vector<32x32xbf16>
    %cst_334 = arith.constant dense<0.000000e+00> : vector<2x32xf32>
    %723 = tpu.matmul %705, %722, %cst_334 {dimension_numbers = #tpu.dot_dimension_numbers<[1], [0], [0], [1], [0, 0, 1, 1], [], []>} : vector<2x32xbf16>, vector<32x32xbf16>, vector<2x32xf32> -> vector<2x32xf32>
    %724 = arith.addf %709, %723 : vector<2x32xf32>
    %725 = vector.broadcast %4 : vector<1x32xf32> to vector<2x32xf32>
    %726 = arith.addf %724, %725 : vector<2x32xf32>
    %727 = arith.negf %726 : vector<2x32xf32>
    %728 = math.exp %727 : vector<2x32xf32>
    %cst_335 = arith.constant 1.000000e+00 : f32
    %729 = vector.broadcast %cst_335 : f32 to vector<2x32xf32>
    %730 = arith.addf %729, %728 : vector<2x32xf32>
    %731 = arith.divf %729, %730 : vector<2x32xf32>
    %732 = vector.broadcast %5 : vector<1x32xf32> to vector<2x32xf32>
    %733 = arith.addf %711, %732 : vector<2x32xf32>
    %c0_336 = arith.constant 0 : index
    %c0_337 = arith.constant 0 : index
    %734 = vector.load %arg10[%c0_336, %c0_337] : memref<32x32xbf16, #tpu.memory_space<vmem>>, vector<32x32xbf16>
    %cst_338 = arith.constant dense<0.000000e+00> : vector<2x32xf32>
    %735 = tpu.matmul %705, %734, %cst_338 {dimension_numbers = #tpu.dot_dimension_numbers<[1], [0], [0], [1], [0, 0, 1, 1], [], []>} : vector<2x32xbf16>, vector<32x32xbf16>, vector<2x32xf32> -> vector<2x32xf32>
    %736 = vector.broadcast %6 : vector<1x32xf32> to vector<2x32xf32>
    %737 = arith.addf %735, %736 : vector<2x32xf32>
    %738 = arith.mulf %721, %737 : vector<2x32xf32>
    %739 = arith.addf %733, %738 : vector<2x32xf32>
    %740 = math.tanh %739 : vector<2x32xf32>
    %cst_339 = arith.constant 1.000000e+00 : f32
    %741 = vector.broadcast %cst_339 : f32 to vector<2x32xf32>
    %742 = arith.subf %741, %731 : vector<2x32xf32>
    %743 = arith.mulf %742, %740 : vector<2x32xf32>
    %744 = arith.mulf %731, %648 : vector<2x32xf32>
    %745 = arith.addf %743, %744 : vector<2x32xf32>
    %746 = arith.truncf %745 : vector<2x32xf32> to vector<2x32xbf16>
    %747 = arith.truncf %690 : vector<2x32xf32> to vector<2x32xbf16>
    %c0_340 = arith.constant 0 : index
    %c0_341 = arith.constant 0 : index
    %748 = vector.load %arg15[%c0_340, %c0_341] : memref<32x32xbf16, #tpu.memory_space<vmem>>, vector<32x32xbf16>
    %cst_342 = arith.constant dense<0.000000e+00> : vector<2x32xf32>
    %749 = tpu.matmul %746, %748, %cst_342 {dimension_numbers = #tpu.dot_dimension_numbers<[1], [0], [0], [1], [0, 0, 1, 1], [], []>} : vector<2x32xbf16>, vector<32x32xbf16>, vector<2x32xf32> -> vector<2x32xf32>
    %c0_343 = arith.constant 0 : index
    %c0_344 = arith.constant 0 : index
    %750 = vector.load %arg16[%c0_343, %c0_344] : memref<32x32xbf16, #tpu.memory_space<vmem>>, vector<32x32xbf16>
    %cst_345 = arith.constant dense<0.000000e+00> : vector<2x32xf32>
    %751 = tpu.matmul %746, %750, %cst_345 {dimension_numbers = #tpu.dot_dimension_numbers<[1], [0], [0], [1], [0, 0, 1, 1], [], []>} : vector<2x32xbf16>, vector<32x32xbf16>, vector<2x32xf32> -> vector<2x32xf32>
    %c0_346 = arith.constant 0 : index
    %c0_347 = arith.constant 0 : index
    %752 = vector.load %arg17[%c0_346, %c0_347] : memref<32x32xbf16, #tpu.memory_space<vmem>>, vector<32x32xbf16>
    %cst_348 = arith.constant dense<0.000000e+00> : vector<2x32xf32>
    %753 = tpu.matmul %746, %752, %cst_348 {dimension_numbers = #tpu.dot_dimension_numbers<[1], [0], [0], [1], [0, 0, 1, 1], [], []>} : vector<2x32xbf16>, vector<32x32xbf16>, vector<2x32xf32> -> vector<2x32xf32>
    %c0_349 = arith.constant 0 : index
    %c0_350 = arith.constant 0 : index
    %754 = vector.load %arg18[%c0_349, %c0_350] : memref<32x32xbf16, #tpu.memory_space<vmem>>, vector<32x32xbf16>
    %cst_351 = arith.constant dense<0.000000e+00> : vector<2x32xf32>
    %755 = tpu.matmul %747, %754, %cst_351 {dimension_numbers = #tpu.dot_dimension_numbers<[1], [0], [0], [1], [0, 0, 1, 1], [], []>} : vector<2x32xbf16>, vector<32x32xbf16>, vector<2x32xf32> -> vector<2x32xf32>
    %756 = arith.addf %749, %755 : vector<2x32xf32>
    %757 = vector.broadcast %7 : vector<1x32xf32> to vector<2x32xf32>
    %758 = arith.addf %756, %757 : vector<2x32xf32>
    %759 = arith.negf %758 : vector<2x32xf32>
    %760 = math.exp %759 : vector<2x32xf32>
    %cst_352 = arith.constant 1.000000e+00 : f32
    %761 = vector.broadcast %cst_352 : f32 to vector<2x32xf32>
    %762 = arith.addf %761, %760 : vector<2x32xf32>
    %763 = arith.divf %761, %762 : vector<2x32xf32>
    %c0_353 = arith.constant 0 : index
    %c0_354 = arith.constant 0 : index
    %764 = vector.load %arg19[%c0_353, %c0_354] : memref<32x32xbf16, #tpu.memory_space<vmem>>, vector<32x32xbf16>
    %cst_355 = arith.constant dense<0.000000e+00> : vector<2x32xf32>
    %765 = tpu.matmul %747, %764, %cst_355 {dimension_numbers = #tpu.dot_dimension_numbers<[1], [0], [0], [1], [0, 0, 1, 1], [], []>} : vector<2x32xbf16>, vector<32x32xbf16>, vector<2x32xf32> -> vector<2x32xf32>
    %766 = arith.addf %751, %765 : vector<2x32xf32>
    %767 = vector.broadcast %8 : vector<1x32xf32> to vector<2x32xf32>
    %768 = arith.addf %766, %767 : vector<2x32xf32>
    %769 = arith.negf %768 : vector<2x32xf32>
    %770 = math.exp %769 : vector<2x32xf32>
    %cst_356 = arith.constant 1.000000e+00 : f32
    %771 = vector.broadcast %cst_356 : f32 to vector<2x32xf32>
    %772 = arith.addf %771, %770 : vector<2x32xf32>
    %773 = arith.divf %771, %772 : vector<2x32xf32>
    %774 = vector.broadcast %9 : vector<1x32xf32> to vector<2x32xf32>
    %775 = arith.addf %753, %774 : vector<2x32xf32>
    %c0_357 = arith.constant 0 : index
    %c0_358 = arith.constant 0 : index
    %776 = vector.load %arg20[%c0_357, %c0_358] : memref<32x32xbf16, #tpu.memory_space<vmem>>, vector<32x32xbf16>
    %cst_359 = arith.constant dense<0.000000e+00> : vector<2x32xf32>
    %777 = tpu.matmul %747, %776, %cst_359 {dimension_numbers = #tpu.dot_dimension_numbers<[1], [0], [0], [1], [0, 0, 1, 1], [], []>} : vector<2x32xbf16>, vector<32x32xbf16>, vector<2x32xf32> -> vector<2x32xf32>
    %778 = vector.broadcast %10 : vector<1x32xf32> to vector<2x32xf32>
    %779 = arith.addf %777, %778 : vector<2x32xf32>
    %780 = arith.mulf %763, %779 : vector<2x32xf32>
    %781 = arith.addf %775, %780 : vector<2x32xf32>
    %782 = math.tanh %781 : vector<2x32xf32>
    %cst_360 = arith.constant 1.000000e+00 : f32
    %783 = vector.broadcast %cst_360 : f32 to vector<2x32xf32>
    %784 = arith.subf %783, %773 : vector<2x32xf32>
    %785 = arith.mulf %784, %782 : vector<2x32xf32>
    %786 = arith.mulf %773, %690 : vector<2x32xf32>
    %787 = arith.addf %785, %786 : vector<2x32xf32>
    %c7 = arith.constant 7 : index
    %c0_361 = arith.constant 0 : index
    %c0_362 = arith.constant 0 : index
    %788 = vector.load %arg2[%c7, %c0_361, %c0_362] : memref<8x2x1xf32, #tpu.memory_space<vmem>>, vector<1x2x1xf32>
    %789 = vector.shape_cast %788 : vector<1x2x1xf32> to vector<2x1xf32>
    %cst_363 = arith.constant 5.000000e-01 : f32
    %790 = vector.broadcast %cst_363 : f32 to vector<2x1xf32>
    %791 = arith.cmpf ogt, %789, %790 : vector<2x1xf32>
    %c7_364 = arith.constant 7 : index
    %c0_365 = arith.constant 0 : index
    %c0_366 = arith.constant 0 : index
    %792 = vector.load %arg3[%c7_364, %c0_365, %c0_366] : memref<8x2x1xf32, #tpu.memory_space<vmem>>, vector<1x2x1xf32>
    %793 = vector.shape_cast %792 : vector<1x2x1xf32> to vector<2x1xf32>
    %794 = vector.shape_cast %791 : vector<2x1xi1> to vector<2x1xi1>
    %795 = vector.broadcast %794 : vector<2x1xi1> to vector<2x32xi1>
    %796 = vector.shape_cast %793 : vector<2x1xf32> to vector<2x1xf32>
    %797 = vector.broadcast %796 : vector<2x1xf32> to vector<2x32xf32>
    %798 = arith.select %795, %787, %797 : vector<2x32xi1>, vector<2x32xf32>
    %c0_367 = arith.constant 0 : index
    %c7_368 = arith.constant 7 : index
    %c0_369 = arith.constant 0 : index
    %799 = vector.load %arg25[%c0_367, %c7_368, %c0_369] : memref<2x8x32xf32, #tpu.memory_space<vmem>>, vector<2x1x32xf32>
    %800 = vector.shape_cast %799 : vector<2x1x32xf32> to vector<2x32xf32>
    %801 = vector.shape_cast %798 : vector<2x32xf32> to vector<2x1x32xf32>
    tpu.vector_store %arg25[%c0_367, %c7_368, %c0_369], %801 {strides = array<i32>} : memref<2x8x32xf32, #tpu.memory_space<vmem>>, vector<2x1x32xf32>,
    %c0_370 = arith.constant 0 : index
    %c0_371 = arith.constant 0 : index
    %c0_372 = arith.constant 0 : index
    %802 = vector.load %arg26[%c0_370, %c0_371, %c0_372] : memref<2x2x32xf32, #tpu.memory_space<vmem>>, vector<1x2x32xf32>
    %803 = vector.shape_cast %802 : vector<1x2x32xf32> to vector<2x32xf32>
    %804 = vector.shape_cast %745 : vector<2x32xf32> to vector<1x2x32xf32>
    tpu.vector_store %arg26[%c0_370, %c0_371, %c0_372], %804 {strides = array<i32>} : memref<2x2x32xf32, #tpu.memory_space<vmem>>, vector<1x2x32xf32>,
    %c1_373 = arith.constant 1 : index
    %c0_374 = arith.constant 0 : index
    %c0_375 = arith.constant 0 : index
    %805 = vector.load %arg26[%c1_373, %c0_374, %c0_375] : memref<2x2x32xf32, #tpu.memory_space<vmem>>, vector<1x2x32xf32>
    %806 = vector.shape_cast %805 : vector<1x2x32xf32> to vector<2x32xf32>
    %807 = vector.shape_cast %787 : vector<2x32xf32> to vector<1x2x32xf32>
    tpu.vector_store %arg26[%c1_373, %c0_374, %c0_375], %807 {strides = array<i32>} : memref<2x2x32xf32, #tpu.memory_space<vmem>>, vector<1x2x32xf32>,
    return
  }
  func.func @transform_0(%arg0: i32) -> (i32, i32, i32) {
    %c0_i32 = arith.constant 0 : i32
    %c0_i32_0 = arith.constant 0 : i32
    %c0_i32_1 = arith.constant 0 : i32
    return %arg0, %c0_i32, %c0_i32_0 : i32, i32, i32
  }
  func.func @transform_1(%arg0: i32) -> (i32, i32, i32) {
    %c0_i32 = arith.constant 0 : i32
    %c0_i32_0 = arith.constant 0 : i32
    %c0_i32_1 = arith.constant 0 : i32
    return %arg0, %c0_i32, %c0_i32_0 : i32, i32, i32
  }
  func.func @transform_2(%arg0: i32) -> (i32, i32, i32) {
    %c0_i32 = arith.constant 0 : i32
    %c0_i32_0 = arith.constant 0 : i32
    %c0_i32_1 = arith.constant 0 : i32
    return %arg0, %c0_i32, %c0_i32_0 : i32, i32, i32
  }
  func.func @transform_3(%arg0: i32) -> (i32, i32) {
    %c0_i32 = arith.constant 0 : i32
    %c0_i32_0 = arith.constant 0 : i32
    %c0_i32_1 = arith.constant 0 : i32
    return %c0_i32, %c0_i32_0 : i32, i32
  }
  func.func @transform_4(%arg0: i32) -> (i32, i32) {
    %c0_i32 = arith.constant 0 : i32
    %c0_i32_0 = arith.constant 0 : i32
    %c0_i32_1 = arith.constant 0 : i32
    return %c0_i32, %c0_i32_0 : i32, i32
  }
  func.func @transform_5(%arg0: i32) -> (i32, i32) {
    %c0_i32 = arith.constant 0 : i32
    %c0_i32_0 = arith.constant 0 : i32
    %c0_i32_1 = arith.constant 0 : i32
    return %c0_i32, %c0_i32_0 : i32, i32
  }
  func.func @transform_6(%arg0: i32) -> (i32, i32) {
    %c0_i32 = arith.constant 0 : i32
    %c0_i32_0 = arith.constant 0 : i32
    %c0_i32_1 = arith.constant 0 : i32
    return %c0_i32, %c0_i32_0 : i32, i32
  }
  func.func @transform_7(%arg0: i32) -> (i32, i32) {
    %c0_i32 = arith.constant 0 : i32
    %c0_i32_0 = arith.constant 0 : i32
    %c0_i32_1 = arith.constant 0 : i32
    return %c0_i32, %c0_i32_0 : i32, i32
  }
  func.func @transform_8(%arg0: i32) -> (i32, i32) {
    %c0_i32 = arith.constant 0 : i32
    %c0_i32_0 = arith.constant 0 : i32
    %c0_i32_1 = arith.constant 0 : i32
    return %c0_i32, %c0_i32_0 : i32, i32
  }
  func.func @transform_9(%arg0: i32) -> (i32, i32) {
    %c0_i32 = arith.constant 0 : i32
    %c0_i32_0 = arith.constant 0 : i32
    %c0_i32_1 = arith.constant 0 : i32
    return %c0_i32, %c0_i32_0 : i32, i32
  }
  func.func @transform_10(%arg0: i32) -> (i32, i32) {
    %c0_i32 = arith.constant 0 : i32
    %c0_i32_0 = arith.constant 0 : i32
    %c0_i32_1 = arith.constant 0 : i32
    return %c0_i32, %c0_i32_0 : i32, i32
  }
  func.func @transform_11(%arg0: i32) -> (i32, i32) {
    %c0_i32 = arith.constant 0 : i32
    %c0_i32_0 = arith.constant 0 : i32
    %c0_i32_1 = arith.constant 0 : i32
    return %c0_i32, %c0_i32_0 : i32, i32
  }
  func.func @transform_12(%arg0: i32) -> (i32, i32) {
    %c0_i32 = arith.constant 0 : i32
    %c0_i32_0 = arith.constant 0 : i32
    %c0_i32_1 = arith.constant 0 : i32
    return %c0_i32, %c0_i32_0 : i32, i32
  }
  func.func @transform_13(%arg0: i32) -> (i32, i32) {
    %c0_i32 = arith.constant 0 : i32
    %c0_i32_0 = arith.constant 0 : i32
    %c0_i32_1 = arith.constant 0 : i32
    return %c0_i32, %c0_i32_0 : i32, i32
  }
  func.func @transform_14(%arg0: i32) -> (i32, i32) {
    %c0_i32 = arith.constant 0 : i32
    %c0_i32_0 = arith.constant 0 : i32
    %c0_i32_1 = arith.constant 0 : i32
    return %c0_i32, %c0_i32_0 : i32, i32
  }
  func.func @transform_15(%arg0: i32) -> (i32, i32) {
    %c0_i32 = arith.constant 0 : i32
    %c0_i32_0 = arith.constant 0 : i32
    %c0_i32_1 = arith.constant 0 : i32
    return %c0_i32, %c0_i32_0 : i32, i32
  }
  func.func @transform_16(%arg0: i32) -> (i32, i32) {
    %c0_i32 = arith.constant 0 : i32
    %c0_i32_0 = arith.constant 0 : i32
    %c0_i32_1 = arith.constant 0 : i32
    return %c0_i32, %c0_i32_0 : i32, i32
  }
  func.func @transform_17(%arg0: i32) -> (i32, i32) {
    %c0_i32 = arith.constant 0 : i32
    %c0_i32_0 = arith.constant 0 : i32
    %c0_i32_1 = arith.constant 0 : i32
    return %c0_i32, %c0_i32_0 : i32, i32
  }
  func.func @transform_18(%arg0: i32) -> (i32, i32) {
    %c0_i32 = arith.constant 0 : i32
    %c0_i32_0 = arith.constant 0 : i32
    %c0_i32_1 = arith.constant 0 : i32
    return %c0_i32, %c0_i32_0 : i32, i32
  }
  func.func @transform_19(%arg0: i32) -> (i32, i32) {
    %c0_i32 = arith.constant 0 : i32
    %c0_i32_0 = arith.constant 0 : i32
    %c0_i32_1 = arith.constant 0 : i32
    return %c0_i32, %c0_i32_0 : i32, i32
  }
  func.func @transform_20(%arg0: i32) -> (i32, i32) {
    %c0_i32 = arith.constant 0 : i32
    %c0_i32_0 = arith.constant 0 : i32
    %c0_i32_1 = arith.constant 0 : i32
    return %c0_i32, %c0_i32_0 : i32, i32
  }
  func.func @transform_21(%arg0: i32) -> (i32, i32) {
    %c0_i32 = arith.constant 0 : i32
    %c0_i32_0 = arith.constant 0 : i32
    %c0_i32_1 = arith.constant 0 : i32
    return %c0_i32, %c0_i32_0 : i32, i32
  }
  func.func @transform_22(%arg0: i32) -> (i32, i32) {
    %c0_i32 = arith.constant 0 : i32
    %c0_i32_0 = arith.constant 0 : i32
    %c0_i32_1 = arith.constant 0 : i32
    return %c0_i32, %c0_i32_0 : i32, i32
  }
  func.func @transform_23(%arg0: i32) -> (i32, i32) {
    %c0_i32 = arith.constant 0 : i32
    %c0_i32_0 = arith.constant 0 : i32
    %c0_i32_1 = arith.constant 0 : i32
    return %c0_i32, %c0_i32_0 : i32, i32
  }
  func.func @transform_24(%arg0: i32) -> (i32, i32, i32) {
    %c0_i32 = arith.constant 0 : i32
    %c0_i32_0 = arith.constant 0 : i32
    %c0_i32_1 = arith.constant 0 : i32
    return %c0_i32, %arg0, %c0_i32_0 : i32, i32, i32
  }
}

</mosaic_0001>

<bundles_post_ra>
// kernel: tpu_custom_call.1
= control target key start
LH: loop header
LB: loop body
LE: loop exit
PB: predicated region body
PF: predicated region fallthrough
CT: control target
= control target key end

     0   :  { %s9938_s0 = inlined_call_operand.vmem [shape: bf16[16,2,16], index: 0, kind: input, shape index: {}]   ;;  %s9939_s1 = inlined_call_operand.vmem [shape: f32[16,2,1], index: 1, kind: input, shape index: {}]   ;;  %s9940_s2 = inlined_call_operand.vmem [shape: f32[16,2,1], index: 2, kind: input, shape index: {}]   ;;  %s9941_s3 = inlined_call_operand.hbm [shape: f32[2,32], index: 3, kind: input, shape index: {}]   ;;  %s9942_s4 = inlined_call_operand.hbm [shape: bf16[16,32], index: 4, kind: input, shape index: {}]   ;;  %s9943_s5 = inlined_call_operand.hbm [shape: bf16[16,32], index: 5, kind: input, shape index: {}]   ;;  %s9944_s6 = inlined_call_operand.hbm [shape: bf16[16,32], index: 6, kind: input, shape index: {}]   ;;  %s9945_s7 = inlined_call_operand.vmem [shape: bf16[32,32], index: 7, kind: input, shape index: {}]   ;;  %s9946_s8 = inlined_call_operand.vmem [shape: bf16[32,32], index: 8, kind: input, shape index: {}]   ;;  %s9947_s9 = inlined_call_operand.vmem [shape: bf16[32,32], index: 9, kind: input, shape index: {}]   ;;  %s9948_s10 = inlined_call_operand.hbm [shape: f32[1,32], index: 10, kind: input, shape index: {}]   ;;  %s9949_s11 = inlined_call_operand.hbm [shape: f32[1,32], index: 11, kind: input, shape index: {}]   ;;  %s9950_s12 = inlined_call_operand.hbm [shape: f32[1,32], index: 12, kind: input, shape index: {}]   ;;  %s9951_s13 = inlined_call_operand.hbm [shape: f32[1,32], index: 13, kind: input, shape index: {}]   ;;  %s9952_s14 = inlined_call_operand.vmem [shape: bf16[32,32], index: 14, kind: input, shape index: {}]   ;;  %s9953_s15 = inlined_call_operand.vmem [shape: bf16[32,32], index: 15, kind: input, shape index: {}]   ;;  %s9954_s16 = inlined_call_operand.vmem [shape: bf16[32,32], index: 16, kind: input, shape index: {}]   ;;  %s9955_s17 = inlined_call_operand.vmem [shape: bf16[32,32], index: 17, kind: input, shape index: {}]   ;;  %s9956_s18 = inlined_call_operand.hbm [shape: bf16[32,32], index: 18, kind: input, shape index: {}]   ;;  %s9957_s19 = inlined_call_operand.hbm [shape: bf16[32,32], index: 19, kind: input, shape index: {}]   ;;  %s9958_s20 = inlined_call_operand.vmem [shape: f32[1,32], index: 20, kind: input, shape index: {}]   ;;  %s9959_s21 = inlined_call_operand.vmem [shape: f32[1,32], index: 21, kind: input, shape index: {}]   ;;  %s9960_s22 = inlined_call_operand.vmem [shape: f32[1,32], index: 22, kind: input, shape index: {}]   ;;  %s9961_s23 = inlined_call_operand.vmem [shape: f32[1,32], index: 23, kind: input, shape index: {}]   ;;  %s9962_s24 = inlined_call_operand.hbm [shape: f32[2,16,32], index: 24, kind: output, shape index: {}]  }
   0x1   :  { %9994 = sst [smem:[#allocation35_spill]] %s9938_s0 }
   0x2   :  { %9995 = sst [smem:[#allocation36_spill]] %s9939_s1 }
   0x3   :  { %9996 = sst [smem:[#allocation37_spill]] %s9940_s2 }
   0x4   :  { %9997 = sst [smem:[#allocation38_spill]] %s9941_s3 }
   0x5   :  { %9998 = sst [smem:[#allocation39_spill]] %s9942_s4 }
   0x6   :  { %9999 = sst [smem:[#allocation40_spill]] %s9943_s5 }
   0x7   :  { %10000 = sst [smem:[#allocation41_spill]] %s9944_s6 }
   0x8   :  { %10001 = sst [smem:[#allocation42_spill]] %s9945_s7 }
   0x9   :  { %10002 = sst [smem:[#allocation43_spill]] %s9946_s8 }
   0xa   :  { %10003 = sst [smem:[#allocation44_spill]] %s9949_s11 }
   0xb   :  { %10004 = sst [smem:[#allocation45_spill]] %s9951_s13 }
   0xc   :  { %10005 = sst [smem:[#allocation46_spill]] %s9953_s15 }
   0xd   :  { %10006 = sst [smem:[#allocation47_spill]] %s9958_s20 }
   0xe   :  { %10007 = sst [smem:[#allocation48_spill]] %s9959_s21 }
   0xf   :  { %10008 = sst [smem:[#allocation49_spill]] %s9960_s22 }
  0x10   :  { %10009 = sst [smem:[#allocation50_spill]] %s9961_s23 }
  0x11   :  { %10010 = sst [smem:[#allocation51_spill]] %s9962_s24 }
  0x12   :  { %29 = vsyncpa [#allocation4], 0 }
  0x13   :  { %30 = vsyncpa [#allocation7], 0 }
  0x14   :  { %31 = vsyncpa [#allocation10], 0 }
  0x15   :  { %32 = vsyncpa [#allocation13], 0 }
  0x16   :  { %33 = vsyncpa [#allocation16], 0 }
  0x17   :  { %34 = vsyncpa [#allocation19], 0 }
  0x18   :  { %35 = vsyncpa [#allocation5], 0 }
  0x19   :  { %37 = vsyncpa [#allocation5 + $0x1], 0  ;;  %s8447_s5 = smov 0   ;;  %s8449_s26 = smov 0  }
  0x1a   :  { %s8451_s27 = smov 0   ;;  %s8453_s28 = smov 0  }
  0x1b LB: > { %10011 = sst [smem:[#allocation28_spill]] %s8287_s5  ;;  %s8468_s6 = sadd.s32 4294967295, %s8299_s28   ;;  %s8299_s28 = sphi %s8453_s28, %s10064_s28   ;;  %s8295_s27 = sphi %s8451_s27, %s10066_s27   ;;  %s8291_s26 = sphi %s8449_s26, %s10068_s26   ;;  %s8287_s5 = sphi %s8447_s5, %s10067_s5  }
  0x1c   : > { %10012 = sst [smem:[#allocation29_spill]] %s8295_s27  ;;  %s6333_s2 = sadd.s32 4294967294, %s8299_s28  }
  0x1d   : > { %10013 = sst [smem:[#allocation30_spill]] %s8299_s28  ;;  %s8472_s29 = sadd.s32 1, %s8299_s28  }
  0x1e   : > { %10014 = sst [smem:[#allocation31_spill]] %s8472_s29  ;;  %s569_s0 = sadd.s32 1, %s8295_s27 }
  0x1f   : > { %s566_s7 = ssub.s32 %s8299_s28, %s8472_s29  ;;  %p579_p0 = scmp.ne.s32.totalorder %s8295_s27, %s8291_s26 }
  0x20   : > { %p567_p1 = scmp.eq.s32.totalorder %s566_s7, 0  ;;  %p580_p2 = scmp.eq.s32.totalorder %s8468_s6, 1 }
  0x21   : > { %p585_p3 = scmp.ne.s32.totalorder %s8291_s26, %s8287_s5  ;;  %p586_p4 = scmp.eq.s32.totalorder %s6333_s2, 1 }
  0x22   : > { %s8483_s30 = scalar_select %p567_p1, %s8295_s27, %s569_s0  }
  0x23   : > { %p8485_p5 = por %p580_p2, %p579_p0  ;;  %p8489_p6 = por %p586_p4, %p585_p3 }
  0x24   : > { %10015 = sst [smem:[#allocation32_spill]] %s8483_s30  ;;  %p6334_p7 = scmp.ge.s32.totalorder %s8299_s28, 1 }
  0x25   : > { %s10016_s3 = scalar_select %p8485_p5, 1, 0 }
  0x26   : > { %s10018_s25 = scalar_select %p8489_p6, 1, 0 }
  0x27   : > { %10017 = sst [smem:[#allocation33_spill]] %s10016_s3  ;;  %p593_p8 = scmp.lt.s32.totalorder %s8299_s28, 3 }
  0x28   : > { %10019 = sst [smem:[#allocation34_spill]] %s10018_s25  ;;  %p9978_p10 = scmp.eq.s32.totalorder %s8468_s6, 0 }
  0x29   : > { %p8497_p11 = pnand %p6334_p7, %p593_p8  ;;  %s8301_s4 = smov [#allocation6]  }
  0x2a   : > { %s616_s1 = sshll.u32 %s8301_s4, 4  ;;  %s8302_s0 = smov [#allocation9]   ;;  %s8503_s1 = int_to_ptr.vmem [resolvable:$true] %s616_s1 }
  0x2b   : > { %s10020_s8 = scalar_select %p8497_p11, 1, 0 }
  0x2c   : > { %p7502_p12 = pneg %p8497_p11  ;;  %s642_s7 = sshll.u32 %s8302_s0, 4  ;;  %s8511_s7 = int_to_ptr.vmem [resolvable:$true] %s642_s7 }
  0x2d   : > { %s8303_s30 = smov [#allocation12]   ;;  %s10022_s4 = sld [smem:[#allocation39_spill]] }
  0x2e   : > { %p8507_p13 = pnand %p9978_p10, %p7502_p12  ;;  %s8513_s27 = sshll.u32 %s8303_s30, 4  ;;  %s677_s27 = int_to_ptr.vmem [resolvable:$true] %s8513_s27 }
  0x30   : > { %p8523_p1 = pneg %p8507_p13 }
  0x33   : > { %s7933_s5 = scalar_lea.hbm %s10022_s4, 128 }
  0x34   : > { %p7934_p0 = scmp.ne.s32.totalorder %s10022_s4, %s7933_s5  ;;  %p7940_p4 = scmp.lt.u32.totalorder %s7933_s5, %s10022_s4 }
  0x36   : > { %p7936_p2 = pnand %p8523_p1, %p7934_p0 }
  0x38   : > { %p7937_p3 = pneg %p7936_p2 }
  0x3a   : > { %p7942_p7 = pnand %p7940_p4, %p7937_p3 }
  0x3c   : > { %7945 = shalt.err (!%p7942_p7)
}
  0x3d   : > { %s7946_s24 = scalar_lea.vmem %s8503_s1, 128  ;;  %p7954_p10 = scmp.lt.s32.totalorder %s8503_s1, %s8503_s1 }
  0x3e   : > { %p7947_p8 = scmp.ne.s32.totalorder %s8503_s1, %s7946_s24  ;;  %p7955_p6 = scmp.lt.s32.totalorder %s7946_s24, %s7946_s24 }
  0x40   : > { %p7949_p12 = pnand %p7947_p8, %p8523_p1  ;;  %p7956_p0 = por %p7955_p6, %p7954_p10 }
  0x42   : > { %p7950_p9 = pneg %p7949_p12 }
  0x44   : > { %p7957_p2 = pnand %p7956_p0, %p7950_p9 }
  0x46   : > { %7960 = shalt.err (!%p7957_p2)
}
  0x47   : > { %s9986_s28 = smov 64   ;;  %s9988_s5 = smov 4  }
  0x48   : > { %7508 = dma.hbm_to_vmem [thread:$0]  (!%p8507_p13), %s10022_s4, 128, %s8503_s1, [#allocation7], %s9986_s28, %s9986_s28, %s9988_s5  }
  0x49   : > { %s10024_s22 = sld [smem:[#allocation41_spill]] }
  0x4f   : > { %s7961_s24 = scalar_lea.hbm %s10024_s22, 128 }
  0x50   : > { %p7962_p6 = scmp.ne.s32.totalorder %s10024_s22, %s7961_s24  ;;  %p7968_p3 = scmp.lt.u32.totalorder %s7961_s24, %s10024_s22 }
  0x52   : > { %p7964_p9 = pnand %p7962_p6, %p8523_p1 }
  0x54   : > { %p7965_p10 = pneg %p7964_p9 }
  0x56   : > { %p7970_p4 = pnand %p7968_p3, %p7965_p10 }
  0x58   : > { %7973 = shalt.err (!%p7970_p4)
}
  0x59   : > { %s7974_s1 = scalar_lea.vmem %s8511_s7, 128  ;;  %p7982_p0 = scmp.lt.s32.totalorder %s8511_s7, %s8511_s7 }
  0x5a   : > { %p7975_p7 = scmp.ne.s32.totalorder %s8511_s7, %s7974_s1  ;;  %p7983_p2 = scmp.lt.s32.totalorder %s7974_s1, %s7974_s1 }
  0x5c   : > { %p7977_p8 = pnand %p7975_p7, %p8523_p1  ;;  %p7984_p6 = por %p7983_p2, %p7982_p0 }
  0x5e   : > { %p7978_p12 = pneg %p7977_p8 }
  0x60   : > { %p7985_p9 = pnand %p7984_p6, %p7978_p12 }
  0x62   : > { %7988 = shalt.err (!%p7985_p9)
}
  0x63   : > { %7514 = dma.hbm_to_vmem [thread:$0]  (!%p8507_p13), %s10024_s22, 128, %s8511_s7, [#allocation10], %s9986_s28, %s9986_s28, %s9988_s5  }
  0x64   : > { %s10025_s11 = sld [smem:[#allocation44_spill]] }
  0x6a   : > { %s7989_s29 = scalar_lea.hbm %s10025_s11, 16 }
  0x6b   : > { %p7990_p10 = scmp.ne.s32.totalorder %s10025_s11, %s7989_s29  ;;  %p7996_p7 = scmp.lt.u32.totalorder %s7989_s29, %s10025_s11 }
  0x6d   : > { %p7992_p3 = pnand %p7990_p10, %p8523_p1 }
  0x6f   : > { %p7993_p4 = pneg %p7992_p3 }
  0x71   : > { %p7998_p8 = pnand %p7996_p7, %p7993_p4 }
  0x73   : > { %8001 = shalt.err (!%p7998_p8)
}
  0x74   : > { %s8002_s1 = scalar_lea.vmem %s677_s27, 16  ;;  %s8009_s7 = scalar_lea.vmem %s677_s27, 32 }
  0x75   : > { %p8003_p12 = scmp.ne.s32.totalorder %s677_s27, %s8002_s1  ;;  %p8010_p6 = scmp.lt.s32.totalorder %s677_s27, %s677_s27 }
  0x76   : > { %p8011_p9 = scmp.lt.s32.totalorder %s8009_s7, %s8002_s1 }
  0x77   : > { %p8005_p0 = pnand %p8003_p12, %p8523_p1 }
  0x78   : > { %p8012_p5 = por %p8011_p9, %p8010_p6 }
  0x79   : > { %p8006_p2 = pneg %p8005_p0 }
  0x7b   : > { %p8013_p11 = pnand %p8012_p5, %p8006_p2 }
  0x7d   : > { %8016 = shalt.err (!%p8013_p11)
}
  0x7e   : > { %7520 = dma.hbm_to_vmem [thread:$0]  (!%p8507_p13), %s10025_s11, 16, %s677_s27, [#allocation13]  }
  0x7f   : > { %s8306_s21 = smov [#allocation15]   ;;  %s8307_s29 = smov [#allocation3]  }
  0x80   : > { %s698_s23 = sshll.u32 %s8306_s21, 4  ;;  %s606_s25 = sshll.u32 %s8307_s29, 4  ;;  %s699_s23 = int_to_ptr.vmem [resolvable:$true] %s698_s23  ;;  %s607_s25 = int_to_ptr.vmem [resolvable:$true] %s606_s25 }
  0x81   : > { %s10026_s13 = sld [smem:[#allocation45_spill]] }
  0x87   : > { %s8017_s24 = scalar_lea.hbm %s10026_s13, 16 }
  0x88   : > { %p8018_p5 = scmp.ne.s32.totalorder %s10026_s13, %s8017_s24  ;;  %p8024_p3 = scmp.lt.u32.totalorder %s8017_s24, %s10026_s13 }
  0x8a   : > { %p8020_p11 = pnand %p8018_p5, %p8523_p1 }
  0x8c   : > { %p8021_p10 = pneg %p8020_p11 }
  0x8e   : > { %p8026_p4 = pnand %p8024_p3, %p8021_p10 }
  0x90   : > { %8029 = shalt.err (!%p8026_p4)
}
  0x91   : > { %s8030_s27 = scalar_lea.vmem %s699_s23, 16  ;;  %s8037_s20 = scalar_lea.vmem %s699_s23, 32 }
  0x92   : > { %p8031_p7 = scmp.ne.s32.totalorder %s699_s23, %s8030_s27  ;;  %p8038_p0 = scmp.lt.s32.totalorder %s699_s23, %s699_s23 }
  0x93   : > { %p8039_p2 = scmp.lt.s32.totalorder %s8037_s20, %s8030_s27 }
  0x94   : > { %p8033_p8 = pnand %p8031_p7, %p8523_p1 }
  0x95   : > { %p8040_p6 = por %p8039_p2, %p8038_p0 }
  0x96   : > { %p8034_p12 = pneg %p8033_p8 }
  0x98   : > { %p8041_p9 = pnand %p8040_p6, %p8034_p12 }
  0x9a   : > { %8044 = shalt.err (!%p8041_p9)
}
  0x9b   : > { %7526 = dma.hbm_to_vmem [thread:$0]  (!%p8507_p13), %s10026_s13, 16, %s699_s23, [#allocation16]  }
  0x9c   : > { %s10027_s30 = sld [smem:[#allocation38_spill]] }
  0xa2   : > { %s8045_s24 = scalar_lea.hbm %s10027_s30, 32 }
  0xa3   : > { %p8046_p5 = scmp.ne.s32.totalorder %s10027_s30, %s8045_s24  ;;  %p8052_p3 = scmp.lt.u32.totalorder %s8045_s24, %s10027_s30 }
  0xa5   : > { %p8048_p11 = pnand %p8046_p5, %p8523_p1 }
  0xa7   : > { %p8049_p10 = pneg %p8048_p11 }
  0xa9   : > { %p8054_p4 = pnand %p8052_p3, %p8049_p10 }
  0xab   : > { %8057 = shalt.err (!%p8054_p4)
}
  0xac   : > { %s8058_s20 = scalar_lea.vmem %s607_s25, 32  ;;  %p8066_p0 = scmp.lt.s32.totalorder %s607_s25, %s607_s25 }
  0xad   : > { %p8059_p7 = scmp.ne.s32.totalorder %s607_s25, %s8058_s20  ;;  %p8067_p2 = scmp.lt.s32.totalorder %s8058_s20, %s8058_s20 }
  0xaf   : > { %p8061_p8 = pnand %p8059_p7, %p8523_p1  ;;  %p8068_p6 = por %p8067_p2, %p8066_p0 }
  0xb1   : > { %p8062_p12 = pneg %p8061_p8 }
  0xb3   : > { %p8069_p9 = pnand %p8068_p6, %p8062_p12 }
  0xb5   : > { %8072 = shalt.err (!%p8069_p9)
}
  0xb6   : > { %7505 = dma.hbm_to_vmem [thread:$0]  (!%p8507_p13), %s10027_s30, 32, %s607_s25, [#allocation4]  }
  0xb7   : > { %s8308_s29 = smov [#allocation8]   ;;  %s8309_s0 = smov [#allocation11]  }
  0xb8   : > { %s629_s28 = sshll.u32 %s8308_s29, 4  ;;  %s665_s24 = sshll.u32 %s8309_s0, 4  ;;  %s630_s28 = int_to_ptr.vmem [resolvable:$true] %s629_s28  ;;  %s666_s24 = int_to_ptr.vmem [resolvable:$true] %s665_s24 }
  0xb9   : > { %s10028_s15 = sld [smem:[#allocation40_spill]] }
  0xbf   : > { %s8073_s27 = scalar_lea.hbm %s10028_s15, 128 }
  0xc0   : > { %p8074_p5 = scmp.ne.s32.totalorder %s10028_s15, %s8073_s27  ;;  %p8080_p3 = scmp.lt.u32.totalorder %s8073_s27, %s10028_s15 }
  0xc2   : > { %p8076_p11 = pnand %p8074_p5, %p8523_p1 }
  0xc4   : > { %p8077_p10 = pneg %p8076_p11 }
  0xc6   : > { %p8082_p4 = pnand %p8080_p3, %p8077_p10 }
  0xc8   : > { %8085 = shalt.err (!%p8082_p4)
}
  0xc9   : > { %s8086_s25 = scalar_lea.vmem %s630_s28, 128  ;;  %p8094_p0 = scmp.lt.s32.totalorder %s630_s28, %s630_s28 }
  0xca   : > { %p8087_p7 = scmp.ne.s32.totalorder %s630_s28, %s8086_s25  ;;  %p8095_p2 = scmp.lt.s32.totalorder %s8086_s25, %s8086_s25 }
  0xcc   : > { %p8089_p8 = pnand %p8087_p7, %p8523_p1  ;;  %p8096_p6 = por %p8095_p2, %p8094_p0 }
  0xce   : > { %p8090_p12 = pneg %p8089_p8 }
  0xd0   : > { %p8097_p9 = pnand %p8096_p6, %p8090_p12 }
  0xd2   : > { %8100 = shalt.err (!%p8097_p9)
}
  0xd3   : > { %s10029_s5 = smov 4   ;;  %s10030_s21 = smov 64  }
  0xd4   : > { %7511 = dma.hbm_to_vmem [thread:$0]  (!%p8507_p13), %s10028_s15, 128, %s630_s28, [#allocation7], %s10030_s21, %s10030_s21, %s10029_s5  }
  0xd5   : > { %s8101_s7 = scalar_lea.hbm %s9948_s10, 16 }
  0xd6   : > { %p8102_p5 = scmp.ne.s32.totalorder %s9948_s10, %s8101_s7  ;;  %p8108_p3 = scmp.lt.u32.totalorder %s8101_s7, %s9948_s10 }
  0xd8   : > { %p8104_p11 = pnand %p8102_p5, %p8523_p1 }
  0xda   : > { %p8105_p10 = pneg %p8104_p11 }
  0xdc   : > { %p8110_p4 = pnand %p8108_p3, %p8105_p10 }
  0xde   : > { %8113 = shalt.err (!%p8110_p4)
}
  0xdf   : > { %s8114_s4 = scalar_lea.vmem %s666_s24, 16  ;;  %s8121_s28 = scalar_lea.vmem %s666_s24, 32 }
  0xe0   : > { %p8115_p7 = scmp.ne.s32.totalorder %s666_s24, %s8114_s4  ;;  %p8122_p0 = scmp.lt.s32.totalorder %s666_s24, %s666_s24 }
  0xe1   : > { %p8123_p2 = scmp.lt.s32.totalorder %s8121_s28, %s8114_s4 }
  0xe2   : > { %p8117_p8 = pnand %p8115_p7, %p8523_p1 }
  0xe3   : > { %p8124_p6 = por %p8123_p2, %p8122_p0 }
  0xe4   : > { %p8118_p12 = pneg %p8117_p8 }
  0xe6   : > { %p8125_p9 = pnand %p8124_p6, %p8118_p12 }
  0xe8   : > { %8128 = shalt.err (!%p8125_p9)
}
  0xe9   : > { %7517 = dma.hbm_to_vmem [thread:$0]  (!%p8507_p13), %s9948_s10, 16, %s666_s24, [#allocation10]  }
  0xea   : > { %s8310_s1 = smov [#allocation14]   ;;  %s8311_s27 = smov [#allocation17]  }
  0xeb   : > { %s687_s7 = sshll.u32 %s8310_s1, 4  ;;  %s720_s20 = sshll.u32 %s8311_s27, 4  ;;  %s688_s7 = int_to_ptr.vmem [resolvable:$true] %s687_s7  ;;  %s721_s20 = int_to_ptr.vmem [resolvable:$true] %s720_s20 }
  0xec   : > { %s8129_s11 = scalar_lea.hbm %s9950_s12, 16 }
  0xed   : > { %p8130_p5 = scmp.ne.s32.totalorder %s9950_s12, %s8129_s11  ;;  %p8136_p3 = scmp.lt.u32.totalorder %s8129_s11, %s9950_s12 }
  0xef   : > { %p8132_p11 = pnand %p8130_p5, %p8523_p1 }
  0xf1   : > { %p8133_p10 = pneg %p8132_p11 }
  0xf3   : > { %p8138_p4 = pnand %p8136_p3, %p8133_p10 }
  0xf5   : > { %8141 = shalt.err (!%p8138_p4)
}
  0xf6   : > { %s8142_s24 = scalar_lea.vmem %s688_s7, 16  ;;  %s8149_s0 = scalar_lea.vmem %s688_s7, 32 }
  0xf7   : > { %p8143_p7 = scmp.ne.s32.totalorder %s688_s7, %s8142_s24  ;;  %p8150_p0 = scmp.lt.s32.totalorder %s688_s7, %s688_s7 }
  0xf8   : > { %p8151_p2 = scmp.lt.s32.totalorder %s8149_s0, %s8142_s24 }
  0xf9   : > { %p8145_p8 = pnand %p8143_p7, %p8523_p1 }
  0xfa   : > { %p8152_p6 = por %p8151_p2, %p8150_p0 }
  0xfb   : > { %p8146_p12 = pneg %p8145_p8 }
  0xfd   : > { %p8153_p9 = pnand %p8152_p6, %p8146_p12 }
  0xff   : > { %8156 = shalt.err (!%p8153_p9)
}
 0x100   : > { %7523 = dma.hbm_to_vmem [thread:$0]  (!%p8507_p13), %s9950_s12, 16, %s688_s7, [#allocation13]  }
 0x101   : > { %s8157_s23 = scalar_lea.hbm %s9956_s18, 256 }
 0x102   : > { %p8158_p5 = scmp.ne.s32.totalorder %s9956_s18, %s8157_s23  ;;  %p8164_p3 = scmp.lt.u32.totalorder %s8157_s23, %s9956_s18 }
 0x104   : > { %p8160_p11 = pnand %p8158_p5, %p8523_p1 }
 0x106   : > { %p8161_p10 = pneg %p8160_p11 }
 0x108   : > { %p8166_p4 = pnand %p8164_p3, %p8161_p10 }
 0x10a   : > { %8169 = shalt.err (!%p8166_p4)
}
 0x10b   : > { %s8170_s24 = scalar_lea.vmem %s721_s20, 256  ;;  %p8178_p0 = scmp.lt.s32.totalorder %s721_s20, %s721_s20 }
 0x10c   : > { %p8171_p7 = scmp.ne.s32.totalorder %s721_s20, %s8170_s24  ;;  %p8179_p2 = scmp.lt.s32.totalorder %s8170_s24, %s8170_s24 }
 0x10e   : > { %p8173_p8 = pnand %p8171_p7, %p8523_p1  ;;  %p8180_p6 = por %p8179_p2, %p8178_p0 }
 0x110   : > { %p8174_p12 = pneg %p8173_p8 }
 0x112   : > { %p8181_p9 = pnand %p8180_p6, %p8174_p12 }
 0x114   : > { %8184 = shalt.err (!%p8181_p9)
}
 0x115   : > { %7529 = dma.hbm_to_vmem [thread:$0]  (!%p8507_p13), %s9956_s18, 256, %s721_s20, [#allocation16], %s10030_s21, %s10030_s21, %s10029_s5  }
 0x116   : > { %s8312_s1 = smov [#allocation18]   ;;  %s8185_s23 = scalar_lea.hbm %s9957_s19, 256 }
 0x117   : > { %s733_s27 = sshll.u32 %s8312_s1, 4  ;;  %p8186_p5 = scmp.ne.s32.totalorder %s9957_s19, %s8185_s23  ;;  %s734_s27 = int_to_ptr.vmem [resolvable:$true] %s733_s27 }
 0x118   : > { %p8192_p3 = scmp.lt.u32.totalorder %s8185_s23, %s9957_s19 }
 0x119   : > { %p8188_p11 = pnand %p8186_p5, %p8523_p1 }
 0x11b   : > { %p8189_p10 = pneg %p8188_p11 }
 0x11d   : > { %p8194_p4 = pnand %p8192_p3, %p8189_p10 }
 0x11f   : > { %8197 = shalt.err (!%p8194_p4)
}
 0x120   : > { %s8198_s20 = scalar_lea.vmem %s734_s27, 256  ;;  %p8206_p0 = scmp.lt.s32.totalorder %s734_s27, %s734_s27 }
 0x121   : > { %p8199_p7 = scmp.ne.s32.totalorder %s734_s27, %s8198_s20  ;;  %p8207_p2 = scmp.lt.s32.totalorder %s8198_s20, %s8198_s20 }
 0x123   : > { %p8201_p8 = pnand %p8199_p7, %p8523_p1  ;;  %p8208_p6 = por %p8207_p2, %p8206_p0 }
 0x125   : > { %p8202_p12 = pneg %p8201_p8 }
 0x127   : > { %p8209_p9 = pnand %p8208_p6, %p8202_p12 }
 0x129   : > { %8212 = shalt.err (!%p8209_p9)
}
 0x12a   : > { %7532 = dma.hbm_to_vmem [thread:$0]  (!%p8507_p13), %s9957_s19, 256, %s734_s27, [#allocation19], %s10030_s21, %s10030_s21, %s10029_s5  }
 0x12b   : > { %p10031_p5 = scmp.ne.s32.totalorder %s10020_s8, 0 }
 0x12c   : > { %p10032_p1 = scmp.eq.s32.totalorder (!%p10031_p5), %s8468_s6, 0 }
 0x12d   : > { %787 = sbr.rel (%p10031_p5) target bundleno = 2837 (0xb15), region = 116 }
 0x134   : > { %8258 = dma.done.wait (%p10032_p1), [#allocation4], 32   ;;  %p10033_p11 = pmov %p10032_p1 }
 0x135   : > { %p10034_p10 = pmov %p10032_p1 }
 0x136   : > { %8260 = vsyncadd (%p10033_p11), [#allocation4], 4294967264 }
 0x137   : > { %8262 = dma.done.wait (%p10034_p10), [#allocation7], 256   ;;  %p10035_p3 = pmov %p10032_p1 }
 0x138   : > { %p10036_p4 = pmov %p10032_p1 }
 0x139   : > { %8264 = vsyncadd (%p10035_p3), [#allocation7], 4294967040 }
 0x13a   : > { %8266 = dma.done.wait (%p10036_p4), [#allocation10], 144   ;;  %p10037_p13 = pmov %p10032_p1 }
 0x13b   : > { %p10038_p7 = pmov %p10032_p1 }
 0x13c   : > { %8268 = vsyncadd (%p10037_p13), [#allocation10], 4294967152 }
 0x13d   : > { %8270 = dma.done.wait (%p10038_p7), [#allocation13], 32   ;;  %p10039_p8 = pmov %p10032_p1 }
 0x13e   : > { %p10040_p12 = pmov %p10032_p1 }
 0x13f   : > { %8272 = vsyncadd (%p10039_p8), [#allocation13], 4294967264 }
 0x140   : > { %8274 = dma.done.wait (%p10040_p12), [#allocation16], 272   ;;  %p10041_p0 = pmov %p10032_p1 }
 0x142   : > { %8276 = vsyncadd (%p10041_p0), [#allocation16], 4294967024  ;;  %p10042_p2 = pmov %p10041_p0 }
 0x143   : > { %p10043_p6 = pmov %p10041_p0 }
 0x144   : > { %8278 = dma.done.wait (%p10042_p2), [#allocation19], 256  }
 0x145   : > { %8280 = vsyncadd (%p10043_p6), [#allocation19], 4294967040  ;;  %s895_s3 = sand.u32 1, %s8291_s26   ;;  %s6358_s8 = sshll.u32 %s8468_s6, 3 }
 0x146   : > { %s6357_s2 = sshll.u32 %s895_s3, 4  ;;  %p899_p9 = scmp.lt.s32.totalorder %s6358_s8, 15 }
 0x147   : > { %s10044_s0 = sld [smem:[#allocation35_spill]]  ;;  %s10045_s23 = sld [smem:[#allocation36_spill]] }
 0x148   : > { %s10070_s8 = smov (!%p899_p9, %s6358_s8), 15  ;;  %s10046_s29 = sld [smem:[#allocation37_spill]] }
 0x149   : > { %s6360_s27 = sshll.u32 %s10070_s8, 1  ;;  %s8770_s24 = scalar_lea.vmem [#allocation20], %s6357_s2 }
 0x14a   : > { %p10047_p5 = scmp.ne.s32.totalorder %s8468_s6, 0 }
 0x14b   : > { %v920_v0 = vld [vmem:[#allocation3] sm:$0x3] (!%p10047_p5)  ;;  %vm921_vm0 = vcmask (!%p10047_p5), 254976  }
 0x14c   : > { %919 = sbr.rel (%p10047_p5) target bundleno = 339 (0x153), region = 160  ;;  %922 = vst.msk [vmem:[#allocation2] sm:$0x3] (!%p10047_p5), %vm921_vm0, %v920_v0  ;;  %924 = vst.msk [vmem:[#allocation2 + $0x2] sm:$0x3] (!%p10047_p5), %vm921_vm0, %v920_v0 }
 0x14d   : > { %s901_s1 = scalar_lea.vmem %s10044_s0, %s10070_s8  ;;  %s8763_s25 = scalar_lea.vmem %s10045_s23, %s6360_s27 }
 0x14e   : > { %s8768_s20 = scalar_lea.vmem %s10046_s29, %s6360_s27 }
 0x153 PF: > { %v7612_v1 = vld [vmem:[#allocation8] sm:$0xff]   ;;  %v8313_v2 = vmov 0.0   ;;  %v7613_v3 = vld [vmem:[#allocation6] sm:$0xff]   ;;  %v958_v4 = vlaneseq  ;;  %vm8314_vm1 = vmmov 0   ;;  %v933_v5 = vld [vmem:[%s901_s1] sm:$0x1] }
 0x154   : > { %6872 = vmatprep.subr.bf16.mxu1 %v8313_v2  ;;  %6866 = vmatprep.subr.bf16.mxu0 %v8313_v2  ;;  %v934_v6 = vld [vmem:[%s901_s1 + $0x1] sm:$0x1]  ;;  %v935_v7 = vld [vmem:[%s901_s1 + $0x2] sm:$0x1]  ;;  %v936_v8 = vld [vmem:[%s901_s1 + $0x3] sm:$0x1] }
 0x155   : > { %6873 = vmatpush3.bf16.msra.mxu1 %v7612_v1  ;;  %6868 = vmatprep.mubr.msk.bf16.mxu0 %vm8314_vm1, %v8313_v2  ;;  %v937_v9 = vld [vmem:[%s901_s1 + $0x4] sm:$0x1]  ;;  %v938_v10 = vld [vmem:[%s901_s1 + $0x5] sm:$0x1]  ;;  %v939_v11 = vld [vmem:[%s901_s1 + $0x6] sm:$0x1]  ;;  %v951_v16 = vcombine.low %v933_v5, %v934_v6  ;;  %v952_v17 = vcombine.low %v935_v7, %v936_v8 }
 0x156   : > { %6867 = vmatpush3.bf16.msra.mxu0 %v7613_v3  ;;  %6874 = vmatprep.mubr.msk.bf16.mxu1 %vm8314_vm1, %v8313_v2  ;;  %v940_v12 = vld [vmem:[%s901_s1 + $0x7] sm:$0x1]  ;;  %v8315_v13 = vmov 1966171168   ;;  %v8782_v15 = vshrl.u32 %v958_v4, 7  ;;  %v953_v18 = vcombine.low %v937_v9, %v938_v10  ;;  %vm1006_vm2 = vcmask 130048  }
 0x157   : > { %6884 = vmatprep.subr.bf16.mxu1 %v8313_v2  ;;  %6878 = vmatprep.subr.bf16.mxu0 %v8313_v2  ;;  %v956_v14 = vunpack.c.l.s4 %v8315_v13  ;;  %v954_v19 = vcombine.low %v939_v11, %v940_v12  ;;  %s10048_s2 = sld [smem:[#allocation42_spill]]  ;;  %v7616_v29 = vld [vmem:[#allocation9] sm:$0xff]   ;;  %vm1301_vm3 = vcmask 261120   ;;  %v8799_v34 = vld [vmem:[#allocation2] sm:$0x3]  ;;  %s10049_s27 = sld [smem:[#allocation43_spill]] }
 0x158   : > { %v1284_v36 = vpack.c.bf16 %v8799_v34, %v8799_v34  ;;  %v7619_v37 = vld [vmem:[%s9947_s9] sm:$0xff]   ;;  %v7620_v39 = vld [vmem:[%s9947_s9 + $0x8] sm:$0xff]   ;;  %v8316_v52 = vmov 0   ;;  %v8317_v60 = vmov 1983009808   ;;  %s10051_s21 = sld [smem:[#allocation46_spill]] }
 0x159   : > { %v957_v20 = vunpack.c.0.s8 %v956_v14  ;;  %v7621_v40 = vld [vmem:[%s9955_s17] sm:$0xff]   ;;  %v7622_v41 = vld [vmem:[%s9955_s17 + $0x8] sm:$0xff]   ;;  %7610 = vset.pattern.permute.xlu0 %v8316_v52  ;;  %7611 = vset.pattern.permute.xlu1 %v8316_v52  ;;  %v1055_v61 = vunpack.c.l.s4 %v8317_v60  ;;  %s10054_s4 = sld [smem:[#allocation48_spill]]  ;;  %s10055_s7 = sld [smem:[#allocation50_spill]]  ;;  %vm1933_vm13 = vcmask 253952  }
 0x15a   : > { %v8847_v42 = vld [vmem:[#allocation2 + $0x2] sm:$0x3]  ;;  %v7623_v44 = vld [vmem:[#allocation17] sm:$0xff]   ;;  %v7624_v45 = vld [vmem:[#allocation17 + $0x8] sm:$0xff]   ;;  %s10056_s0 = sld [smem:[#allocation49_spill]]  ;;  %s6641_s5 = sshll.u32 %s8468_s6, 7 }
 0x15b   : > { %v8785_v21 = vsub.s32 %v957_v20, %v8782_v15  ;;  %v8851_v43 = vpack.c.bf16 %v8847_v42, %v8847_v42  ;;  %v7625_v46 = vld [vmem:[%s9952_s14] sm:$0xff]   ;;  %v7627_v48 = vld [vmem:[%s9952_s14 + $0x8] sm:$0xff]   ;;  %v1056_v62 = vunpack.c.0.s8 %v1055_v61  ;;  %s10057_s8 = sld [smem:[#allocation33_spill]]  ;;  %s6152_s1 = sshll.u32 %s8770_s24, 4  ;;  %s9888_s1 = int_to_ptr.vmem [resolvable:$true] %s6152_s1 }
 0x15c   : > { %v7626_v47 = vld [vmem:[%s9954_s16] sm:$0xff]   ;;  %v7628_v49 = vld [vmem:[%s9954_s16 + $0x8] sm:$0xff]   ;;  %s9897_s6 = scalar_lea.sflag [#allocation5], %s895_s3  ;;  %s8213_s28 = scalar_lea.vmem %s9888_s1, 256 }
 0x15d   : > { %v961_v22 = vrot.slane %v951_v16, %v8785_v21  ;;  %v968_v23 = vrot.slane %v952_v17, %v8785_v21  ;;  %v975_v24 = vrot.slane %v953_v18, %v8785_v21  ;;  %v982_v25 = vrot.slane %v954_v19, %v8785_v21  ;;  %v7614_v28 = vld [vmem:[%s10048_s2] sm:$0xff]   ;;  %v7615_v33 = vld [vmem:[%s10048_s2 + $0x8] sm:$0xff]   ;;  %s10050_s11 = smov %s10049_s27  ;;  %p8214_p1 = scmp.ne.s32.totalorder %s9888_s1, %s8213_s28 }
 0x15e   : > { %v7617_v35 = vld [vmem:[%s10049_s27] sm:$0xff]   ;;  %v7618_v38 = vld [vmem:[%s10050_s11 + $0x8] sm:$0xff]   ;;  %v1059_v63 = vsub.s32 %v1056_v62, %v8782_v15  ;;  %s10052_s27 = sld [smem:[#allocation47_spill]]  ;;  %s8318_s29 = smov [#allocation20]  }
 0x15f   : > { %v983_v26 = vcombine.low %v961_v22, %v968_v23  ;;  %v984_v27 = vcombine.low %v975_v24, %v982_v25  ;;  %v1894_v50 = vld [vmem:[%s8763_s25] sm:$0x3]  ;;  %v6440_v51 = vld [vmem:[%s8763_s25 + $0x2] sm:$0x3]  ;;  %v6539_v54 = vld [vmem:[%s8763_s25 + $0x8] sm:$0x3] }
 0x160   : > { %vm1895_vm4 = vcmp.gt.f32.partialorder %v1894_v50, 0.5  ;;  %vm2495_vm5 = vcmp.gt.f32.partialorder %v6440_v51, 0.5  ;;  %vm4295_vm6 = vcmp.gt.f32.partialorder %v6539_v54, 0.5  ;;  %v6605_v56 = vld [vmem:[%s8763_s25 + $0xc] sm:$0x3] }
 0x161   : > { %v991_v30 = vrot.slane %v983_v26, %v8785_v21  ;;  %v998_v31 = vrot.slane %v984_v27, %v8785_v21  ;;  %v1897_v53 = vsel %vm1895_vm4, 1, %v8316_v52  ;;  %v2498_v55 = vsel %vm2495_vm5, 1, %v8316_v52  ;;  %v1896_v59 = vld [vmem:[%s8768_s20] sm:$0x3]  ;;  %v8908_v22 = vld [vmem:[#allocation11] ss:$0 sm:$0xff] }
 0x162   : > { %1899 = vperm.xlu0 %7610, %v1897_v53   ;;  %v4298_v57 = vsel %vm4295_vm6, 1, %v8316_v52  ;;  %vm5495_vm7 = vcmp.gt.f32.partialorder %v6605_v56, 0.5  ;;  %vm6136_vm6 = vcmask 254976   ;;  %p10059_p11 = scmp.ne.s32.totalorder %s10057_s8, 0 }
 0x163   : > { %v999_v32 = vcombine.low %v991_v30, %v998_v31  ;;  %v5498_v58 = vsel %vm5495_vm7, 1, %v8316_v52 }
 0x164   : > { %s10053_s13 = smov %s10052_s27  ;;  %p8215_p10 = pnand %p8214_p1, %p10059_p11 }
 0x165   : > { %6869 = vmatmul.mubr.msk.bf16.vlgmr.msra.gmra.mrb[0].mxu0 %vm1006_vm2, %v999_v32  ;;  %6875 = vmatmul.mubr.msk.bf16.vlgmr.msra.gmra.mrb[0].mxu1 %vm1006_vm2, %v999_v32 }
 0x166   : > { %6885 = vmatpush3.bf16.msra.mxu1 %v7614_v28  ;;  %6879 = vmatpush3.bf16.msra.mxu0 %v7616_v29  ;;  %p8216_p3 = pneg %p8215_p10 }
 0x167   : > { %6886 = vmatprep.subr.bf16.mxu1 %v8313_v2  ;;  %6880 = vmatprep.mubr.msk.bf16.mxu0 %vm8314_vm1, %v8313_v2 }
 0x168   : > { %6888 = vmatprep.mubr.msk.bf16.mxu1 %vm8314_vm1, %v8313_v2  ;;  %6892 = vmatprep.subr.bf16.mxu0 %v8313_v2 }
 0x169   : > { %2500 = vperm.xlu0 %7610, %v2498_v55   ;;  %v8924_v55 = vld [vmem:[#allocation12] ss:$0 sm:$0xff] }
 0x16a   : > { %6887 = vmatpush3.bf16.msra.mxu1 %v7615_v33  ;;  %v6380_v33 = vld [vmem:[#allocation14] ss:$0 sm:$0xff] }
 0x16b   : > { %6900 = vmatprep.subr.bf16.mxu1 %v8313_v2 }
 0x16d   : > { %6881 = vmatmul.mubr.msk.bf16.vlgmr.msra.gmra.mrb[4].mxu0 %vm1006_vm2, %v999_v32  ;;  %6889 = vmatmul.mubr.msk.bf16.vlgmr.msra.gmra.mrb[4].mxu1 %vm1301_vm3, %v1284_v36 }
 0x16e   : > { %6893 = vmatpush3.bf16.msra.mxu0 %v7617_v35  ;;  %6896 = vmatprep.mubr.msk.bf16.mxu0 %vm8314_vm1, %v8313_v2 }
 0x16f   : > { %6894 = vmatprep.subr.bf16.mxu0 %v8313_v2  ;;  %6901 = vmatpush3.bf16.msra.mxu1 %v7619_v37 }
 0x170   : > { %6902 = vmatprep.subr.bf16.mxu1 %v8313_v2  ;;  %6904 = vmatprep.mubr.msk.bf16.mxu1 %vm8314_vm1, %v8313_v2 }
 0x171   : > { %4300 = vperm.xlu0 %7610, %v4298_v57  }
 0x172   : > { %6895 = vmatpush3.bf16.msra.mxu0 %v7618_v38 }
 0x173   : > { %6903 = vmatpush3.bf16.msra.mxu1 %v7620_v39  ;;  %6908 = vmatprep.subr.bf16.mxu0 %v8313_v2 }
 0x174   : > { %6916 = vmatprep.subr.bf16.mxu1 %v8313_v2 }
 0x175   : > { %6897 = vmatmul.mubr.msk.bf16.vlgmr.msra.gmra.mrb[8].mxu0 %vm1301_vm3, %v1284_v36  ;;  %5500 = vperm.xlu0 %7610, %v5498_v58  }
 0x176   : > { %6905 = vmatmul.mubr.msk.bf16.vlgmr.msra.gmra.mrb[8].mxu1 %vm1301_vm3, %v1284_v36  ;;  %6912 = vmatprep.mubr.msk.bf16.mxu0 %vm8314_vm1, %v8313_v2 }
 0x177   : > { %6920 = vmatprep.mubr.msk.bf16.mxu1 %vm8314_vm1, %v8313_v2  ;;  %6909 = vmatpush3.bf16.msra.mxu0 %v7621_v40 }
 0x178   : > { %6910 = vmatprep.subr.bf16.mxu0 %v8313_v2  ;;  %6917 = vmatpush3.bf16.msra.mxu1 %v7625_v46 }
 0x179   : > { %6918 = vmatprep.subr.bf16.mxu1 %v8313_v2  ;;  %1904 = vperm.xlu0 %7610, %v1896_v59  }
 0x17b   : > { %6911 = vmatpush3.bf16.msra.mxu0 %v7622_v41 }
 0x17c   : > { %6924 = vmatprep.subr.bf16.mxu0 %v8313_v2  ;;  %6919 = vmatpush3.bf16.msra.mxu1 %v7627_v48 }
 0x17d   : > { %6932 = vmatprep.subr.bf16.mxu1 %v8313_v2 }
 0x17e   : > { %6913 = vmatmul.mubr.msk.bf16.vlgmr.msra.gmra.mrb[12].mxu0 %vm1301_vm3, %v8851_v43 }
 0x17f   : > { %6925 = vmatpush3.bf16.msra.mxu0 %v7623_v44  ;;  %6928 = vmatprep.mubr.msk.bf16.mxu0 %vm8314_vm1, %v8313_v2 }
 0x180   : > { %6926 = vmatprep.subr.bf16.mxu0 %v8313_v2 }
 0x183   : > { %6927 = vmatpush3.bf16.msra.mxu0 %v7624_v45 }
 0x184   : > { %6940 = vmatprep.subr.bf16.mxu0 %v8313_v2 }
 0x186   : > { %6929 = vmatmul.mubr.msk.bf16.vlgmr.msra.gmra.mrb[16].mxu0 %vm1301_vm3, %v8851_v43 }
 0x187   : > { %6941 = vmatpush3.bf16.msra.mxu0 %v7626_v47  ;;  %6944 = vmatprep.mubr.msk.bf16.mxu0 %vm8314_vm1, %v8313_v2 }
 0x188   : > { %6942 = vmatprep.subr.bf16.mxu0 %v8313_v2 }
 0x18b   : > { %6943 = vmatpush3.bf16.msra.mxu0 %v7628_v49 }
 0x18c   : > { %6956 = vmatprep.subr.bf16.mxu0 %v8313_v2 }
 0x238   : > { %v1137_v0 = vpop.f32.mrb[0].mxu1  ;;  %v1044_v1 = vpop.f32.mrb[0].mxu0 }
 0x239   : > { %v1146_v3 = vcombine.high %v1137_v0, %v1137_v0  ;;  %v8892_v4 = vrot.slane %v1137_v0, %v1059_v63  ;;  %v6876_v5 = vpop.f32.mrb[1].mxu1  ;;  %v1053_v6 = vcombine.high %v1044_v1, %v1044_v1  ;;  %v8894_v7 = vrot.slane %v1044_v1, %v1059_v63  ;;  %v6870_v8 = vpop.f32.mrb[1].mxu0 }
 0x23a   : > { %v1140_v9 = vpop.f32.mrb[2].mxu1  ;;  %v1047_v10 = vpop.f32.mrb[2].mxu0 }
 0x23b   : > { %v1163_v11 = vcombine.high %v1140_v9, %v1140_v9  ;;  %v8896_v12 = vrot.slane %v1140_v9, %v1059_v63  ;;  %v6877_v13 = vpop.f32.mrb[3].mxu1  ;;  %v1070_v14 = vcombine.high %v1047_v10, %v1047_v10  ;;  %v8898_v16 = vrot.slane %v1047_v10, %v1059_v63  ;;  %v6871_v15 = vpop.f32.mrb[3].mxu0  ;;  %v8930_v9 = vld [vmem:[#allocation15] ss:$0 sm:$0xff] }
 0x23c   : > { %v8900_v17 = vrot.slane %v1053_v6, %v1059_v63  ;;  %v8902_v18 = vrot.slane %v1146_v3, %v1059_v63 }
 0x23d   : > { %v8904_v19 = vrot.slane %v1070_v14, %v1059_v63  ;;  %v8906_v20 = vrot.slane %v1163_v11, %v1059_v63 }
 0x240   : > { %v1339_v23 = vpop.f32.mrb[4].mxu1  ;;  %v1230_v24 = vpop.f32.mrb[4].mxu0 }
 0x241   : > { %v1345_v25 = vadd.f32 %v1339_v23, %v8894_v7  ;;  %v6890_v26 = vpop.f32.mrb[5].mxu1  ;;  %v1239_v27 = vcombine.high %v1230_v24, %v1230_v24  ;;  %v1246_v28 = vrot.slane %v1230_v24, %v1059_v63  ;;  %v6882_v29 = vpop.f32.mrb[5].mxu0 }
 0x242   : > { %v1342_v30 = vpop.f32.mrb[6].mxu1  ;;  %v1233_v31 = vpop.f32.mrb[6].mxu0 }
 0x243   : > { %v1352_v32 = vadd.f32 %v8908_v22, %v1345_v25  ;;  %v1253_v35 = vrot.slane %v1239_v27, %v1059_v63  ;;  %v1254_v36 = vcombine.high %v1246_v28, %v1246_v28  ;;  %v6891_v37 = vpop.f32.mrb[7].mxu1  ;;  %v6883_v38 = vpop.f32.mrb[7].mxu0  ;;  %v1256_v39 = vcombine.high %v1233_v31, %v1233_v31 }
 0x244   : > { %v1263_v40 = vrot.slane %v1233_v31, %v1059_v63  ;;  %v1435_v15 = vadd.f32 %v6380_v33, %v1246_v28  ;;  %v7630_v28 = vld [vmem:[%s10048_s2] sm:$0xff]  }
 0x245   : > { %v6374_v41 = vmul.f32 -1.442695, %v1352_v32  ;;  %v1255_v44 = vcombine.high %v1253_v35, %v1253_v35  ;;  %v8912_v45 = vadd.f32 %v6380_v33, %v1254_v36  ;;  %v8914_v46 = vadd.f32 %v6380_v33, %v1253_v35  ;;  %v7629_v32 = vld [vmem:[%s10051_s21] sm:$0xff]   ;;  %v7632_v35 = vld [vmem:[%s10048_s2 + $0x8] sm:$0xff]   ;;  %v7633_v36 = vld [vmem:[#allocation18] sm:$0xff]  }
 0x246   : > { %v1270_v47 = vrot.slane %v1256_v39, %v1059_v63  ;;  %v1271_v48 = vcombine.high %v1263_v40, %v1263_v40  ;;  %v8916_v49 = vadd.f32 %v6380_v33, %v1263_v40  ;;  %v7634_v37 = vld [vmem:[%s9947_s9] sm:$0xff]   ;;  %v7636_v39 = vld [vmem:[%s9947_s9 + $0x8] sm:$0xff]  }
 0x247   : > { %7759 = vpow2.f32 %v6374_v41  ;;  %v8918_v50 = vadd.f32 %v6380_v33, %v1255_v44  ;;  %v7635_v38 = vld [vmem:[#allocation18 + $0x8] sm:$0xff]   ;;  %v7638_v41 = vld [vmem:[%s10050_s11 + $0x8] sm:$0xff]  }
 0x248   : > { %v1272_v51 = vcombine.high %v1270_v47, %v1270_v47  ;;  %v8920_v53 = vadd.f32 %v6380_v33, %v1271_v48  ;;  %v8922_v54 = vadd.f32 %v6380_v33, %v1270_v47  ;;  %v1409_v56 = vpop.f32.mrb[8].mxu0  ;;  %v7637_v40 = vld [vmem:[%s10050_s11] sm:$0xff]  }
 0x249   : > { %v1415_v57 = vadd.f32 %v1409_v56, %v8892_v4  ;;  %v6898_v58 = vpop.f32.mrb[9].mxu0  ;;  %v1492_v59 = vpop.f32.mrb[8].mxu1 }
 0x24a   : > { %v1412_v60 = vpop.f32.mrb[10].mxu0  ;;  %v6906_v61 = vpop.f32.mrb[9].mxu1  ;;  %v8927_v62 = vadd.f32 %v6380_v33, %v1272_v51  ;;  %v1493_v13 = vadd.f32 %v8930_v9, %v1492_v59  ;;  %v7639_v59 = vld [vmem:[%s9955_s17] sm:$0xff]  }
 0x24b   : > { %v1422_v63 = vadd.f32 %v8924_v55, %v1415_v57  ;;  %v6899_v0 = vpop.f32.mrb[11].mxu0  ;;  %v1495_v1 = vpop.f32.mrb[10].mxu1  ;;  %v7640_v60 = vld [vmem:[%s9955_s17 + $0x8] sm:$0xff]   ;;  %v7642_v61 = vld [vmem:[%s9952_s14] sm:$0xff]  }
 0x24c   : > { %v6907_v3 = vpop.f32.mrb[11].mxu1  ;;  %v6473_v0 = vld [vmem:[%s8763_s25 + $0x4] sm:$0x3]  ;;  %v6506_v1 = vld [vmem:[%s8763_s25 + $0x6] sm:$0x3] }
 0x24d   : > { %v6379_v5 = vmul.f32 -1.442695, %v1422_v63  ;;  %v7644_v63 = vld [vmem:[%s9952_s14 + $0x8] sm:$0xff]   ;;  %vm3095_vm8 = vcmp.gt.f32.partialorder %v6473_v0, 0.5  ;;  %vm3695_vm9 = vcmp.gt.f32.partialorder %v6506_v1, 0.5 }
 0x24e   : > { %v3098_v3 = vsel %vm3095_vm8, 1, %v8316_v52 }
 0x24f   : > { %7761 = vpow2.f32 %v6379_v5  ;;  %v6572_v5 = vld [vmem:[%s8763_s25 + $0xa] sm:$0x3]  ;;  %3100 = vperm.xlu1 %7611, %v3098_v3  }
 0x250   : > { %vm4895_vm10 = vcmp.gt.f32.partialorder %v6572_v5, 0.5 }
 0x251   : > { %v7760_v6 = vpop.eup %7759 }
 0x252   : > { %v1356_v8 = vadd.f32 1.0, %v7760_v6  ;;  %v3698_v6 = vsel %vm3695_vm9, 1, %v8316_v52 }
 0x253   : > { %3700 = vperm.xlu1 %7611, %v3698_v6   ;;  %v1161_v6 = vcombine.high %v8892_v4, %v8892_v4  ;;  %v9045_v4 = vld [vmem:[%s10056_s0] ss:$0 sm:$0xff] }
 0x254   : > { %7763 = vrcp.f32 %v1356_v8  ;;  %v6638_v8 = vld [vmem:[%s8763_s25 + $0xe] sm:$0x3]  ;;  %s10058_s25 = sld [smem:[#allocation51_spill]] }
 0x255   : > { %vm6095_vm11 = vcmp.gt.f32.partialorder %v6638_v8, 0.5  ;;  %v1900_v8 = vpop.permute.xlu0 %1899 }
 0x256   : > { %vm1901_vm12 = vcmp.eq.s32.totalorder %v1900_v8, 1 }
 0x259   : > { %v7762_v10 = vpop.eup %7761 }
 0x25a   : > { %v1426_v11 = vadd.f32 1.0, %v7762_v10  ;;  %v4898_v10 = vsel %vm4895_vm10, 1, %v8316_v52  ;;  %s9886_s23 = scalar_lea.hbm %s10058_s25, %s6641_s5  ;;  %s8217_s5 = sshll.u32 %s8318_s29, 4  ;;  %s8218_s5 = int_to_ptr.vmem [resolvable:$false] %s8217_s5 }
 0x25b   : > { %4900 = vperm.xlu1 %7611, %v4898_v10   ;;  %p8220_p4 = scmp.lt.s32.totalorder %s9888_s1, %s8218_s5 }
 0x25c   : > { %7765 = vrcp.f32 %v1426_v11  ;;  %v6098_v11 = vsel %vm6095_vm11, 1, %v8316_v52 }
 0x25e   : > { %v7764_v14 = vpop.eup %7763 }
 0x25f   : > { %v1498_v23 = vmul.f32 %v7764_v14, %v1493_v13  ;;  %6100 = vperm.xlu1 %7611, %v6098_v11   ;;  %v6441_v13 = vld [vmem:[%s8768_s20 + $0x2] sm:$0x3]  ;;  %v9022_v14 = vld [vmem:[%s10052_s27] ss:$0 sm:$0xff]  ;;  %s8219_s27 = scalar_lea.vmem %s8218_s5, 512 }
 0x260   : > { %p8221_p13 = scmp.lt.s32.totalorder %s8219_s27, %s8213_s28 }
 0x261   : > { %v1499_v24 = vadd.f32 %v1498_v23, %v1435_v15 }
 0x262   : > { %p8222_p7 = por %p8221_p13, %p8220_p4 }
 0x263   : > { %7767 = vtanh.f32 %v1499_v24  ;;  %2505 = vperm.xlu1 %7611, %v6441_v13  }
 0x264   : > { %p8223_p8 = pnand %p8222_p7, %p8216_p3 }
 0x266   : > { %v7766_v25 = vpop.eup %7765 }
 0x267   : > { %v1501_v26 = vsub.f32 1.0, %v7766_v25  ;;  %v1503_v29 = vmul.f32 %v7766_v25, %v8799_v34  ;;  %v7631_v34 = vld [vmem:[%s10051_s21 + $0x8] sm:$0xff]  }
 0x26d   : > { %v7768_v27 = vpop.eup %7767 }
 0x26e   : > { %v1502_v30 = vmul.f32 %v7768_v27, %v1501_v26 }
 0x270   : > { %v8934_v31 = vadd.f32 %v1503_v29, %v1502_v30 }
 0x272   : > { %v1505_v33 = vpack.c.bf16 %v8934_v31, %v8934_v31 }
 0x274   : > { %6921 = vmatmul.mubr.msk.bf16.vlgmr.msra.gmra.mrb[12].mxu1 %vm1301_vm3, %v1505_v33  ;;  %6945 = vmatmul.mubr.msk.bf16.vlgmr.msra.gmra.mrb[20].mxu0 %vm1301_vm3, %v1505_v33 }
 0x275   : > { %6933 = vmatpush3.bf16.msra.mxu1 %v7629_v32  ;;  %6957 = vmatpush3.bf16.msra.mxu0 %v7630_v28 }
 0x276   : > { %6934 = vmatprep.subr.bf16.mxu1 %v8313_v2  ;;  %6958 = vmatprep.subr.bf16.mxu0 %v8313_v2 }
 0x277   : > { %6936 = vmatprep.mubr.msk.bf16.mxu1 %vm8314_vm1, %v8313_v2  ;;  %6960 = vmatprep.mubr.msk.bf16.mxu0 %vm8314_vm1, %v8313_v2 }
 0x279   : > { %6935 = vmatpush3.bf16.msra.mxu1 %v7631_v34  ;;  %6959 = vmatpush3.bf16.msra.mxu0 %v7632_v35  ;;  %v9030_v34 = vld [vmem:[%s10054_s4] ss:$0 sm:$0xff] }
 0x27a   : > { %6948 = vmatprep.subr.bf16.mxu1 %v8313_v2  ;;  %6972 = vmatprep.subr.bf16.mxu0 %v8313_v2 }
 0x27c   : > { %6937 = vmatmul.mubr.msk.bf16.vlgmr.msra.gmra.mrb[16].mxu1 %vm1301_vm3, %v1505_v33  ;;  %6961 = vmatmul.mubr.msk.bf16.vlgmr.msra.gmra.mrb[24].mxu0 %vm1301_vm3, %v1505_v33 }
 0x27d   : > { %6949 = vmatpush3.bf16.msra.mxu1 %v7633_v36  ;;  %6973 = vmatpush3.bf16.msra.mxu0 %v7634_v37 }
 0x27e   : > { %6950 = vmatprep.subr.bf16.mxu1 %v8313_v2  ;;  %6974 = vmatprep.subr.bf16.mxu0 %v8313_v2 }
 0x27f   : > { %6952 = vmatprep.mubr.msk.bf16.mxu1 %vm8314_vm1, %v8313_v2  ;;  %6976 = vmatprep.mubr.msk.bf16.mxu0 %vm8314_vm1, %v8313_v2 }
 0x281   : > { %6951 = vmatpush3.bf16.msra.mxu1 %v7635_v38  ;;  %6975 = vmatpush3.bf16.msra.mxu0 %v7636_v39 }
 0x282   : > { %6964 = vmatprep.subr.bf16.mxu1 %v8313_v2  ;;  %6988 = vmatprep.subr.bf16.mxu0 %v8313_v2 }
 0x284   : > { %6953 = vmatmul.mubr.msk.bf16.vlgmr.msra.gmra.mrb[20].mxu1 %vm1301_vm3, %v8851_v43  ;;  %6977 = vmatmul.mubr.msk.bf16.vlgmr.msra.gmra.mrb[28].mxu0 %vm1301_vm3, %v1505_v33  ;;  %v1572_v43 = vpop.f32.mrb[12].mxu0 }
 0x285   : > { %6965 = vmatpush3.bf16.msra.mxu1 %v7637_v40  ;;  %6968 = vmatprep.mubr.msk.bf16.mxu1 %vm8314_vm1, %v8313_v2  ;;  %v6914_v44 = vpop.f32.mrb[13].mxu0 }
 0x286   : > { %6966 = vmatprep.subr.bf16.mxu1 %v8313_v2  ;;  %6992 = vmatprep.mubr.msk.bf16.mxu0 %vm8314_vm1, %v8313_v2  ;;  %v1575_v47 = vpop.f32.mrb[14].mxu0 }
 0x287   : > { %v6915_v48 = vpop.f32.mrb[15].mxu0  ;;  %6989 = vmatpush3.bf16.msra.mxu0 %v7642_v61 }
 0x288   : > { %v1696_v51 = vpop.f32.mrb[16].mxu0  ;;  %6990 = vmatprep.subr.bf16.mxu0 %v8313_v2 }
 0x289   : > { %6967 = vmatpush3.bf16.msra.mxu1 %v7638_v41  ;;  %v6930_v56 = vpop.f32.mrb[17].mxu0 }
 0x28a   : > { %6980 = vmatprep.subr.bf16.mxu1 %v8313_v2  ;;  %v1699_v57 = vpop.f32.mrb[18].mxu0 }
 0x28b   : > { %v6931_v58 = vpop.f32.mrb[19].mxu0  ;;  %6991 = vmatpush3.bf16.msra.mxu0 %v7644_v63 }
 0x28c   : > { %6969 = vmatmul.mubr.msk.bf16.vlgmr.msra.gmra.mrb[24].mxu1 %vm1301_vm3, %v1505_v33  ;;  %7004 = vmatprep.subr.bf16.mxu0 %v8313_v2  ;;  %v1068_v33 = vcombine.high %v8894_v7, %v8894_v7 }
 0x28d   : > { %6984 = vmatprep.mubr.msk.bf16.mxu1 %vm8314_vm1, %v8313_v2  ;;  %6981 = vmatpush3.bf16.msra.mxu1 %v7639_v59 }
 0x28e   : > { %6982 = vmatprep.subr.bf16.mxu1 %v8313_v2 }
 0x291   : > { %6983 = vmatpush3.bf16.msra.mxu1 %v7640_v60 }
 0x292   : > { %6996 = vmatprep.subr.bf16.mxu1 %v8313_v2 }
 0x347   : > { %v1627_v15 = vpop.f32.mrb[12].mxu1  ;;  %v1819_v23 = vpop.f32.mrb[20].mxu0 }
 0x348   : > { %v1628_v24 = vadd.f32 %v1627_v15, %v1572_v43  ;;  %v6922_v25 = vpop.f32.mrb[13].mxu1  ;;  %v6946_v26 = vpop.f32.mrb[21].mxu0 }
 0x349   : > { %v1630_v27 = vpop.f32.mrb[14].mxu1  ;;  %v1822_v29 = vpop.f32.mrb[22].mxu0  ;;  %v9039_v26 = vld [vmem:[%s10055_s7] ss:$0 sm:$0xff] }
 0x34a   : > { %v1639_v30 = vadd.f32 %v9022_v14, %v1628_v24  ;;  %v6923_v32 = vpop.f32.mrb[15].mxu1  ;;  %v6947_v28 = vpop.f32.mrb[23].mxu0 }
 0x34c   : > { %v6392_v52 = vmul.f32 -1.442695, %v1639_v30 }
 0x34e   : > { %7769 = vpow2.f32 %v6392_v52 }
 0x34f   : > { %v1748_v35 = vpop.f32.mrb[16].mxu1  ;;  %v1986_v36 = vpop.f32.mrb[24].mxu0 }
 0x350   : > { %v1749_v37 = vadd.f32 %v1748_v35, %v1696_v51  ;;  %v1992_v38 = vadd.f32 %v1986_v36, %v1068_v33  ;;  %v6938_v39 = vpop.f32.mrb[17].mxu1  ;;  %v6962_v40 = vpop.f32.mrb[25].mxu0  ;;  %v1820_v36 = vadd.f32 %v9045_v4, %v1819_v23 }
 0x351   : > { %v1751_v41 = vpop.f32.mrb[18].mxu1  ;;  %v1989_v43 = vpop.f32.mrb[26].mxu0 }
 0x352   : > { %v1760_v44 = vadd.f32 %v9030_v34, %v1749_v37  ;;  %v1993_v47 = vadd.f32 %v8908_v22, %v1992_v38  ;;  %v6939_v48 = vpop.f32.mrb[19].mxu1  ;;  %v6963_v56 = vpop.f32.mrb[27].mxu0 }
 0x353   : > { %v9048_v33 = vpop.permute.xlu0 %2500 }
 0x354   : > { %v6400_v7 = vmul.f32 -1.442695, %v1760_v44  ;;  %v6412_v57 = vmul.f32 -1.442695, %v1993_v47  ;;  %vm2502_vm14 = vcmp.eq.s32.totalorder %v9048_v33, 1  ;;  %v7660_v33 = vld [vmem:[#allocation17 + $0x8] sm:$0xff]  }
 0x356   : > { %7771 = vpow2.f32 %v6400_v7 }
 0x357   : > { %7773 = vpow2.f32 %v6412_v57  ;;  %v1881_v58 = vpop.f32.mrb[20].mxu1  ;;  %v2115_v59 = vpop.f32.mrb[28].mxu0 }
 0x358   : > { %v7770_v60 = vpop.eup %7769  ;;  %v6954_v61 = vpop.f32.mrb[21].mxu1  ;;  %v1882_v28 = vadd.f32 %v9039_v26, %v1881_v58  ;;  %v2116_v40 = vadd.f32 %v8930_v9, %v2115_v59 }
 0x359   : > { %v6978_v51 = vpop.f32.mrb[29].mxu0  ;;  %v1643_v63 = vadd.f32 1.0, %v7770_v60  ;;  %v1884_v0 = vpop.f32.mrb[22].mxu1 }
 0x35a   : > { %v2118_v1 = vpop.f32.mrb[30].mxu0  ;;  %v6955_v3 = vpop.f32.mrb[23].mxu1  ;;  %v7641_v51 = vld [vmem:[#allocation17] sm:$0xff]  }
 0x35b   : > { %v6979_v5 = vpop.f32.mrb[31].mxu0  ;;  %7775 = vrcp.f32 %v1643_v63  ;;  %v9051_v39 = vpop.permute.xlu0 %4300  ;;  %v7643_v3 = vld [vmem:[#allocation17 + $0x8] sm:$0xff]  }
 0x35c   : > { %vm4302_vm2 = vcmp.eq.s32.totalorder %v9051_v39, 1  ;;  %v7715_v39 = vld [vmem:[#allocation17 + $0x8] sm:$0xff]  }
 0x35f   : > { %v2050_v10 = vpop.f32.mrb[24].mxu1  ;;  %v9054_v48 = vpop.permute.xlu0 %5500 }
 0x360   : > { %v7772_v11 = vpop.eup %7771  ;;  %v2056_v13 = vadd.f32 %v2050_v10, %v1161_v6  ;;  %v6970_v15 = vpop.f32.mrb[25].mxu1  ;;  %vm5502_vm5 = vcmp.eq.s32.totalorder %v9054_v48, 1  ;;  %v7751_v48 = vld [vmem:[#allocation17 + $0x8] sm:$0xff]  }
 0x361   : > { %v7774_v24 = vpop.eup %7773  ;;  %v1764_v25 = vadd.f32 1.0, %v7772_v11  ;;  %v2053_v27 = vpop.f32.mrb[26].mxu1  ;;  %v7645_v11 = vld [vmem:[%s9954_s16] sm:$0xff]  }
 0x362   : > { %v1997_v29 = vadd.f32 1.0, %v7774_v24  ;;  %v2057_v30 = vadd.f32 %v8924_v55, %v2056_v13  ;;  %v6971_v32 = vpop.f32.mrb[27].mxu1  ;;  %v7647_v27 = vld [vmem:[%s9954_s16 + $0x8] sm:$0xff]  }
 0x363   : > { %v1905_v61 = vpop.permute.xlu0 %1904  ;;  %v7650_v32 = vld [vmem:[#allocation18] sm:$0xff]  }
 0x364   : > { %7777 = vrcp.f32 %v1997_v29  ;;  %v6416_v52 = vmul.f32 -1.442695, %v2057_v30  ;;  %v7648_v29 = vld [vmem:[%s10051_s21 + $0x8] sm:$0xff]   ;;  %v7649_v30 = vld [vmem:[%s10048_s2] sm:$0xff]  }
 0x365   : > { %v7776_v35 = vpop.eup %7775  ;;  %7779 = vrcp.f32 %v1764_v25  ;;  %v7646_v25 = vld [vmem:[%s10051_s21] sm:$0xff]  }
 0x366   : > { %v1887_v37 = vmul.f32 %v7776_v35, %v1882_v28  ;;  %7781 = vpow2.f32 %v6416_v52  ;;  %v7651_v28 = vld [vmem:[%s10048_s2 + $0x8] sm:$0xff]   ;;  %v7652_v52 = vld [vmem:[#allocation18 + $0x8] sm:$0xff]  }
 0x367   : > { %v7653_v35 = vld [vmem:[%s9947_s9] sm:$0xff]  }
 0x368   : > { %v1888_v38 = vadd.f32 %v1887_v37, %v1820_v36  ;;  %v7654_v36 = vld [vmem:[%s10050_s11] sm:$0xff]   ;;  %v7655_v37 = vld [vmem:[%s9947_s9 + $0x8] sm:$0xff]  }
 0x36a   : > { %7783 = vtanh.f32 %v1888_v38  ;;  %v7656_v38 = vld [vmem:[%s10050_s11 + $0x8] sm:$0xff]  }
 0x36e   : > { %v7778_v41 = vpop.eup %7777 }
 0x36f   : > { %v7780_v43 = vpop.eup %7779  ;;  %v2121_v44 = vmul.f32 %v7778_v41, %v2116_v40  ;;  %v7657_v40 = vld [vmem:[%s9955_s17] sm:$0xff]   ;;  %v7658_v41 = vld [vmem:[%s9955_s17 + $0x8] sm:$0xff]  }
 0x370   : > { %v7782_v47 = vpop.eup %7781  ;;  %v1890_v57 = vsub.f32 1.0, %v7780_v43  ;;  %v1892_v60 = vmul.f32 %v7780_v43, %v8847_v42  ;;  %v7661_v43 = vld [vmem:[%s9952_s14] sm:$0xff]  }
 0x371   : > { %v2122_v56 = vadd.f32 %v2121_v44, %v8912_v45  ;;  %v2061_v7 = vadd.f32 1.0, %v7782_v47  ;;  %v7663_v44 = vld [vmem:[%s9952_s14 + $0x8] sm:$0xff]   ;;  %v6474_v47 = vld [vmem:[%s8768_s20 + $0x4] sm:$0x3] }
 0x372   : > { %3105 = vperm.xlu0 %7610, %v6474_v47  }
 0x373   : > { %7785 = vrcp.f32 %v2061_v7 }
 0x374   : > { %v7784_v58 = vpop.eup %7783  ;;  %7787 = vtanh.f32 %v2122_v56 }
 0x375   : > { %v1891_v23 = vmul.f32 %v7784_v58, %v1890_v57 }
 0x377   : > { %v9058_v59 = vadd.f32 %v1892_v60, %v1891_v23 }
 0x379   : > { %v1907_v63 = vsel %vm1901_vm12, %v9058_v59, %v1905_v61  ;;  %v2129_v45 = vpack.c.bf16 %v9058_v59, %v9058_v59 }
 0x37a   : > { %v1915_v0 = vrot.slane %v1907_v63, %v8785_v21 }
 0x37b   : > { %6985 = vmatmul.mubr.msk.bf16.vlgmr.msra.gmra.mrb[28].mxu1 %vm1301_vm3, %v2129_v45 }
 0x37c   : > { %v1916_v1 = vcombine.high %v1915_v0, %v1915_v0  ;;  %v1923_v42 = vrot.slane %v1915_v0, %v8785_v21  ;;  %6997 = vmatpush3.bf16.msra.mxu1 %v7641_v51  ;;  %7000 = vmatprep.mubr.msk.bf16.mxu1 %vm8314_vm1, %v8313_v2 }
 0x37d   : > { %6998 = vmatprep.subr.bf16.mxu1 %v8313_v2  ;;  %v7786_v5 = vpop.eup %7785 }
 0x37e   : > { %v1930_v6 = vrot.slane %v1916_v1, %v8785_v21  ;;  %1934 = vst.msk [vmem:[%s8770_s24] sm:$0x1] %vm1933_vm13, %v1923_v42  ;;  %v2124_v8 = vsub.f32 1.0, %v7786_v5  ;;  %v7788_v10 = vpop.eup %7787  ;;  %v2126_v15 = vmul.f32 %v7786_v5, %v8934_v31 }
 0x380   : > { %1935 = vst.msk [vmem:[%s8770_s24 + $0x8] sm:$0x1] %vm1933_vm13, %v1930_v6  ;;  %6999 = vmatpush3.bf16.msra.mxu1 %v7643_v3  ;;  %v2125_v13 = vmul.f32 %v7788_v10, %v2124_v8 }
 0x381   : > { %7012 = vmatprep.subr.bf16.mxu1 %v8313_v2 }
 0x382   : > { %v9080_v24 = vadd.f32 %v2126_v15, %v2125_v13 }
 0x383   : > { %7001 = vmatmul.mubr.msk.bf16.vlgmr.msra.gmra.mrb[32].mxu1 %vm1301_vm3, %v2129_v45 }
 0x384   : > { %7013 = vmatpush3.bf16.msra.mxu1 %v7645_v11  ;;  %7016 = vmatprep.mubr.msk.bf16.mxu1 %vm8314_vm1, %v8313_v2  ;;  %v2128_v31 = vpack.c.bf16 %v9080_v24, %v9080_v24 }
 0x385   : > { %7014 = vmatprep.subr.bf16.mxu1 %v8313_v2 }
 0x386   : > { %6993 = vmatmul.mubr.msk.bf16.vlgmr.msra.gmra.mrb[32].mxu0 %vm1301_vm3, %v2128_v31 }
 0x387   : > { %7005 = vmatpush3.bf16.msra.mxu0 %v7646_v25  ;;  %7008 = vmatprep.mubr.msk.bf16.mxu0 %vm8314_vm1, %v8313_v2 }
 0x388   : > { %7015 = vmatpush3.bf16.msra.mxu1 %v7647_v27  ;;  %7006 = vmatprep.subr.bf16.mxu0 %v8313_v2 }
 0x389   : > { %7028 = vmatprep.subr.bf16.mxu1 %v8313_v2 }
 0x38b   : > { %7017 = vmatmul.mubr.msk.bf16.vlgmr.msra.gmra.mrb[36].mxu1 %vm1301_vm3, %v2128_v31  ;;  %7007 = vmatpush3.bf16.msra.mxu0 %v7648_v29 }
 0x38c   : > { %7029 = vmatpush3.bf16.msra.mxu1 %v7649_v30  ;;  %7020 = vmatprep.subr.bf16.mxu0 %v8313_v2 }
 0x38d   : > { %7030 = vmatprep.subr.bf16.mxu1 %v8313_v2  ;;  %7032 = vmatprep.mubr.msk.bf16.mxu1 %vm8314_vm1, %v8313_v2 }
 0x38e   : > { %7009 = vmatmul.mubr.msk.bf16.vlgmr.msra.gmra.mrb[36].mxu0 %vm1301_vm3, %v2128_v31 }
 0x38f   : > { %7021 = vmatpush3.bf16.msra.mxu0 %v7650_v32  ;;  %7024 = vmatprep.mubr.msk.bf16.mxu0 %vm8314_vm1, %v8313_v2 }
 0x390   : > { %7031 = vmatpush3.bf16.msra.mxu1 %v7651_v28  ;;  %7022 = vmatprep.subr.bf16.mxu0 %v8313_v2 }
 0x391   : > { %7044 = vmatprep.subr.bf16.mxu1 %v8313_v2 }
 0x393   : > { %7033 = vmatmul.mubr.msk.bf16.vlgmr.msra.gmra.mrb[40].mxu1 %vm1301_vm3, %v2128_v31  ;;  %7023 = vmatpush3.bf16.msra.mxu0 %v7652_v52 }
 0x394   : > { %7045 = vmatpush3.bf16.msra.mxu1 %v7653_v35  ;;  %7036 = vmatprep.subr.bf16.mxu0 %v8313_v2 }
 0x395   : > { %7046 = vmatprep.subr.bf16.mxu1 %v8313_v2  ;;  %7048 = vmatprep.mubr.msk.bf16.mxu1 %vm8314_vm1, %v8313_v2 }
 0x396   : > { %7025 = vmatmul.mubr.msk.bf16.vlgmr.msra.gmra.mrb[40].mxu0 %vm1301_vm3, %v2129_v45 }
 0x397   : > { %7037 = vmatpush3.bf16.msra.mxu0 %v7654_v36  ;;  %7040 = vmatprep.mubr.msk.bf16.mxu0 %vm8314_vm1, %v8313_v2 }
 0x398   : > { %7047 = vmatpush3.bf16.msra.mxu1 %v7655_v37  ;;  %7038 = vmatprep.subr.bf16.mxu0 %v8313_v2 }
 0x399   : > { %7060 = vmatprep.subr.bf16.mxu1 %v8313_v2 }
 0x39b   : > { %7049 = vmatmul.mubr.msk.bf16.vlgmr.msra.gmra.mrb[44].mxu1 %vm1301_vm3, %v2128_v31  ;;  %7039 = vmatpush3.bf16.msra.mxu0 %v7656_v38 }
 0x39c   : > { %7064 = vmatprep.mubr.msk.bf16.mxu1 %vm8314_vm1, %v8313_v2  ;;  %7052 = vmatprep.subr.bf16.mxu0 %v8313_v2 }
 0x39d   : > { %7061 = vmatpush3.bf16.msra.mxu1 %v7661_v43 }
 0x39e   : > { %7041 = vmatmul.mubr.msk.bf16.vlgmr.msra.gmra.mrb[44].mxu0 %vm1301_vm3, %v2128_v31  ;;  %7062 = vmatprep.subr.bf16.mxu1 %v8313_v2 }
 0x39f   : > { %7056 = vmatprep.mubr.msk.bf16.mxu0 %vm8314_vm1, %v8313_v2  ;;  %7053 = vmatpush3.bf16.msra.mxu0 %v7657_v40 }
 0x3a0   : > { %7054 = vmatprep.subr.bf16.mxu0 %v8313_v2 }
 0x3a1   : > { %7063 = vmatpush3.bf16.msra.mxu1 %v7663_v44 }
 0x3a2   : > { %7076 = vmatprep.subr.bf16.mxu1 %v8313_v2 }
 0x3a3   : > { %7055 = vmatpush3.bf16.msra.mxu0 %v7658_v41 }
 0x3a4   : > { %7068 = vmatprep.subr.bf16.mxu0 %v8313_v2 }
 0x44e   : > { %v2195_v56 = vpop.f32.mrb[28].mxu1 }
 0x44f   : > { %v6986_v7 = vpop.f32.mrb[29].mxu1 }
 0x450   : > { %v2198_v57 = vpop.f32.mrb[30].mxu1 }
 0x451   : > { %v6987_v58 = vpop.f32.mrb[31].mxu1 }
 0x456   : > { %v2313_v23 = vpop.f32.mrb[32].mxu1 }
 0x457   : > { %v7002_v60 = vpop.f32.mrb[33].mxu1 }
 0x458   : > { %v2316_v61 = vpop.f32.mrb[34].mxu1  ;;  %v9167_v60 = vpop.permute.xlu1 %3100 }
 0x459   : > { %v7003_v51 = vpop.f32.mrb[35].mxu1  ;;  %v2250_v63 = vpop.f32.mrb[32].mxu0  ;;  %vm3102_vm15 = vcmp.eq.s32.totalorder %v9167_v60, 1  ;;  %v7679_v60 = vld [vmem:[#allocation17 + $0x8] sm:$0xff]  }
 0x45a   : > { %v2251_v45 = vadd.f32 %v2250_v63, %v2195_v56  ;;  %v6994_v0 = vpop.f32.mrb[33].mxu0 }
 0x45b   : > { %v2253_v1 = vpop.f32.mrb[34].mxu0 }
 0x45c   : > { %v2256_v42 = vadd.f32 %v9022_v14, %v2251_v45  ;;  %v6995_v3 = vpop.f32.mrb[35].mxu0 }
 0x45e   : > { %v2424_v5 = vpop.f32.mrb[36].mxu1  ;;  %v6426_v6 = vmul.f32 -1.442695, %v2256_v42 }
 0x45f   : > { %v7018_v8 = vpop.f32.mrb[37].mxu1 }
 0x460   : > { %v2427_v10 = vpop.f32.mrb[38].mxu1  ;;  %7789 = vpow2.f32 %v6426_v6 }
 0x461   : > { %v7019_v11 = vpop.f32.mrb[39].mxu1  ;;  %v2365_v13 = vpop.f32.mrb[36].mxu0 }
 0x462   : > { %v2366_v15 = vadd.f32 %v2365_v13, %v2313_v23  ;;  %v7010_v25 = vpop.f32.mrb[37].mxu0  ;;  %v9172_v10 = vpop.permute.xlu1 %3700 }
 0x463   : > { %v2368_v27 = vpop.f32.mrb[38].mxu0  ;;  %vm3702_vm0 = vcmp.eq.s32.totalorder %v9172_v10, 1  ;;  %v7696_v10 = vld [vmem:[#allocation17 + $0x8] sm:$0xff]  }
 0x464   : > { %v2371_v31 = vadd.f32 %v9030_v34, %v2366_v15  ;;  %v7011_v29 = vpop.f32.mrb[39].mxu0  ;;  %v2425_v15 = vadd.f32 %v9045_v4, %v2424_v5 }
 0x466   : > { %v2586_v30 = vpop.f32.mrb[40].mxu1  ;;  %v6433_v32 = vmul.f32 -1.442695, %v2371_v31  ;;  %v9175_v31 = vpop.permute.xlu1 %4900 }
 0x467   : > { %v2592_v28 = vadd.f32 %v2586_v30, %v8900_v17  ;;  %v7034_v52 = vpop.f32.mrb[41].mxu1  ;;  %vm4902_vm4 = vcmp.eq.s32.totalorder %v9175_v31, 1  ;;  %v7732_v31 = vld [vmem:[#allocation17 + $0x8] sm:$0xff]  }
 0x468   : > { %v2589_v35 = vpop.f32.mrb[42].mxu1  ;;  %7791 = vpow2.f32 %v6433_v32 }
 0x469   : > { %v2593_v36 = vadd.f32 %v8908_v22, %v2592_v28  ;;  %v7035_v37 = vpop.f32.mrb[43].mxu1  ;;  %v2480_v38 = vpop.f32.mrb[40].mxu0 }
 0x46a   : > { %v7790_v40 = vpop.eup %7789  ;;  %v7026_v43 = vpop.f32.mrb[41].mxu0  ;;  %v2481_v6 = vadd.f32 %v9039_v26, %v2480_v38 }
 0x46b   : > { %v6445_v41 = vmul.f32 -1.442695, %v2593_v36  ;;  %v2260_v44 = vadd.f32 1.0, %v7790_v40  ;;  %v2483_v47 = vpop.f32.mrb[42].mxu0  ;;  %v9178_v32 = vpop.permute.xlu1 %6100 }
 0x46c   : > { %v7027_v56 = vpop.f32.mrb[43].mxu0 }
 0x46d   : > { %7793 = vpow2.f32 %v6445_v41 }
 0x46e   : > { %7795 = vrcp.f32 %v2260_v44  ;;  %v2715_v7 = vpop.f32.mrb[44].mxu1 }
 0x46f   : > { %v7050_v57 = vpop.f32.mrb[45].mxu1  ;;  %v2716_v30 = vadd.f32 %v8930_v9, %v2715_v7  ;;  %v2506_v41 = vpop.permute.xlu1 %2505  ;;  %v7659_v9 = vld [vmem:[#allocation17] sm:$0xff]  }
 0x470   : > { %v2718_v58 = vpop.f32.mrb[46].mxu1 }
 0x471   : > { %v7051_v23 = vpop.f32.mrb[47].mxu1  ;;  %v2650_v61 = vpop.f32.mrb[44].mxu0 }
 0x472   : > { %v7792_v51 = vpop.eup %7791  ;;  %v2656_v22 = vadd.f32 %v2650_v61, %v8902_v18  ;;  %v7042_v63 = vpop.f32.mrb[45].mxu0  ;;  %v7662_v61 = vld [vmem:[%s9954_s16] sm:$0xff]  }
 0x473   : > { %v2375_v45 = vadd.f32 1.0, %v7792_v51  ;;  %v2653_v0 = vpop.f32.mrb[46].mxu0 }
 0x474   : > { %v2657_v1 = vadd.f32 %v8924_v55, %v2656_v22  ;;  %v7043_v42 = vpop.f32.mrb[47].mxu0  ;;  %v7665_v0 = vld [vmem:[%s10051_s21] sm:$0xff]  }
 0x475   : > { %7797 = vrcp.f32 %v2375_v45  ;;  %v7664_v45 = vld [vmem:[%s9954_s16 + $0x8] sm:$0xff]  }
 0x476   : > { %v6449_v8 = vmul.f32 -1.442695, %v2657_v1  ;;  %v7666_v1 = vld [vmem:[%s10048_s2] sm:$0xff]   ;;  %v7667_v42 = vld [vmem:[%s10051_s21 + $0x8] sm:$0xff]  }
 0x477   : > { %v7794_v3 = vpop.eup %7793 }
 0x478   : > { %v7796_v11 = vpop.eup %7795  ;;  %v2597_v13 = vadd.f32 1.0, %v7794_v3  ;;  %7799 = vpow2.f32 %v6449_v8  ;;  %v7668_v3 = vld [vmem:[%s10048_s2 + $0x8] sm:$0xff]   ;;  %v7670_v8 = vld [vmem:[#allocation18 + $0x8] sm:$0xff]  }
 0x479   : > { %v2486_v25 = vmul.f32 %v7796_v11, %v2481_v6  ;;  %v7669_v6 = vld [vmem:[#allocation18] sm:$0xff]   ;;  %v7671_v11 = vld [vmem:[%s9947_s9] sm:$0xff]  }
 0x47a   : > { %7801 = vrcp.f32 %v2597_v13  ;;  %v7672_v13 = vld [vmem:[%s10050_s11] sm:$0xff]  }
 0x47b   : > { %v2487_v27 = vadd.f32 %v2486_v25, %v2425_v15  ;;  %v7673_v15 = vld [vmem:[%s9947_s9 + $0x8] sm:$0xff]  }
 0x47c   : > { %v7674_v25 = vld [vmem:[%s10050_s11 + $0x8] sm:$0xff]  }
 0x47d   : > { %7803 = vtanh.f32 %v2487_v27  ;;  %v7675_v27 = vld [vmem:[%s9955_s17] sm:$0xff]  }
 0x47f   : > { %v7798_v55 = vpop.eup %7797 }
 0x480   : > { %v2489_v36 = vsub.f32 1.0, %v7798_v55  ;;  %v2491_v40 = vmul.f32 %v7798_v55, %v9058_v59  ;;  %v7676_v55 = vld [vmem:[%s9955_s17 + $0x8] sm:$0xff]  }
 0x482   : > { %v7800_v29 = vpop.eup %7799 }
 0x483   : > { %v2661_v52 = vadd.f32 1.0, %v7800_v29  ;;  %v7678_v29 = vld [vmem:[%s9952_s14] sm:$0xff]  }
 0x484   : > { %v7802_v28 = vpop.eup %7801 }
 0x485   : > { %v2721_v35 = vmul.f32 %v7802_v28, %v2716_v30  ;;  %7805 = vrcp.f32 %v2661_v52  ;;  %v7680_v30 = vld [vmem:[%s9952_s14 + $0x8] sm:$0xff]   ;;  %v6507_v28 = vld [vmem:[%s8768_s20 + $0x6] sm:$0x3] }
 0x486   : > { %3705 = vperm.xlu1 %7611, %v6507_v28  }
 0x487   : > { %v7804_v37 = vpop.eup %7803  ;;  %v2722_v5 = vadd.f32 %v2721_v35, %v8914_v46 }
 0x488   : > { %v2490_v38 = vmul.f32 %v7804_v37, %v2489_v36 }
 0x489   : > { %7807 = vtanh.f32 %v2722_v5 }
 0x48a   : > { %v9183_v43 = vadd.f32 %v2491_v40, %v2490_v38 }
 0x48c   : > { %v2508_v44 = vsel %vm2502_vm14, %v9183_v43, %v2506_v41  ;;  %v2729_v47 = vpack.c.bf16 %v9183_v43, %v9183_v43 }
 0x48d   : > { %v2516_v56 = vrot.slane %v2508_v44, %v8785_v21 }
 0x48e   : > { %7057 = vmatmul.mubr.msk.bf16.vlgmr.msra.gmra.mrb[48].mxu0 %vm1301_vm3, %v2729_v47 }
 0x48f   : > { %v2517_v46 = vcombine.high %v2516_v56, %v2516_v56  ;;  %v2524_v59 = vrot.slane %v2516_v56, %v8785_v21  ;;  %7069 = vmatpush3.bf16.msra.mxu0 %v7659_v9  ;;  %7072 = vmatprep.mubr.msk.bf16.mxu0 %vm8314_vm1, %v8313_v2  ;;  %v7806_v7 = vpop.eup %7805 }
 0x490   : > { %7070 = vmatprep.subr.bf16.mxu0 %v8313_v2  ;;  %v2724_v58 = vsub.f32 1.0, %v7806_v7  ;;  %v2726_v22 = vmul.f32 %v7806_v7, %v9080_v24 }
 0x491   : > { %v2531_v57 = vrot.slane %v2517_v46, %v8785_v21  ;;  %2534 = vst.msk [vmem:[%s8770_s24 + $0x1] sm:$0x1] %vm1933_vm13, %v2524_v59 }
 0x493   : > { %v7808_v23 = vpop.eup %7807  ;;  %2535 = vst.msk [vmem:[%s8770_s24 + $0x9] sm:$0x1] %vm1933_vm13, %v2531_v57  ;;  %7071 = vmatpush3.bf16.msra.mxu0 %v7660_v33 }
 0x494   : > { %v2725_v51 = vmul.f32 %v7808_v23, %v2724_v58  ;;  %7084 = vmatprep.subr.bf16.mxu0 %v8313_v2 }
 0x496   : > { %7073 = vmatmul.mubr.msk.bf16.vlgmr.msra.gmra.mrb[52].mxu0 %vm1301_vm3, %v2729_v47  ;;  %v9205_v63 = vadd.f32 %v2726_v22, %v2725_v51 }
 0x497   : > { %7085 = vmatpush3.bf16.msra.mxu0 %v7662_v61  ;;  %7088 = vmatprep.mubr.msk.bf16.mxu0 %vm8314_vm1, %v8313_v2 }
 0x498   : > { %7086 = vmatprep.subr.bf16.mxu0 %v8313_v2  ;;  %v2728_v24 = vpack.c.bf16 %v9205_v63, %v9205_v63 }
 0x49a   : > { %7065 = vmatmul.mubr.msk.bf16.vlgmr.msra.gmra.mrb[48].mxu1 %vm1301_vm3, %v2728_v24 }
 0x49b   : > { %7087 = vmatpush3.bf16.msra.mxu0 %v7664_v45  ;;  %7077 = vmatpush3.bf16.msra.mxu1 %v7665_v0 }
 0x49c   : > { %7100 = vmatprep.subr.bf16.mxu0 %v8313_v2  ;;  %7078 = vmatprep.subr.bf16.mxu1 %v8313_v2 }
 0x49d   : > { %7080 = vmatprep.mubr.msk.bf16.mxu1 %vm8314_vm1, %v8313_v2 }
 0x49e   : > { %7089 = vmatmul.mubr.msk.bf16.vlgmr.msra.gmra.mrb[56].mxu0 %vm1301_vm3, %v2728_v24 }
 0x49f   : > { %7101 = vmatpush3.bf16.msra.mxu0 %v7666_v1  ;;  %7079 = vmatpush3.bf16.msra.mxu1 %v7667_v42  ;;  %v1069_v1 = vcombine.high %v8900_v17, %v8900_v17 }
 0x4a0   : > { %7102 = vmatprep.subr.bf16.mxu0 %v8313_v2  ;;  %7092 = vmatprep.subr.bf16.mxu1 %v8313_v2 }
 0x4a1   : > { %7104 = vmatprep.mubr.msk.bf16.mxu0 %vm8314_vm1, %v8313_v2 }
 0x4a2   : > { %7081 = vmatmul.mubr.msk.bf16.vlgmr.msra.gmra.mrb[52].mxu1 %vm1301_vm3, %v2728_v24 }
 0x4a3   : > { %7103 = vmatpush3.bf16.msra.mxu0 %v7668_v3  ;;  %7093 = vmatpush3.bf16.msra.mxu1 %v7669_v6 }
 0x4a4   : > { %7094 = vmatprep.subr.bf16.mxu1 %v8313_v2  ;;  %7116 = vmatprep.subr.bf16.mxu0 %v8313_v2 }
 0x4a5   : > { %7096 = vmatprep.mubr.msk.bf16.mxu1 %vm8314_vm1, %v8313_v2 }
 0x4a6   : > { %7105 = vmatmul.mubr.msk.bf16.vlgmr.msra.gmra.mrb[60].mxu0 %vm1301_vm3, %v2728_v24 }
 0x4a7   : > { %7095 = vmatpush3.bf16.msra.mxu1 %v7670_v8  ;;  %7117 = vmatpush3.bf16.msra.mxu0 %v7671_v11  ;;  %v9292_v11 = vld [vmem:[#allocation11] ss:$0 sm:$0xff] }
 0x4a8   : > { %7108 = vmatprep.subr.bf16.mxu1 %v8313_v2  ;;  %7118 = vmatprep.subr.bf16.mxu0 %v8313_v2 }
 0x4a9   : > { %7120 = vmatprep.mubr.msk.bf16.mxu0 %vm8314_vm1, %v8313_v2 }
 0x4aa   : > { %7097 = vmatmul.mubr.msk.bf16.vlgmr.msra.gmra.mrb[56].mxu1 %vm1301_vm3, %v2729_v47 }
 0x4ab   : > { %7109 = vmatpush3.bf16.msra.mxu1 %v7672_v13  ;;  %7119 = vmatpush3.bf16.msra.mxu0 %v7673_v15 }
 0x4ac   : > { %7110 = vmatprep.subr.bf16.mxu1 %v8313_v2  ;;  %7112 = vmatprep.mubr.msk.bf16.mxu1 %vm8314_vm1, %v8313_v2 }
 0x4ad   : > { %7132 = vmatprep.subr.bf16.mxu0 %v8313_v2 }
 0x4ae   : > { %7121 = vmatmul.mubr.msk.bf16.vlgmr.msra.gmra.mrb[64].mxu0 %vm1301_vm3, %v2728_v24 }
 0x4af   : > { %7111 = vmatpush3.bf16.msra.mxu1 %v7674_v25  ;;  %7136 = vmatprep.mubr.msk.bf16.mxu0 %vm8314_vm1, %v8313_v2 }
 0x4b0   : > { %7124 = vmatprep.subr.bf16.mxu1 %v8313_v2  ;;  %7133 = vmatpush3.bf16.msra.mxu0 %v7678_v29 }
 0x4b1   : > { %7134 = vmatprep.subr.bf16.mxu0 %v8313_v2 }
 0x4b2   : > { %7113 = vmatmul.mubr.msk.bf16.vlgmr.msra.gmra.mrb[60].mxu1 %vm1301_vm3, %v2728_v24 }
 0x4b3   : > { %7128 = vmatprep.mubr.msk.bf16.mxu1 %vm8314_vm1, %v8313_v2  ;;  %7125 = vmatpush3.bf16.msra.mxu1 %v7675_v27 }
 0x4b4   : > { %7126 = vmatprep.subr.bf16.mxu1 %v8313_v2  ;;  %7135 = vmatpush3.bf16.msra.mxu0 %v7680_v30 }
 0x4b5   : > { %7148 = vmatprep.subr.bf16.mxu0 %v8313_v2 }
 0x4b7   : > { %7127 = vmatpush3.bf16.msra.mxu1 %v7676_v55 }
 0x4b8   : > { %7140 = vmatprep.subr.bf16.mxu1 %v8313_v2 }
 0x561   : > { %v2795_v52 = vpop.f32.mrb[48].mxu0 }
 0x562   : > { %v7058_v35 = vpop.f32.mrb[49].mxu0 }
 0x563   : > { %v2798_v36 = vpop.f32.mrb[50].mxu0 }
 0x564   : > { %v7059_v37 = vpop.f32.mrb[51].mxu0 }
 0x565   : > { %v1162_v37 = vcombine.high %v8902_v18, %v8902_v18 }
 0x569   : > { %v2913_v5 = vpop.f32.mrb[52].mxu0 }
 0x56a   : > { %v7074_v38 = vpop.f32.mrb[53].mxu0 }
 0x56b   : > { %v2916_v40 = vpop.f32.mrb[54].mxu0 }
 0x56c   : > { %v7075_v41 = vpop.f32.mrb[55].mxu0 }
 0x56d   : > { %v2850_v9 = vpop.f32.mrb[48].mxu1 }
 0x56e   : > { %v2851_v44 = vadd.f32 %v2850_v9, %v2795_v52  ;;  %v7066_v47 = vpop.f32.mrb[49].mxu1 }
 0x56f   : > { %v2853_v56 = vpop.f32.mrb[50].mxu1  ;;  %v9297_v47 = vld [vmem:[#allocation12] ss:$0 sm:$0xff] }
 0x570   : > { %v2856_v46 = vadd.f32 %v9022_v14, %v2851_v44  ;;  %v7067_v59 = vpop.f32.mrb[51].mxu1 }
 0x571   : > { %v3024_v33 = vpop.f32.mrb[56].mxu0 }
 0x572   : > { %v6459_v7 = vmul.f32 -1.442695, %v2856_v46  ;;  %v7090_v57 = vpop.f32.mrb[57].mxu0  ;;  %v3025_v18 = vadd.f32 %v9045_v4, %v3024_v33 }
 0x573   : > { %v3027_v58 = vpop.f32.mrb[58].mxu0 }
 0x574   : > { %7809 = vpow2.f32 %v6459_v7  ;;  %v7091_v23 = vpop.f32.mrb[59].mxu0 }
 0x575   : > { %v2965_v61 = vpop.f32.mrb[52].mxu1 }
 0x576   : > { %v2966_v51 = vadd.f32 %v2965_v61, %v2913_v5  ;;  %v7082_v22 = vpop.f32.mrb[53].mxu1 }
 0x577   : > { %v2968_v45 = vpop.f32.mrb[54].mxu1 }
 0x578   : > { %v2971_v0 = vadd.f32 %v9030_v34, %v2966_v51  ;;  %v7083_v24 = vpop.f32.mrb[55].mxu1 }
 0x579   : > { %v3186_v42 = vpop.f32.mrb[60].mxu0 }
 0x57a   : > { %v6466_v3 = vmul.f32 -1.442695, %v2971_v0  ;;  %v3192_v14 = vadd.f32 %v3186_v42, %v1069_v1  ;;  %v7106_v6 = vpop.f32.mrb[61].mxu0  ;;  %v9302_v0 = vld [vmem:[#allocation15] ss:$0 sm:$0xff] }
 0x57b   : > { %v3189_v8 = vpop.f32.mrb[62].mxu0 }
 0x57c   : > { %7811 = vpow2.f32 %v6466_v3  ;;  %v3193_v13 = vadd.f32 %v9292_v11, %v3192_v14  ;;  %v7107_v15 = vpop.f32.mrb[63].mxu0  ;;  %v3106_v8 = vpop.permute.xlu0 %3105 }
 0x57d   : > { %v3080_v25 = vpop.f32.mrb[56].mxu1  ;;  %v7677_v15 = vld [vmem:[#allocation17] sm:$0xff]  }
 0x57e   : > { %v7810_v27 = vpop.eup %7809  ;;  %v6478_v55 = vmul.f32 -1.442695, %v3193_v13  ;;  %v7098_v29 = vpop.f32.mrb[57].mxu1  ;;  %v3081_v7 = vadd.f32 %v9039_v26, %v3080_v25 }
 0x57f   : > { %v2860_v34 = vadd.f32 1.0, %v7810_v27  ;;  %v3083_v30 = vpop.f32.mrb[58].mxu1 }
 0x580   : > { %7813 = vpow2.f32 %v6478_v55  ;;  %v7099_v28 = vpop.f32.mrb[59].mxu1 }
 0x581   : > { %7815 = vrcp.f32 %v2860_v34  ;;  %v3315_v17 = vpop.f32.mrb[64].mxu0 }
 0x582   : > { %v7122_v52 = vpop.f32.mrb[65].mxu0  ;;  %v3316_v24 = vadd.f32 %v9302_v0, %v3315_v17  ;;  %v7681_v17 = vld [vmem:[%s9954_s16] sm:$0xff]  }
 0x583   : > { %v3318_v35 = vpop.f32.mrb[66].mxu0 }
 0x584   : > { %v7123_v36 = vpop.f32.mrb[67].mxu0 }
 0x585   : > { %v3250_v5 = vpop.f32.mrb[60].mxu1 }
 0x586   : > { %v7812_v38 = vpop.eup %7811  ;;  %v3256_v40 = vadd.f32 %v3250_v5, %v1162_v37  ;;  %v7114_v41 = vpop.f32.mrb[61].mxu1  ;;  %v7682_v37 = vld [vmem:[%s10051_s21] sm:$0xff]   ;;  %v7683_v5 = vld [vmem:[%s9954_s16 + $0x8] sm:$0xff]  }
 0x587   : > { %v2975_v9 = vadd.f32 1.0, %v7812_v38  ;;  %v3253_v44 = vpop.f32.mrb[62].mxu1  ;;  %v7684_v38 = vld [vmem:[%s10051_s21 + $0x8] sm:$0xff]   ;;  %v7686_v41 = vld [vmem:[#allocation18] sm:$0xff]  }
 0x588   : > { %v3257_v56 = vadd.f32 %v9297_v47, %v3256_v40  ;;  %v7115_v46 = vpop.f32.mrb[63].mxu1  ;;  %v7685_v40 = vld [vmem:[%s10048_s2] sm:$0xff]  }
 0x589   : > { %7817 = vrcp.f32 %v2975_v9  ;;  %v7687_v9 = vld [vmem:[%s10048_s2 + $0x8] sm:$0xff]   ;;  %v7688_v44 = vld [vmem:[#allocation18 + $0x8] sm:$0xff]  }
 0x58a   : > { %v7814_v59 = vpop.eup %7813  ;;  %v6482_v57 = vmul.f32 -1.442695, %v3257_v56  ;;  %v7689_v56 = vld [vmem:[%s9947_s9] sm:$0xff]  }
 0x58b   : > { %v7816_v58 = vpop.eup %7815  ;;  %v3197_v23 = vadd.f32 1.0, %v7814_v59  ;;  %v7690_v46 = vld [vmem:[%s10050_s11] sm:$0xff]   ;;  %v7691_v59 = vld [vmem:[%s9947_s9 + $0x8] sm:$0xff]  }
 0x58c   : > { %v3086_v61 = vmul.f32 %v7816_v58, %v3081_v7  ;;  %7819 = vpow2.f32 %v6482_v57  ;;  %v7692_v7 = vld [vmem:[%s10050_s11 + $0x8] sm:$0xff]   ;;  %v7693_v57 = vld [vmem:[%s9955_s17] sm:$0xff]  }
 0x58d   : > { %7821 = vrcp.f32 %v3197_v23  ;;  %v7694_v58 = vld [vmem:[%s9955_s17 + $0x8] sm:$0xff]   ;;  %v7697_v23 = vld [vmem:[%s9952_s14] sm:$0xff]  }
 0x58e   : > { %v3087_v51 = vadd.f32 %v3086_v61, %v3025_v18  ;;  %v7699_v18 = vld [vmem:[%s9952_s14 + $0x8] sm:$0xff]  }
 0x58f   : > { %v6540_v61 = vld [vmem:[%s8768_s20 + $0x8] sm:$0x3] }
 0x590   : > { %7823 = vtanh.f32 %v3087_v51  ;;  %4305 = vperm.xlu0 %7610, %v6540_v61  }
 0x593   : > { %v7818_v22 = vpop.eup %7817 }
 0x594   : > { %v3089_v3 = vsub.f32 1.0, %v7818_v22  ;;  %v3091_v33 = vmul.f32 %v7818_v22, %v9183_v43 }
 0x596   : > { %v7820_v45 = vpop.eup %7819 }
 0x597   : > { %v7822_v1 = vpop.eup %7821  ;;  %v3261_v42 = vadd.f32 1.0, %v7820_v45 }
 0x598   : > { %v3321_v26 = vmul.f32 %v7822_v1, %v3316_v24 }
 0x599   : > { %7825 = vrcp.f32 %v3261_v42 }
 0x59a   : > { %v7824_v14 = vpop.eup %7823  ;;  %v3322_v6 = vadd.f32 %v3321_v26, %v8918_v50 }
 0x59b   : > { %v3090_v4 = vmul.f32 %v7824_v14, %v3089_v3 }
 0x59c   : > { %7827 = vtanh.f32 %v3322_v6 }
 0x59d   : > { %v9308_v13 = vadd.f32 %v3091_v33, %v3090_v4 }
 0x59f   : > { %v3108_v25 = vsel %vm3102_vm15, %v9308_v13, %v3106_v8  ;;  %v3329_v27 = vpack.c.bf16 %v9308_v13, %v9308_v13  ;;  %v9416_v8 = vld [vmem:[%s10053_s13] ss:$0 sm:$0xff] }
 0x5a0   : > { %v3116_v55 = vrot.slane %v3108_v25, %v8785_v21 }
 0x5a1   : > { %7129 = vmatmul.mubr.msk.bf16.vlgmr.msra.gmra.mrb[64].mxu1 %vm1301_vm3, %v3329_v27 }
 0x5a2   : > { %v3117_v50 = vcombine.high %v3116_v55, %v3116_v55  ;;  %v3124_v43 = vrot.slane %v3116_v55, %v8785_v21  ;;  %7141 = vmatpush3.bf16.msra.mxu1 %v7677_v15  ;;  %7144 = vmatprep.mubr.msk.bf16.mxu1 %vm8314_vm1, %v8313_v2 }
 0x5a3   : > { %v7826_v29 = vpop.eup %7825  ;;  %7142 = vmatprep.subr.bf16.mxu1 %v8313_v2 }
 0x5a4   : > { %v3324_v34 = vsub.f32 1.0, %v7826_v29  ;;  %v3131_v30 = vrot.slane %v3117_v50, %v8785_v21  ;;  %3134 = vst.msk [vmem:[%s8770_s24 + $0x2] sm:$0x1] %vm1933_vm13, %v3124_v43  ;;  %v3326_v35 = vmul.f32 %v7826_v29, %v9205_v63 }
 0x5a6   : > { %v7828_v28 = vpop.eup %7827  ;;  %3135 = vst.msk [vmem:[%s8770_s24 + $0xa] sm:$0x1] %vm1933_vm13, %v3131_v30  ;;  %7143 = vmatpush3.bf16.msra.mxu1 %v7679_v60 }
 0x5a7   : > { %v3325_v52 = vmul.f32 %v7828_v28, %v3324_v34  ;;  %7156 = vmatprep.subr.bf16.mxu1 %v8313_v2 }
 0x5a9   : > { %7145 = vmatmul.mubr.msk.bf16.vlgmr.msra.gmra.mrb[68].mxu1 %vm1301_vm3, %v3329_v27  ;;  %v9330_v36 = vadd.f32 %v3326_v35, %v3325_v52 }
 0x5aa   : > { %7157 = vmatpush3.bf16.msra.mxu1 %v7681_v17  ;;  %7160 = vmatprep.mubr.msk.bf16.mxu1 %vm8314_vm1, %v8313_v2  ;;  %v9422_v17 = vld [vmem:[%s10054_s4] ss:$0 sm:$0xff] }
 0x5ab   : > { %v3328_v63 = vpack.c.bf16 %v9330_v36, %v9330_v36  ;;  %7158 = vmatprep.subr.bf16.mxu1 %v8313_v2 }
 0x5ad   : > { %7137 = vmatmul.mubr.msk.bf16.vlgmr.msra.gmra.mrb[68].mxu0 %vm1301_vm3, %v3328_v63 }
 0x5ae   : > { %7149 = vmatpush3.bf16.msra.mxu0 %v7682_v37  ;;  %7159 = vmatpush3.bf16.msra.mxu1 %v7683_v5 }
 0x5af   : > { %7150 = vmatprep.subr.bf16.mxu0 %v8313_v2  ;;  %7172 = vmatprep.subr.bf16.mxu1 %v8313_v2 }
 0x5b0   : > { %7152 = vmatprep.mubr.msk.bf16.mxu0 %vm8314_vm1, %v8313_v2 }
 0x5b1   : > { %7161 = vmatmul.mubr.msk.bf16.vlgmr.msra.gmra.mrb[72].mxu1 %vm1301_vm3, %v3328_v63 }
 0x5b2   : > { %7151 = vmatpush3.bf16.msra.mxu0 %v7684_v38  ;;  %7173 = vmatpush3.bf16.msra.mxu1 %v7685_v40 }
 0x5b3   : > { %7164 = vmatprep.subr.bf16.mxu0 %v8313_v2  ;;  %7174 = vmatprep.subr.bf16.mxu1 %v8313_v2 }
 0x5b4   : > { %7176 = vmatprep.mubr.msk.bf16.mxu1 %vm8314_vm1, %v8313_v2 }
 0x5b5   : > { %7153 = vmatmul.mubr.msk.bf16.vlgmr.msra.gmra.mrb[72].mxu0 %vm1301_vm3, %v3328_v63 }
 0x5b6   : > { %7165 = vmatpush3.bf16.msra.mxu0 %v7686_v41  ;;  %7175 = vmatpush3.bf16.msra.mxu1 %v7687_v9 }
 0x5b7   : > { %7166 = vmatprep.subr.bf16.mxu0 %v8313_v2  ;;  %7188 = vmatprep.subr.bf16.mxu1 %v8313_v2 }
 0x5b8   : > { %7168 = vmatprep.mubr.msk.bf16.mxu0 %vm8314_vm1, %v8313_v2 }
 0x5b9   : > { %7177 = vmatmul.mubr.msk.bf16.vlgmr.msra.gmra.mrb[76].mxu1 %vm1301_vm3, %v3328_v63 }
 0x5ba   : > { %7167 = vmatpush3.bf16.msra.mxu0 %v7688_v44  ;;  %7189 = vmatpush3.bf16.msra.mxu1 %v7689_v56 }
 0x5bb   : > { %7180 = vmatprep.subr.bf16.mxu0 %v8313_v2  ;;  %7190 = vmatprep.subr.bf16.mxu1 %v8313_v2 }
 0x5bc   : > { %7192 = vmatprep.mubr.msk.bf16.mxu1 %vm8314_vm1, %v8313_v2 }
 0x5bd   : > { %7169 = vmatmul.mubr.msk.bf16.vlgmr.msra.gmra.mrb[76].mxu0 %vm1301_vm3, %v3329_v27 }
 0x5be   : > { %7181 = vmatpush3.bf16.msra.mxu0 %v7690_v46  ;;  %7191 = vmatpush3.bf16.msra.mxu1 %v7691_v59 }
 0x5bf   : > { %7182 = vmatprep.subr.bf16.mxu0 %v8313_v2  ;;  %7184 = vmatprep.mubr.msk.bf16.mxu0 %vm8314_vm1, %v8313_v2 }
 0x5c0   : > { %7204 = vmatprep.subr.bf16.mxu1 %v8313_v2 }
 0x5c1   : > { %7193 = vmatmul.mubr.msk.bf16.vlgmr.msra.gmra.mrb[80].mxu1 %vm1301_vm3, %v3328_v63 }
 0x5c2   : > { %7183 = vmatpush3.bf16.msra.mxu0 %v7692_v7  ;;  %7208 = vmatprep.mubr.msk.bf16.mxu1 %vm8314_vm1, %v8313_v2 }
 0x5c3   : > { %7196 = vmatprep.subr.bf16.mxu0 %v8313_v2  ;;  %7205 = vmatpush3.bf16.msra.mxu1 %v7697_v23 }
 0x5c4   : > { %7206 = vmatprep.subr.bf16.mxu1 %v8313_v2 }
 0x5c5   : > { %7185 = vmatmul.mubr.msk.bf16.vlgmr.msra.gmra.mrb[80].mxu0 %vm1301_vm3, %v3328_v63 }
 0x5c6   : > { %7200 = vmatprep.mubr.msk.bf16.mxu0 %vm8314_vm1, %v8313_v2  ;;  %7197 = vmatpush3.bf16.msra.mxu0 %v7693_v57 }
 0x5c7   : > { %7198 = vmatprep.subr.bf16.mxu0 %v8313_v2  ;;  %7207 = vmatpush3.bf16.msra.mxu1 %v7699_v18 }
 0x5c8   : > { %7220 = vmatprep.subr.bf16.mxu1 %v8313_v2 }
 0x5ca   : > { %7199 = vmatpush3.bf16.msra.mxu0 %v7694_v58 }
 0x5cb   : > { %7212 = vmatprep.subr.bf16.mxu0 %v8313_v2 }
 0x674   : > { %v3395_v51 = vpop.f32.mrb[64].mxu1 }
 0x675   : > { %v7130_v22 = vpop.f32.mrb[65].mxu1 }
 0x676   : > { %v3398_v45 = vpop.f32.mrb[66].mxu1 }
 0x677   : > { %v7131_v24 = vpop.f32.mrb[67].mxu1 }
 0x67c   : > { %v3513_v1 = vpop.f32.mrb[68].mxu1 }
 0x67d   : > { %v7146_v42 = vpop.f32.mrb[69].mxu1 }
 0x67e   : > { %v3516_v26 = vpop.f32.mrb[70].mxu1 }
 0x67f   : > { %v7147_v3 = vpop.f32.mrb[71].mxu1 }
 0x680   : > { %v3450_v14 = vpop.f32.mrb[68].mxu0 }
 0x681   : > { %v3451_v6 = vadd.f32 %v3450_v14, %v3395_v51  ;;  %v7138_v4 = vpop.f32.mrb[69].mxu0 }
 0x682   : > { %v3453_v33 = vpop.f32.mrb[70].mxu0  ;;  %v9432_v4 = vld [vmem:[%s10055_s7] ss:$0 sm:$0xff] }
 0x683   : > { %v3456_v15 = vadd.f32 %v9416_v8, %v3451_v6  ;;  %v7139_v25 = vpop.f32.mrb[71].mxu0 }
 0x684   : > { %v3624_v27 = vpop.f32.mrb[72].mxu1 }
 0x685   : > { %v6492_v55 = vmul.f32 -1.442695, %v3456_v15  ;;  %v7162_v50 = vpop.f32.mrb[73].mxu1 }
 0x686   : > { %v3627_v43 = vpop.f32.mrb[74].mxu1  ;;  %v9438_v50 = vld [vmem:[%s10056_s0] ss:$0 sm:$0xff] }
 0x687   : > { %7829 = vpow2.f32 %v6492_v55  ;;  %v7163_v60 = vpop.f32.mrb[75].mxu1  ;;  %v3625_v43 = vadd.f32 %v9438_v50, %v3624_v27 }
 0x688   : > { %v3565_v29 = vpop.f32.mrb[72].mxu0 }
 0x689   : > { %v3566_v34 = vadd.f32 %v3565_v29, %v3513_v1  ;;  %v7154_v30 = vpop.f32.mrb[73].mxu0 }
 0x68a   : > { %v3568_v28 = vpop.f32.mrb[74].mxu0 }
 0x68b   : > { %v3571_v52 = vadd.f32 %v9422_v17, %v3566_v34  ;;  %v7155_v35 = vpop.f32.mrb[75].mxu0 }
 0x68c   : > { %v3786_v37 = vpop.f32.mrb[76].mxu1 }
 0x68d   : > { %v6499_v5 = vmul.f32 -1.442695, %v3571_v52  ;;  %v3792_v63 = vadd.f32 %v3786_v37, %v8898_v16  ;;  %v7178_v38 = vpop.f32.mrb[77].mxu1 }
 0x68e   : > { %v3789_v40 = vpop.f32.mrb[78].mxu1 }
 0x68f   : > { %7831 = vpow2.f32 %v6499_v5  ;;  %v3793_v41 = vadd.f32 %v9292_v11, %v3792_v63  ;;  %v7179_v9 = vpop.f32.mrb[79].mxu1 }
 0x690   : > { %v3680_v44 = vpop.f32.mrb[76].mxu0 }
 0x691   : > { %v7830_v56 = vpop.eup %7829  ;;  %v6511_v46 = vmul.f32 -1.442695, %v3793_v41  ;;  %v7170_v59 = vpop.f32.mrb[77].mxu0  ;;  %v3681_v33 = vadd.f32 %v9432_v4, %v3680_v44  ;;  %v7695_v44 = vld [vmem:[#allocation17] sm:$0xff]  }
 0x692   : > { %v3460_v7 = vadd.f32 1.0, %v7830_v56  ;;  %v3683_v57 = vpop.f32.mrb[78].mxu0  ;;  %v3706_v41 = vpop.permute.xlu1 %3705 }
 0x693   : > { %7833 = vpow2.f32 %v6511_v46  ;;  %v7171_v58 = vpop.f32.mrb[79].mxu0 }
 0x694   : > { %7835 = vrcp.f32 %v3460_v7  ;;  %v3915_v23 = vpop.f32.mrb[80].mxu1 }
 0x695   : > { %v7194_v18 = vpop.f32.mrb[81].mxu1  ;;  %v3916_v28 = vadd.f32 %v9302_v0, %v3915_v23 }
 0x696   : > { %v3918_v61 = vpop.f32.mrb[82].mxu1  ;;  %v7698_v18 = vld [vmem:[%s9954_s16] sm:$0xff]  }
 0x697   : > { %v7195_v51 = vpop.f32.mrb[83].mxu1 }
 0x698   : > { %v3850_v22 = vpop.f32.mrb[80].mxu0 }
 0x699   : > { %v7832_v45 = vpop.eup %7831  ;;  %v3856_v24 = vadd.f32 %v3850_v22, %v8896_v12  ;;  %v7186_v1 = vpop.f32.mrb[81].mxu0 }
 0x69a   : > { %v3575_v42 = vadd.f32 1.0, %v7832_v45  ;;  %v3853_v26 = vpop.f32.mrb[82].mxu0  ;;  %v7700_v45 = vld [vmem:[%s9954_s16 + $0x8] sm:$0xff]   ;;  %v7702_v1 = vld [vmem:[%s10048_s2] sm:$0xff]  }
 0x69b   : > { %v3857_v3 = vadd.f32 %v9297_v47, %v3856_v24  ;;  %v7187_v14 = vpop.f32.mrb[83].mxu0  ;;  %v7701_v24 = vld [vmem:[%s10051_s21] sm:$0xff]   ;;  %v7704_v26 = vld [vmem:[%s10048_s2 + $0x8] sm:$0xff]  }
 0x69c   : > { %7837 = vrcp.f32 %v3575_v42  ;;  %v7703_v42 = vld [vmem:[%s10051_s21 + $0x8] sm:$0xff]   ;;  %v7706_v14 = vld [vmem:[#allocation18 + $0x8] sm:$0xff]  }
 0x69d   : > { %v7834_v6 = vpop.eup %7833  ;;  %v6515_v15 = vmul.f32 -1.442695, %v3857_v3  ;;  %v7705_v3 = vld [vmem:[#allocation18] sm:$0xff]  }
 0x69e   : > { %v7836_v25 = vpop.eup %7835  ;;  %v3797_v55 = vadd.f32 1.0, %v7834_v6  ;;  %v7707_v6 = vld [vmem:[%s9947_s9] sm:$0xff]  }
 0x69f   : > { %v3686_v60 = vmul.f32 %v7836_v25, %v3681_v33  ;;  %7839 = vpow2.f32 %v6515_v15  ;;  %v7708_v33 = vld [vmem:[%s10050_s11] sm:$0xff]   ;;  %v7709_v15 = vld [vmem:[%s9947_s9 + $0x8] sm:$0xff]  }
 0x6a0   : > { %7841 = vrcp.f32 %v3797_v55  ;;  %v7710_v25 = vld [vmem:[%s10050_s11 + $0x8] sm:$0xff]   ;;  %v7711_v55 = vld [vmem:[%s9955_s17] sm:$0xff]  }
 0x6a1   : > { %v3687_v29 = vadd.f32 %v3686_v60, %v3625_v43  ;;  %v7712_v43 = vld [vmem:[%s9955_s17 + $0x8] sm:$0xff]   ;;  %v7714_v60 = vld [vmem:[%s9952_s14] sm:$0xff]  }
 0x6a3   : > { %7843 = vtanh.f32 %v3687_v29  ;;  %v7716_v29 = vld [vmem:[%s9952_s14 + $0x8] sm:$0xff]  }
 0x6a6   : > { %v7838_v34 = vpop.eup %7837 }
 0x6a7   : > { %v3689_v5 = vsub.f32 1.0, %v7838_v34  ;;  %v3691_v27 = vmul.f32 %v7838_v34, %v9308_v13  ;;  %v6573_v34 = vld [vmem:[%s8768_s20 + $0xa] sm:$0x3] }
 0x6a8   : > { %4905 = vperm.xlu1 %7611, %v6573_v34  }
 0x6a9   : > { %v7840_v30 = vpop.eup %7839 }
 0x6aa   : > { %v7842_v52 = vpop.eup %7841  ;;  %v3861_v35 = vadd.f32 1.0, %v7840_v30 }
 0x6ab   : > { %v3921_v37 = vmul.f32 %v7842_v52, %v3916_v28 }
 0x6ac   : > { %7845 = vrcp.f32 %v3861_v35 }
 0x6ad   : > { %v7844_v63 = vpop.eup %7843  ;;  %v3922_v38 = vadd.f32 %v3921_v37, %v8916_v49 }
 0x6ae   : > { %v3690_v40 = vmul.f32 %v7844_v63, %v3689_v5 }
 0x6af   : > { %7847 = vtanh.f32 %v3922_v38 }
 0x6b0   : > { %v9445_v9 = vadd.f32 %v3691_v27, %v3690_v40 }
 0x6b2   : > { %v3708_v56 = vsel %vm3702_vm0, %v9445_v9, %v3706_v41  ;;  %v3929_v46 = vpack.c.bf16 %v9445_v9, %v9445_v9 }
 0x6b3   : > { %v3716_v59 = vrot.slane %v3708_v56, %v8785_v21 }
 0x6b4   : > { %7201 = vmatmul.mubr.msk.bf16.vlgmr.msra.gmra.mrb[84].mxu0 %vm1301_vm3, %v3929_v46 }
 0x6b5   : > { %v3717_v49 = vcombine.high %v3716_v59, %v3716_v59  ;;  %v3724_v13 = vrot.slane %v3716_v59, %v8785_v21  ;;  %7213 = vmatpush3.bf16.msra.mxu0 %v7695_v44  ;;  %7216 = vmatprep.mubr.msk.bf16.mxu0 %vm8314_vm1, %v8313_v2 }
 0x6b6   : > { %v7846_v7 = vpop.eup %7845  ;;  %7214 = vmatprep.subr.bf16.mxu0 %v8313_v2 }
 0x6b7   : > { %v3731_v57 = vrot.slane %v3717_v49, %v8785_v21  ;;  %3734 = vst.msk [vmem:[%s8770_s24 + $0x3] sm:$0x1] %vm1933_vm13, %v3724_v13  ;;  %v3924_v58 = vsub.f32 1.0, %v7846_v7  ;;  %v3926_v51 = vmul.f32 %v7846_v7, %v9330_v36 }
 0x6b9   : > { %v7848_v23 = vpop.eup %7847  ;;  %3735 = vst.msk [vmem:[%s8770_s24 + $0xb] sm:$0x1] %vm1933_vm13, %v3731_v57  ;;  %7215 = vmatpush3.bf16.msra.mxu0 %v7696_v10 }
 0x6ba   : > { %v3925_v61 = vmul.f32 %v7848_v23, %v3924_v58  ;;  %7228 = vmatprep.subr.bf16.mxu0 %v8313_v2 }
 0x6bc   : > { %7217 = vmatmul.mubr.msk.bf16.vlgmr.msra.gmra.mrb[88].mxu0 %vm1301_vm3, %v3929_v46  ;;  %v9467_v22 = vadd.f32 %v3926_v51, %v3925_v61 }
 0x6bd   : > { %7229 = vmatpush3.bf16.msra.mxu0 %v7698_v18  ;;  %7232 = vmatprep.mubr.msk.bf16.mxu0 %vm8314_vm1, %v8313_v2 }
 0x6be   : > { %7230 = vmatprep.subr.bf16.mxu0 %v8313_v2  ;;  %v3928_v36 = vpack.c.bf16 %v9467_v22, %v9467_v22 }
 0x6c0   : > { %7209 = vmatmul.mubr.msk.bf16.vlgmr.msra.gmra.mrb[84].mxu1 %vm1301_vm3, %v3928_v36 }
 0x6c1   : > { %7231 = vmatpush3.bf16.msra.mxu0 %v7700_v45  ;;  %7221 = vmatpush3.bf16.msra.mxu1 %v7701_v24  ;;  %v1085_v45 = vcombine.high %v8898_v16, %v8898_v16 }
 0x6c2   : > { %7244 = vmatprep.subr.bf16.mxu0 %v8313_v2  ;;  %7222 = vmatprep.subr.bf16.mxu1 %v8313_v2 }
 0x6c3   : > { %7224 = vmatprep.mubr.msk.bf16.mxu1 %vm8314_vm1, %v8313_v2 }
 0x6c4   : > { %7233 = vmatmul.mubr.msk.bf16.vlgmr.msra.gmra.mrb[92].mxu0 %vm1301_vm3, %v3928_v36 }
 0x6c5   : > { %7245 = vmatpush3.bf16.msra.mxu0 %v7702_v1  ;;  %7223 = vmatpush3.bf16.msra.mxu1 %v7703_v42 }
 0x6c6   : > { %7246 = vmatprep.subr.bf16.mxu0 %v8313_v2  ;;  %7236 = vmatprep.subr.bf16.mxu1 %v8313_v2 }
 0x6c7   : > { %7248 = vmatprep.mubr.msk.bf16.mxu0 %vm8314_vm1, %v8313_v2 }
 0x6c8   : > { %7225 = vmatmul.mubr.msk.bf16.vlgmr.msra.gmra.mrb[88].mxu1 %vm1301_vm3, %v3928_v36 }
 0x6c9   : > { %7247 = vmatpush3.bf16.msra.mxu0 %v7704_v26  ;;  %7237 = vmatpush3.bf16.msra.mxu1 %v7705_v3 }
 0x6ca   : > { %7238 = vmatprep.subr.bf16.mxu1 %v8313_v2  ;;  %7260 = vmatprep.subr.bf16.mxu0 %v8313_v2 }
 0x6cb   : > { %7240 = vmatprep.mubr.msk.bf16.mxu1 %vm8314_vm1, %v8313_v2 }
 0x6cc   : > { %7249 = vmatmul.mubr.msk.bf16.vlgmr.msra.gmra.mrb[96].mxu0 %vm1301_vm3, %v3928_v36 }
 0x6cd   : > { %7239 = vmatpush3.bf16.msra.mxu1 %v7706_v14  ;;  %7261 = vmatpush3.bf16.msra.mxu0 %v7707_v6 }
 0x6ce   : > { %7252 = vmatprep.subr.bf16.mxu1 %v8313_v2  ;;  %7262 = vmatprep.subr.bf16.mxu0 %v8313_v2 }
 0x6cf   : > { %7264 = vmatprep.mubr.msk.bf16.mxu0 %vm8314_vm1, %v8313_v2 }
 0x6d0   : > { %7241 = vmatmul.mubr.msk.bf16.vlgmr.msra.gmra.mrb[92].mxu1 %vm1301_vm3, %v3929_v46 }
 0x6d1   : > { %7253 = vmatpush3.bf16.msra.mxu1 %v7708_v33  ;;  %7263 = vmatpush3.bf16.msra.mxu0 %v7709_v15 }
 0x6d2   : > { %7254 = vmatprep.subr.bf16.mxu1 %v8313_v2  ;;  %7256 = vmatprep.mubr.msk.bf16.mxu1 %vm8314_vm1, %v8313_v2 }
 0x6d3   : > { %7276 = vmatprep.subr.bf16.mxu0 %v8313_v2 }
 0x6d4   : > { %7265 = vmatmul.mubr.msk.bf16.vlgmr.msra.gmra.mrb[100].mxu0 %vm1301_vm3, %v3928_v36 }
 0x6d5   : > { %7255 = vmatpush3.bf16.msra.mxu1 %v7710_v25  ;;  %7280 = vmatprep.mubr.msk.bf16.mxu0 %vm8314_vm1, %v8313_v2 }
 0x6d6   : > { %7268 = vmatprep.subr.bf16.mxu1 %v8313_v2  ;;  %7277 = vmatpush3.bf16.msra.mxu0 %v7714_v60 }
 0x6d7   : > { %7278 = vmatprep.subr.bf16.mxu0 %v8313_v2 }
 0x6d8   : > { %7257 = vmatmul.mubr.msk.bf16.vlgmr.msra.gmra.mrb[96].mxu1 %vm1301_vm3, %v3928_v36 }
 0x6d9   : > { %7272 = vmatprep.mubr.msk.bf16.mxu1 %vm8314_vm1, %v8313_v2  ;;  %7269 = vmatpush3.bf16.msra.mxu1 %v7711_v55 }
 0x6da   : > { %7270 = vmatprep.subr.bf16.mxu1 %v8313_v2  ;;  %7279 = vmatpush3.bf16.msra.mxu0 %v7716_v29 }
 0x6db   : > { %7292 = vmatprep.subr.bf16.mxu0 %v8313_v2 }
 0x6dd   : > { %7271 = vmatpush3.bf16.msra.mxu1 %v7712_v43 }
 0x6de   : > { %7284 = vmatprep.subr.bf16.mxu1 %v8313_v2 }
 0x787   : > { %v3995_v30 = vpop.f32.mrb[84].mxu0 }
 0x788   : > { %v7202_v28 = vpop.f32.mrb[85].mxu0 }
 0x789   : > { %v3998_v52 = vpop.f32.mrb[86].mxu0  ;;  %v1178_v28 = vcombine.high %v8896_v12, %v8896_v12 }
 0x78a   : > { %v7203_v35 = vpop.f32.mrb[87].mxu0 }
 0x78f   : > { %v4113_v37 = vpop.f32.mrb[88].mxu0 }
 0x790   : > { %v7218_v5 = vpop.f32.mrb[89].mxu0 }
 0x791   : > { %v4116_v63 = vpop.f32.mrb[90].mxu0 }
 0x792   : > { %v7219_v38 = vpop.f32.mrb[91].mxu0 }
 0x793   : > { %v4050_v40 = vpop.f32.mrb[84].mxu1 }
 0x794   : > { %v4051_v27 = vadd.f32 %v4050_v40, %v3995_v30  ;;  %v7210_v41 = vpop.f32.mrb[85].mxu1 }
 0x795   : > { %v4053_v44 = vpop.f32.mrb[86].mxu1 }
 0x796   : > { %v4056_v56 = vadd.f32 %v9416_v8, %v4051_v27  ;;  %v7211_v46 = vpop.f32.mrb[87].mxu1 }
 0x797   : > { %v4224_v59 = vpop.f32.mrb[92].mxu0 }
 0x798   : > { %v6525_v49 = vmul.f32 -1.442695, %v4056_v56  ;;  %v7234_v13 = vpop.f32.mrb[93].mxu0 }
 0x799   : > { %v4227_v10 = vpop.f32.mrb[94].mxu0 }
 0x79a   : > { %7849 = vpow2.f32 %v6525_v49  ;;  %v7235_v7 = vpop.f32.mrb[95].mxu0  ;;  %v4225_v49 = vadd.f32 %v9438_v50, %v4224_v59 }
 0x79b   : > { %v4165_v57 = vpop.f32.mrb[88].mxu1 }
 0x79c   : > { %v4166_v58 = vadd.f32 %v4165_v57, %v4113_v37  ;;  %v7226_v23 = vpop.f32.mrb[89].mxu1 }
 0x79d   : > { %v4168_v18 = vpop.f32.mrb[90].mxu1 }
 0x79e   : > { %v4171_v61 = vadd.f32 %v9422_v17, %v4166_v58  ;;  %v7227_v51 = vpop.f32.mrb[91].mxu1 }
 0x79f   : > { %v4386_v24 = vpop.f32.mrb[96].mxu0 }
 0x7a0   : > { %v6532_v36 = vmul.f32 -1.442695, %v4171_v61  ;;  %v4392_v1 = vadd.f32 %v4386_v24, %v1085_v45  ;;  %v7250_v42 = vpop.f32.mrb[97].mxu0  ;;  %v4306_v24 = vpop.permute.xlu0 %4305 }
 0x7a1   : > { %v4389_v26 = vpop.f32.mrb[98].mxu0 }
 0x7a2   : > { %7851 = vpow2.f32 %v6532_v36  ;;  %v4393_v3 = vadd.f32 %v9292_v11, %v4392_v1  ;;  %v7251_v14 = vpop.f32.mrb[99].mxu0  ;;  %v7713_v1 = vld [vmem:[#allocation17] sm:$0xff]  }
 0x7a3   : > { %v4280_v6 = vpop.f32.mrb[92].mxu1 }
 0x7a4   : > { %v7850_v33 = vpop.eup %7849  ;;  %v6544_v15 = vmul.f32 -1.442695, %v4393_v3  ;;  %v7242_v25 = vpop.f32.mrb[93].mxu1  ;;  %v4281_v41 = vadd.f32 %v9432_v4, %v4280_v6 }
 0x7a5   : > { %v4060_v55 = vadd.f32 1.0, %v7850_v33  ;;  %v4283_v43 = vpop.f32.mrb[94].mxu1 }
 0x7a6   : > { %7853 = vpow2.f32 %v6544_v15  ;;  %v7243_v60 = vpop.f32.mrb[95].mxu1  ;;  %v7717_v15 = vld [vmem:[%s9954_s16] sm:$0xff]  }
 0x7a7   : > { %7855 = vrcp.f32 %v4060_v55  ;;  %v4515_v29 = vpop.f32.mrb[100].mxu0  ;;  %v7718_v60 = vld [vmem:[%s10051_s21] sm:$0xff]  }
 0x7a8   : > { %v7266_v16 = vpop.f32.mrb[101].mxu0  ;;  %v4516_v57 = vadd.f32 %v9302_v0, %v4515_v29  ;;  %v7719_v29 = vld [vmem:[%s9954_s16 + $0x8] sm:$0xff]  }
 0x7a9   : > { %v4518_v34 = vpop.f32.mrb[102].mxu0  ;;  %v7720_v16 = vld [vmem:[%s10051_s21 + $0x8] sm:$0xff]  }
 0x7aa   : > { %v7267_v30 = vpop.f32.mrb[103].mxu0  ;;  %v7721_v34 = vld [vmem:[%s10048_s2] sm:$0xff]  }
 0x7ab   : > { %v4450_v52 = vpop.f32.mrb[96].mxu1  ;;  %v7722_v30 = vld [vmem:[#allocation18] sm:$0xff]  }
 0x7ac   : > { %v7852_v35 = vpop.eup %7851  ;;  %v4456_v11 = vadd.f32 %v4450_v52, %v1178_v28  ;;  %v7258_v37 = vpop.f32.mrb[97].mxu1  ;;  %v7723_v28 = vld [vmem:[%s10048_s2 + $0x8] sm:$0xff]   ;;  %v7724_v52 = vld [vmem:[#allocation18 + $0x8] sm:$0xff]  }
 0x7ad   : > { %v4175_v5 = vadd.f32 1.0, %v7852_v35  ;;  %v4453_v63 = vpop.f32.mrb[98].mxu1  ;;  %v7725_v35 = vld [vmem:[%s9947_s9] sm:$0xff]   ;;  %v7727_v37 = vld [vmem:[%s9947_s9 + $0x8] sm:$0xff]  }
 0x7ae   : > { %v4457_v38 = vadd.f32 %v9297_v47, %v4456_v11  ;;  %v7259_v40 = vpop.f32.mrb[99].mxu1  ;;  %v7726_v11 = vld [vmem:[%s10050_s11] sm:$0xff]  }
 0x7af   : > { %7857 = vrcp.f32 %v4175_v5  ;;  %v7728_v5 = vld [vmem:[%s10050_s11 + $0x8] sm:$0xff]   ;;  %v7729_v63 = vld [vmem:[%s9955_s17] sm:$0xff]  }
 0x7b0   : > { %v7854_v27 = vpop.eup %7853  ;;  %v6548_v44 = vmul.f32 -1.442695, %v4457_v38  ;;  %v7730_v38 = vld [vmem:[%s9955_s17 + $0x8] sm:$0xff]   ;;  %v7733_v40 = vld [vmem:[%s9952_s14] sm:$0xff]  }
 0x7b1   : > { %v7856_v56 = vpop.eup %7855  ;;  %v4397_v46 = vadd.f32 1.0, %v7854_v27  ;;  %v7735_v27 = vld [vmem:[%s9952_s14 + $0x8] sm:$0xff]  }
 0x7b2   : > { %v4286_v13 = vmul.f32 %v7856_v56, %v4281_v41  ;;  %7859 = vpow2.f32 %v6548_v44  ;;  %v6606_v41 = vld [vmem:[%s8768_s20 + $0xc] sm:$0x3] }
 0x7b3   : > { %7861 = vrcp.f32 %v4397_v46  ;;  %5505 = vperm.xlu0 %7610, %v6606_v41   ;;  %v9676_v41 = vld [vmem:[#allocation12] ss:$0 sm:$0xff] }
 0x7b4   : > { %v4287_v12 = vadd.f32 %v4286_v13, %v4225_v49 }
 0x7b6   : > { %7863 = vtanh.f32 %v4287_v12 }
 0x7b9   : > { %v7858_v10 = vpop.eup %7857 }
 0x7ba   : > { %v4289_v18 = vsub.f32 1.0, %v7858_v10  ;;  %v4291_v59 = vmul.f32 %v7858_v10, %v9445_v9 }
 0x7bc   : > { %v7860_v7 = vpop.eup %7859 }
 0x7bd   : > { %v7862_v47 = vpop.eup %7861  ;;  %v4461_v58 = vadd.f32 1.0, %v7860_v7 }
 0x7be   : > { %v4521_v23 = vmul.f32 %v7862_v47, %v4516_v57 }
 0x7bf   : > { %7865 = vrcp.f32 %v4461_v58 }
 0x7c0   : > { %v7864_v61 = vpop.eup %7863  ;;  %v4522_v51 = vadd.f32 %v4521_v23, %v8920_v53 }
 0x7c1   : > { %v4290_v45 = vmul.f32 %v7864_v61, %v4289_v18 }
 0x7c2   : > { %7867 = vtanh.f32 %v4522_v51 }
 0x7c3   : > { %v9564_v36 = vadd.f32 %v4291_v59, %v4290_v45 }
 0x7c5   : > { %v4308_v0 = vsel %vm4302_vm2, %v9564_v36, %v4306_v24  ;;  %v4529_v42 = vpack.c.bf16 %v9564_v36, %v9564_v36 }
 0x7c6   : > { %v4316_v26 = vrot.slane %v4308_v0, %v8785_v21 }
 0x7c7   : > { %7273 = vmatmul.mubr.msk.bf16.vlgmr.msra.gmra.mrb[100].mxu1 %vm1301_vm3, %v4529_v42 }
 0x7c8   : > { %v4317_v53 = vcombine.high %v4316_v26, %v4316_v26  ;;  %v4324_v9 = vrot.slane %v4316_v26, %v8785_v21  ;;  %7285 = vmatpush3.bf16.msra.mxu1 %v7713_v1  ;;  %7288 = vmatprep.mubr.msk.bf16.mxu1 %vm8314_vm1, %v8313_v2 }
 0x7c9   : > { %v7866_v3 = vpop.eup %7865  ;;  %7286 = vmatprep.subr.bf16.mxu1 %v8313_v2 }
 0x7ca   : > { %v4524_v14 = vsub.f32 1.0, %v7866_v3  ;;  %v4331_v6 = vrot.slane %v4317_v53, %v8785_v21  ;;  %4334 = vst.msk [vmem:[%s8770_s24 + $0x4] sm:$0x1] %vm1933_vm13, %v4324_v9  ;;  %v4526_v55 = vmul.f32 %v7866_v3, %v9467_v22 }
 0x7cc   : > { %v7868_v33 = vpop.eup %7867  ;;  %4335 = vst.msk [vmem:[%s8770_s24 + $0xc] sm:$0x1] %vm1933_vm13, %v4331_v6  ;;  %7287 = vmatpush3.bf16.msra.mxu1 %v7715_v39 }
 0x7cd   : > { %v4525_v25 = vmul.f32 %v7868_v33, %v4524_v14  ;;  %7300 = vmatprep.subr.bf16.mxu1 %v8313_v2 }
 0x7cf   : > { %7289 = vmatmul.mubr.msk.bf16.vlgmr.msra.gmra.mrb[104].mxu1 %vm1301_vm3, %v4529_v42  ;;  %v9586_v43 = vadd.f32 %v4526_v55, %v4525_v25 }
 0x7d0   : > { %7301 = vmatpush3.bf16.msra.mxu1 %v7717_v15  ;;  %7304 = vmatprep.mubr.msk.bf16.mxu1 %vm8314_vm1, %v8313_v2  ;;  %v9672_v15 = vld [vmem:[#allocation11] ss:$0 sm:$0xff] }
 0x7d1   : > { %v4528_v22 = vpack.c.bf16 %v9586_v43, %v9586_v43  ;;  %7302 = vmatprep.subr.bf16.mxu1 %v8313_v2 }
 0x7d3   : > { %7281 = vmatmul.mubr.msk.bf16.vlgmr.msra.gmra.mrb[104].mxu0 %vm1301_vm3, %v4528_v22 }
 0x7d4   : > { %7293 = vmatpush3.bf16.msra.mxu0 %v7718_v60  ;;  %7303 = vmatpush3.bf16.msra.mxu1 %v7719_v29 }
 0x7d5   : > { %7294 = vmatprep.subr.bf16.mxu0 %v8313_v2  ;;  %7316 = vmatprep.subr.bf16.mxu1 %v8313_v2 }
 0x7d6   : > { %7296 = vmatprep.mubr.msk.bf16.mxu0 %vm8314_vm1, %v8313_v2 }
 0x7d7   : > { %7305 = vmatmul.mubr.msk.bf16.vlgmr.msra.gmra.mrb[108].mxu1 %vm1301_vm3, %v4528_v22 }
 0x7d8   : > { %7295 = vmatpush3.bf16.msra.mxu0 %v7720_v16  ;;  %7317 = vmatpush3.bf16.msra.mxu1 %v7721_v34 }
 0x7d9   : > { %7308 = vmatprep.subr.bf16.mxu0 %v8313_v2  ;;  %7318 = vmatprep.subr.bf16.mxu1 %v8313_v2 }
 0x7da   : > { %7320 = vmatprep.mubr.msk.bf16.mxu1 %vm8314_vm1, %v8313_v2 }
 0x7db   : > { %7297 = vmatmul.mubr.msk.bf16.vlgmr.msra.gmra.mrb[108].mxu0 %vm1301_vm3, %v4528_v22 }
 0x7dc   : > { %7309 = vmatpush3.bf16.msra.mxu0 %v7722_v30  ;;  %7319 = vmatpush3.bf16.msra.mxu1 %v7723_v28 }
 0x7dd   : > { %7310 = vmatprep.subr.bf16.mxu0 %v8313_v2  ;;  %7332 = vmatprep.subr.bf16.mxu1 %v8313_v2 }
 0x7de   : > { %7312 = vmatprep.mubr.msk.bf16.mxu0 %vm8314_vm1, %v8313_v2 }
 0x7df   : > { %7321 = vmatmul.mubr.msk.bf16.vlgmr.msra.gmra.mrb[112].mxu1 %vm1301_vm3, %v4528_v22 }
 0x7e0   : > { %7311 = vmatpush3.bf16.msra.mxu0 %v7724_v52  ;;  %7333 = vmatpush3.bf16.msra.mxu1 %v7725_v35 }
 0x7e1   : > { %7324 = vmatprep.subr.bf16.mxu0 %v8313_v2  ;;  %7334 = vmatprep.subr.bf16.mxu1 %v8313_v2 }
 0x7e2   : > { %7336 = vmatprep.mubr.msk.bf16.mxu1 %vm8314_vm1, %v8313_v2 }
 0x7e3   : > { %7313 = vmatmul.mubr.msk.bf16.vlgmr.msra.gmra.mrb[112].mxu0 %vm1301_vm3, %v4529_v42 }
 0x7e4   : > { %7325 = vmatpush3.bf16.msra.mxu0 %v7726_v11  ;;  %7335 = vmatpush3.bf16.msra.mxu1 %v7727_v37 }
 0x7e5   : > { %7326 = vmatprep.subr.bf16.mxu0 %v8313_v2  ;;  %7328 = vmatprep.mubr.msk.bf16.mxu0 %vm8314_vm1, %v8313_v2 }
 0x7e6   : > { %7348 = vmatprep.subr.bf16.mxu1 %v8313_v2 }
 0x7e7   : > { %7337 = vmatmul.mubr.msk.bf16.vlgmr.msra.gmra.mrb[116].mxu1 %vm1301_vm3, %v4528_v22 }
 0x7e8   : > { %7327 = vmatpush3.bf16.msra.mxu0 %v7728_v5  ;;  %7352 = vmatprep.mubr.msk.bf16.mxu1 %vm8314_vm1, %v8313_v2 }
 0x7e9   : > { %7340 = vmatprep.subr.bf16.mxu0 %v8313_v2  ;;  %7349 = vmatpush3.bf16.msra.mxu1 %v7733_v40 }
 0x7ea   : > { %7350 = vmatprep.subr.bf16.mxu1 %v8313_v2 }
 0x7eb   : > { %7329 = vmatmul.mubr.msk.bf16.vlgmr.msra.gmra.mrb[116].mxu0 %vm1301_vm3, %v4528_v22 }
 0x7ec   : > { %7344 = vmatprep.mubr.msk.bf16.mxu0 %vm8314_vm1, %v8313_v2  ;;  %7341 = vmatpush3.bf16.msra.mxu0 %v7729_v63 }
 0x7ed   : > { %7342 = vmatprep.subr.bf16.mxu0 %v8313_v2  ;;  %7351 = vmatpush3.bf16.msra.mxu1 %v7735_v27 }
 0x7ee   : > { %7364 = vmatprep.subr.bf16.mxu1 %v8313_v2 }
 0x7f0   : > { %7343 = vmatpush3.bf16.msra.mxu0 %v7730_v38 }
 0x7f1   : > { %7356 = vmatprep.subr.bf16.mxu0 %v8313_v2 }
 0x89a   : > { %v4595_v44 = vpop.f32.mrb[100].mxu1 }
 0x89b   : > { %v7274_v56 = vpop.f32.mrb[101].mxu1 }
 0x89c   : > { %v4598_v46 = vpop.f32.mrb[102].mxu1 }
 0x89d   : > { %v7275_v49 = vpop.f32.mrb[103].mxu1 }
 0x8a2   : > { %v4713_v13 = vpop.f32.mrb[104].mxu1 }
 0x8a3   : > { %v7290_v12 = vpop.f32.mrb[105].mxu1 }
 0x8a4   : > { %v4716_v10 = vpop.f32.mrb[106].mxu1 }
 0x8a5   : > { %v7291_v7 = vpop.f32.mrb[107].mxu1 }
 0x8a6   : > { %v4650_v57 = vpop.f32.mrb[104].mxu0 }
 0x8a7   : > { %v4651_v47 = vadd.f32 %v4650_v57, %v4595_v44  ;;  %v7282_v58 = vpop.f32.mrb[105].mxu0 }
 0x8a8   : > { %v4653_v23 = vpop.f32.mrb[106].mxu0 }
 0x8a9   : > { %v4656_v18 = vadd.f32 %v9416_v8, %v4651_v47  ;;  %v7283_v61 = vpop.f32.mrb[107].mxu0 }
 0x8aa   : > { %v4824_v51 = vpop.f32.mrb[108].mxu1 }
 0x8ab   : > { %v6558_v45 = vmul.f32 -1.442695, %v4656_v18  ;;  %v7306_v59 = vpop.f32.mrb[109].mxu1  ;;  %v4825_v7 = vadd.f32 %v9438_v50, %v4824_v51  ;;  %v9681_v18 = vld [vmem:[#allocation15] ss:$0 sm:$0xff] }
 0x8ac   : > { %v4827_v24 = vpop.f32.mrb[110].mxu1 }
 0x8ad   : > { %7869 = vpow2.f32 %v6558_v45  ;;  %v7307_v1 = vpop.f32.mrb[111].mxu1 }
 0x8ae   : > { %v4765_v0 = vpop.f32.mrb[108].mxu0 }
 0x8af   : > { %v4766_v42 = vadd.f32 %v4765_v0, %v4713_v13  ;;  %v7298_v26 = vpop.f32.mrb[109].mxu0 }
 0x8b0   : > { %v4768_v53 = vpop.f32.mrb[110].mxu0 }
 0x8b1   : > { %v4771_v9 = vadd.f32 %v9422_v17, %v4766_v42  ;;  %v7299_v39 = vpop.f32.mrb[111].mxu0  ;;  %v4906_v42 = vpop.permute.xlu1 %4905  ;;  %v7731_v53 = vld [vmem:[#allocation17] sm:$0xff]  }
 0x8b2   : > { %v4986_v3 = vpop.f32.mrb[112].mxu1 }
 0x8b3   : > { %v6565_v14 = vmul.f32 -1.442695, %v4771_v9  ;;  %v4992_v6 = vadd.f32 %v4986_v3, %v8904_v19  ;;  %v7322_v33 = vpop.f32.mrb[113].mxu1 }
 0x8b4   : > { %v4989_v8 = vpop.f32.mrb[114].mxu1 }
 0x8b5   : > { %7871 = vpow2.f32 %v6565_v14  ;;  %v4993_v25 = vadd.f32 %v9672_v15, %v4992_v6  ;;  %v7323_v55 = vpop.f32.mrb[115].mxu1 }
 0x8b6   : > { %v4880_v60 = vpop.f32.mrb[112].mxu0 }
 0x8b7   : > { %v7870_v29 = vpop.eup %7869  ;;  %v6577_v22 = vmul.f32 -1.442695, %v4993_v25  ;;  %v7314_v16 = vpop.f32.mrb[113].mxu0  ;;  %v4881_v49 = vadd.f32 %v9432_v4, %v4880_v60  ;;  %v7734_v25 = vld [vmem:[%s9954_s16] sm:$0xff]  }
 0x8b8   : > { %v4660_v34 = vadd.f32 1.0, %v7870_v29  ;;  %v4883_v30 = vpop.f32.mrb[114].mxu0  ;;  %v7737_v16 = vld [vmem:[%s10051_s21] sm:$0xff]  }
 0x8b9   : > { %7873 = vpow2.f32 %v6577_v22  ;;  %v7315_v17 = vpop.f32.mrb[115].mxu0  ;;  %v7736_v22 = vld [vmem:[%s9954_s16 + $0x8] sm:$0xff]  }
 0x8ba   : > { %7875 = vrcp.f32 %v4660_v34  ;;  %v5115_v28 = vpop.f32.mrb[116].mxu1  ;;  %v7738_v34 = vld [vmem:[%s10048_s2] sm:$0xff]   ;;  %v7739_v30 = vld [vmem:[%s10051_s21 + $0x8] sm:$0xff]  }
 0x8bb   : > { %v7338_v52 = vpop.f32.mrb[117].mxu1  ;;  %v5116_v61 = vadd.f32 %v9681_v18, %v5115_v28  ;;  %v7740_v17 = vld [vmem:[%s10048_s2 + $0x8] sm:$0xff]   ;;  %v7741_v28 = vld [vmem:[#allocation18] sm:$0xff]  }
 0x8bc   : > { %v5118_v35 = vpop.f32.mrb[118].mxu1  ;;  %v7742_v52 = vld [vmem:[#allocation18 + $0x8] sm:$0xff]  }
 0x8bd   : > { %v7339_v11 = vpop.f32.mrb[119].mxu1  ;;  %v7743_v35 = vld [vmem:[%s9947_s9] sm:$0xff]  }
 0x8be   : > { %v5050_v37 = vpop.f32.mrb[116].mxu0  ;;  %v7744_v11 = vld [vmem:[%s10050_s11] sm:$0xff]  }
 0x8bf   : > { %v7872_v5 = vpop.eup %7871  ;;  %v5056_v63 = vadd.f32 %v5050_v37, %v8906_v20  ;;  %v7330_v38 = vpop.f32.mrb[117].mxu0  ;;  %v7745_v37 = vld [vmem:[%s9947_s9 + $0x8] sm:$0xff]  }
 0x8c0   : > { %v4775_v40 = vadd.f32 1.0, %v7872_v5  ;;  %v5053_v27 = vpop.f32.mrb[118].mxu0  ;;  %v7746_v5 = vld [vmem:[%s10050_s11 + $0x8] sm:$0xff]  }
 0x8c1   : > { %v5057_v44 = vadd.f32 %v9676_v41, %v5056_v63  ;;  %v7331_v56 = vpop.f32.mrb[119].mxu0  ;;  %v7747_v63 = vld [vmem:[%s9955_s17] sm:$0xff]   ;;  %v7748_v38 = vld [vmem:[%s9955_s17 + $0x8] sm:$0xff]  }
 0x8c2   : > { %7877 = vrcp.f32 %v4775_v40  ;;  %v7750_v40 = vld [vmem:[%s9952_s14] sm:$0xff]   ;;  %v7752_v27 = vld [vmem:[%s9952_s14 + $0x8] sm:$0xff]  }
 0x8c3   : > { %v7874_v46 = vpop.eup %7873  ;;  %v6581_v13 = vmul.f32 -1.442695, %v5057_v44  ;;  %v6639_v44 = vld [vmem:[%s8768_s20 + $0xe] sm:$0x3] }
 0x8c4   : > { %v7876_v12 = vpop.eup %7875  ;;  %v4997_v10 = vadd.f32 1.0, %v7874_v46  ;;  %6105 = vperm.xlu1 %7611, %v6639_v44  }
 0x8c5   : > { %v4886_v57 = vmul.f32 %v7876_v12, %v4881_v49  ;;  %7879 = vpow2.f32 %v6581_v13 }
 0x8c6   : > { %7881 = vrcp.f32 %v4997_v10 }
 0x8c7   : > { %v4887_v47 = vadd.f32 %v4886_v57, %v4825_v7 }
 0x8c9   : > { %7883 = vtanh.f32 %v4887_v47 }
 0x8cc   : > { %v7878_v58 = vpop.eup %7877 }
 0x8cd   : > { %v4889_v24 = vsub.f32 1.0, %v7878_v58  ;;  %v4891_v51 = vmul.f32 %v7878_v58, %v9564_v36 }
 0x8cf   : > { %v7880_v23 = vpop.eup %7879 }
 0x8d0   : > { %v7882_v45 = vpop.eup %7881  ;;  %v5061_v59 = vadd.f32 1.0, %v7880_v23 }
 0x8d1   : > { %v5121_v4 = vmul.f32 %v7882_v45, %v5116_v61  ;;  %v9795_v45 = vld [vmem:[%s10053_s13] ss:$0 sm:$0xff] }
 0x8d2   : > { %7885 = vrcp.f32 %v5061_v59 }
 0x8d3   : > { %v7884_v1 = vpop.eup %7883  ;;  %v5122_v0 = vadd.f32 %v5121_v4, %v8922_v54 }
 0x8d4   : > { %v4890_v50 = vmul.f32 %v7884_v1, %v4889_v24 }
 0x8d5   : > { %7887 = vtanh.f32 %v5122_v0 }
 0x8d6   : > { %v9687_v26 = vadd.f32 %v4891_v51, %v4890_v50 }
 0x8d8   : > { %v4908_v9 = vsel %vm4902_vm4, %v9687_v26, %v4906_v42  ;;  %v5129_v39 = vpack.c.bf16 %v9687_v26, %v9687_v26 }
 0x8d9   : > { %v4916_v3 = vrot.slane %v4908_v9, %v8785_v21 }
 0x8da   : > { %7345 = vmatmul.mubr.msk.bf16.vlgmr.msra.gmra.mrb[120].mxu0 %vm1301_vm3, %v5129_v39 }
 0x8db   : > { %v4917_v54 = vcombine.high %v4916_v3, %v4916_v3  ;;  %v4924_v36 = vrot.slane %v4916_v3, %v8785_v21  ;;  %7357 = vmatpush3.bf16.msra.mxu0 %v7731_v53  ;;  %7360 = vmatprep.mubr.msk.bf16.mxu0 %vm8314_vm1, %v8313_v2  ;;  %v9801_v3 = vld [vmem:[%s10054_s4] ss:$0 sm:$0xff] }
 0x8dc   : > { %v7886_v14 = vpop.eup %7885  ;;  %7358 = vmatprep.subr.bf16.mxu0 %v8313_v2 }
 0x8dd   : > { %v4931_v6 = vrot.slane %v4917_v54, %v8785_v21  ;;  %4934 = vst.msk [vmem:[%s8770_s24 + $0x5] sm:$0x1] %vm1933_vm13, %v4924_v36  ;;  %v5124_v33 = vsub.f32 1.0, %v7886_v14  ;;  %v5126_v60 = vmul.f32 %v7886_v14, %v9586_v43 }
 0x8df   : > { %v7888_v8 = vpop.eup %7887  ;;  %4935 = vst.msk [vmem:[%s8770_s24 + $0xd] sm:$0x1] %vm1933_vm13, %v4931_v6  ;;  %7359 = vmatpush3.bf16.msra.mxu0 %v7732_v31  ;;  %v1086_v31 = vcombine.high %v8904_v19, %v8904_v19 }
 0x8e0   : > { %v5125_v55 = vmul.f32 %v7888_v8, %v5124_v33  ;;  %7372 = vmatprep.subr.bf16.mxu0 %v8313_v2 }
 0x8e2   : > { %7361 = vmatmul.mubr.msk.bf16.vlgmr.msra.gmra.mrb[124].mxu0 %vm1301_vm3, %v5129_v39  ;;  %v9709_v29 = vadd.f32 %v5126_v60, %v5125_v55 }
 0x8e3   : > { %7373 = vmatpush3.bf16.msra.mxu0 %v7734_v25  ;;  %7376 = vmatprep.mubr.msk.bf16.mxu0 %vm8314_vm1, %v8313_v2 }
 0x8e4   : > { %7374 = vmatprep.subr.bf16.mxu0 %v8313_v2  ;;  %v5128_v43 = vpack.c.bf16 %v9709_v29, %v9709_v29 }
 0x8e6   : > { %7353 = vmatmul.mubr.msk.bf16.vlgmr.msra.gmra.mrb[120].mxu1 %vm1301_vm3, %v5128_v43 }
 0x8e7   : > { %7375 = vmatpush3.bf16.msra.mxu0 %v7736_v22  ;;  %7365 = vmatpush3.bf16.msra.mxu1 %v7737_v16 }
 0x8e8   : > { %7388 = vmatprep.subr.bf16.mxu0 %v8313_v2  ;;  %7366 = vmatprep.subr.bf16.mxu1 %v8313_v2 }
 0x8e9   : > { %7368 = vmatprep.mubr.msk.bf16.mxu1 %vm8314_vm1, %v8313_v2 }
 0x8ea   : > { %7377 = vmatmul.mubr.msk.bf16.vlgmr.msra.gmra.mrb[128].mxu0 %vm1301_vm3, %v5128_v43 }
 0x8eb   : > { %7389 = vmatpush3.bf16.msra.mxu0 %v7738_v34  ;;  %7367 = vmatpush3.bf16.msra.mxu1 %v7739_v30 }
 0x8ec   : > { %7390 = vmatprep.subr.bf16.mxu0 %v8313_v2  ;;  %7380 = vmatprep.subr.bf16.mxu1 %v8313_v2 }
 0x8ed   : > { %7392 = vmatprep.mubr.msk.bf16.mxu0 %vm8314_vm1, %v8313_v2 }
 0x8ee   : > { %7369 = vmatmul.mubr.msk.bf16.vlgmr.msra.gmra.mrb[124].mxu1 %vm1301_vm3, %v5128_v43 }
 0x8ef   : > { %7391 = vmatpush3.bf16.msra.mxu0 %v7740_v17  ;;  %7381 = vmatpush3.bf16.msra.mxu1 %v7741_v28 }
 0x8f0   : > { %7382 = vmatprep.subr.bf16.mxu1 %v8313_v2  ;;  %7404 = vmatprep.subr.bf16.mxu0 %v8313_v2 }
 0x8f1   : > { %7384 = vmatprep.mubr.msk.bf16.mxu1 %vm8314_vm1, %v8313_v2 }
 0x8f2   : > { %7393 = vmatmul.mubr.msk.bf16.vlgmr.msra.gmra.mrb[132].mxu0 %vm1301_vm3, %v5128_v43 }
 0x8f3   : > { %7383 = vmatpush3.bf16.msra.mxu1 %v7742_v52  ;;  %7405 = vmatpush3.bf16.msra.mxu0 %v7743_v35 }
 0x8f4   : > { %7396 = vmatprep.subr.bf16.mxu1 %v8313_v2  ;;  %7406 = vmatprep.subr.bf16.mxu0 %v8313_v2 }
 0x8f5   : > { %7408 = vmatprep.mubr.msk.bf16.mxu0 %vm8314_vm1, %v8313_v2 }
 0x8f6   : > { %7385 = vmatmul.mubr.msk.bf16.vlgmr.msra.gmra.mrb[128].mxu1 %vm1301_vm3, %v5129_v39 }
 0x8f7   : > { %7397 = vmatpush3.bf16.msra.mxu1 %v7744_v11  ;;  %7407 = vmatpush3.bf16.msra.mxu0 %v7745_v37  ;;  %v1179_v37 = vcombine.high %v8906_v20, %v8906_v20 }
 0x8f8   : > { %7398 = vmatprep.subr.bf16.mxu1 %v8313_v2  ;;  %7400 = vmatprep.mubr.msk.bf16.mxu1 %vm8314_vm1, %v8313_v2 }
 0x8f9   : > { %7420 = vmatprep.subr.bf16.mxu0 %v8313_v2 }
 0x8fa   : > { %7409 = vmatmul.mubr.msk.bf16.vlgmr.msra.gmra.mrb[136].mxu0 %vm1301_vm3, %v5128_v43 }
 0x8fb   : > { %7399 = vmatpush3.bf16.msra.mxu1 %v7746_v5  ;;  %7424 = vmatprep.mubr.msk.bf16.mxu0 %vm8314_vm1, %v8313_v2 }
 0x8fc   : > { %7412 = vmatprep.subr.bf16.mxu1 %v8313_v2  ;;  %7421 = vmatpush3.bf16.msra.mxu0 %v7750_v40 }
 0x8fd   : > { %7422 = vmatprep.subr.bf16.mxu0 %v8313_v2 }
 0x8fe   : > { %7401 = vmatmul.mubr.msk.bf16.vlgmr.msra.gmra.mrb[132].mxu1 %vm1301_vm3, %v5128_v43 }
 0x8ff   : > { %7416 = vmatprep.mubr.msk.bf16.mxu1 %vm8314_vm1, %v8313_v2  ;;  %7413 = vmatpush3.bf16.msra.mxu1 %v7747_v63 }
 0x900   : > { %7414 = vmatprep.subr.bf16.mxu1 %v8313_v2  ;;  %7423 = vmatpush3.bf16.msra.mxu0 %v7752_v27 }
 0x901   : > { %7436 = vmatprep.subr.bf16.mxu0 %v8313_v2 }
 0x903   : > { %7415 = vmatpush3.bf16.msra.mxu1 %v7748_v38 }
 0x904   : > { %7428 = vmatprep.subr.bf16.mxu1 %v8313_v2 }
 0x9ad   : > { %v5195_v56 = vpop.f32.mrb[120].mxu0 }
 0x9ae   : > { %v7346_v46 = vpop.f32.mrb[121].mxu0 }
 0x9af   : > { %v5198_v49 = vpop.f32.mrb[122].mxu0 }
 0x9b0   : > { %v7347_v13 = vpop.f32.mrb[123].mxu0  ;;  %v9813_v49 = vld [vmem:[%s10055_s7] ss:$0 sm:$0xff] }
 0x9b5   : > { %v5313_v12 = vpop.f32.mrb[124].mxu0 }
 0x9b6   : > { %v7362_v10 = vpop.f32.mrb[125].mxu0 }
 0x9b7   : > { %v5316_v7 = vpop.f32.mrb[126].mxu0 }
 0x9b8   : > { %v7363_v57 = vpop.f32.mrb[127].mxu0  ;;  %v9819_v7 = vld [vmem:[%s10056_s0] ss:$0 sm:$0xff] }
 0x9b9   : > { %v5250_v47 = vpop.f32.mrb[120].mxu1 }
 0x9ba   : > { %v5251_v58 = vadd.f32 %v5250_v47, %v5195_v56  ;;  %v7354_v23 = vpop.f32.mrb[121].mxu1 }
 0x9bb   : > { %v5253_v61 = vpop.f32.mrb[122].mxu1 }
 0x9bc   : > { %v5256_v59 = vadd.f32 %v9795_v45, %v5251_v58  ;;  %v7355_v4 = vpop.f32.mrb[123].mxu1 }
 0x9bd   : > { %v5424_v24 = vpop.f32.mrb[128].mxu0 }
 0x9be   : > { %v6591_v1 = vmul.f32 -1.442695, %v5256_v59  ;;  %v7378_v0 = vpop.f32.mrb[129].mxu0 }
 0x9bf   : > { %v5427_v50 = vpop.f32.mrb[130].mxu0 }
 0x9c0   : > { %7889 = vpow2.f32 %v6591_v1  ;;  %v7379_v51 = vpop.f32.mrb[131].mxu0 }
 0x9c1   : > { %v5365_v42 = vpop.f32.mrb[124].mxu1 }
 0x9c2   : > { %v5366_v53 = vadd.f32 %v5365_v42, %v5313_v12  ;;  %v7370_v9 = vpop.f32.mrb[125].mxu1 }
 0x9c3   : > { %v5368_v39 = vpop.f32.mrb[126].mxu1 }
 0x9c4   : > { %v5371_v54 = vadd.f32 %v9801_v3, %v5366_v53  ;;  %v7371_v36 = vpop.f32.mrb[127].mxu1  ;;  %v5506_v53 = vpop.permute.xlu0 %5505  ;;  %v7749_v39 = vld [vmem:[#allocation17] sm:$0xff]  }
 0x9c5   : > { %v5586_v14 = vpop.f32.mrb[132].mxu0 }
 0x9c6   : > { %v6598_v6 = vmul.f32 -1.442695, %v5371_v54  ;;  %v5592_v33 = vadd.f32 %v5586_v14, %v1086_v31  ;;  %v7394_v8 = vpop.f32.mrb[133].mxu0 }
 0x9c7   : > { %v5589_v25 = vpop.f32.mrb[134].mxu0  ;;  %v7753_v8 = vld [vmem:[%s9954_s16] sm:$0xff]  }
 0x9c8   : > { %7891 = vpow2.f32 %v6598_v6  ;;  %v5593_v55 = vadd.f32 %v9672_v15, %v5592_v33  ;;  %v7395_v60 = vpop.f32.mrb[135].mxu0 }
 0x9c9   : > { %v5480_v22 = vpop.f32.mrb[128].mxu1 }
 0x9ca   : > { %v7890_v16 = vpop.eup %7889  ;;  %v6610_v43 = vmul.f32 -1.442695, %v5593_v55  ;;  %v7386_v34 = vpop.f32.mrb[129].mxu1  ;;  %v5481_v13 = vadd.f32 %v9813_v49, %v5480_v22  ;;  %v7754_v22 = vld [vmem:[%s10051_s21] sm:$0xff]  }
 0x9cb   : > { %v5260_v30 = vadd.f32 1.0, %v7890_v16  ;;  %v5483_v17 = vpop.f32.mrb[130].mxu1  ;;  %v7755_v16 = vld [vmem:[%s9954_s16 + $0x8] sm:$0xff]   ;;  %v7757_v34 = vld [vmem:[#allocation18] sm:$0xff]  }
 0x9cc   : > { %7893 = vpow2.f32 %v6610_v43  ;;  %v7387_v28 = vpop.f32.mrb[131].mxu1 }
 0x9cd   : > { %7895 = vrcp.f32 %v5260_v30  ;;  %v5715_v52 = vpop.f32.mrb[136].mxu0  ;;  %v7758_v30 = vld [vmem:[#allocation18 + $0x8] sm:$0xff]  }
 0x9ce   : > { %v7410_v19 = vpop.f32.mrb[137].mxu0  ;;  %v5716_v61 = vadd.f32 %v9681_v18, %v5715_v52 }
 0x9cf   : > { %v5718_v35 = vpop.f32.mrb[138].mxu0 }
 0x9d0   : > { %v7411_v11 = vpop.f32.mrb[139].mxu0 }
 0x9d1   : > { %v5650_v5 = vpop.f32.mrb[132].mxu1 }
 0x9d2   : > { %v7892_v63 = vpop.eup %7891  ;;  %v5656_v15 = vadd.f32 %v5650_v5, %v1179_v37  ;;  %v7402_v38 = vpop.f32.mrb[133].mxu1 }
 0x9d3   : > { %v5375_v40 = vadd.f32 1.0, %v7892_v63  ;;  %v5653_v27 = vpop.f32.mrb[134].mxu1 }
 0x9d4   : > { %v5657_v44 = vadd.f32 %v9676_v41, %v5656_v15  ;;  %v7403_v56 = vpop.f32.mrb[135].mxu1  ;;  %v5425_v41 = vadd.f32 %v9819_v7, %v5424_v24 }
 0x9d5   : > { %7897 = vrcp.f32 %v5375_v40 }
 0x9d6   : > { %v7894_v46 = vpop.eup %7893  ;;  %v6614_v12 = vmul.f32 -1.442695, %v5657_v44 }
 0x9d7   : > { %v7896_v10 = vpop.eup %7895  ;;  %v5597_v20 = vadd.f32 1.0, %v7894_v46 }
 0x9d8   : > { %v5486_v57 = vmul.f32 %v7896_v10, %v5481_v13  ;;  %7899 = vpow2.f32 %v6614_v12 }
 0x9d9   : > { %7901 = vrcp.f32 %v5597_v20 }
 0x9da   : > { %v5487_v47 = vadd.f32 %v5486_v57, %v5425_v41 }
 0x9dc   : > { %7903 = vtanh.f32 %v5487_v47 }
 0x9df   : > { %v7898_v58 = vpop.eup %7897 }
 0x9e0   : > { %v5489_v0 = vsub.f32 1.0, %v7898_v58  ;;  %v5491_v24 = vmul.f32 %v7898_v58, %v9687_v26 }
 0x9e2   : > { %v7900_v23 = vpop.eup %7899 }
 0x9e3   : > { %v7902_v59 = vpop.eup %7901  ;;  %v5661_v4 = vadd.f32 1.0, %v7900_v23 }
 0x9e4   : > { %v5721_v1 = vmul.f32 %v7902_v59, %v5716_v61 }
 0x9e5   : > { %7905 = vrcp.f32 %v5661_v4 }
 0x9e6   : > { %v7904_v50 = vpop.eup %7903  ;;  %v5722_v51 = vadd.f32 %v5721_v1, %v8927_v62 }
 0x9e7   : > { %v5490_v42 = vmul.f32 %v7904_v50, %v5489_v0 }
 0x9e8   : > { %7907 = vtanh.f32 %v5722_v51 }
 0x9e9   : > { %v9826_v9 = vadd.f32 %v5491_v24, %v5490_v42 }
 0x9eb   : > { %v5508_v18 = vsel %vm5502_vm5, %v9826_v9, %v5506_v53  ;;  %v5729_v54 = vpack.c.bf16 %v9826_v9, %v9826_v9 }
 0x9ec   : > { %v5516_v36 = vrot.slane %v5508_v18, %v8785_v21 }
 0x9ed   : > { %7417 = vmatmul.mubr.msk.bf16.vlgmr.msra.gmra.mrb[136].mxu1 %vm1301_vm3, %v5729_v54 }
 0x9ee   : > { %v5517_v62 = vcombine.high %v5516_v36, %v5516_v36  ;;  %v5524_v26 = vrot.slane %v5516_v36, %v8785_v21  ;;  %7429 = vmatpush3.bf16.msra.mxu1 %v7749_v39  ;;  %7432 = vmatprep.mubr.msk.bf16.mxu1 %vm8314_vm1, %v8313_v2 }
 0x9ef   : > { %v7906_v31 = vpop.eup %7905  ;;  %7430 = vmatprep.subr.bf16.mxu1 %v8313_v2 }
 0x9f0   : > { %v5724_v14 = vsub.f32 1.0, %v7906_v31  ;;  %v5531_v6 = vrot.slane %v5517_v62, %v8785_v21  ;;  %5534 = vst.msk [vmem:[%s8770_s24 + $0x6] sm:$0x1] %vm1933_vm13, %v5524_v26  ;;  %v5726_v55 = vmul.f32 %v7906_v31, %v9709_v29  ;;  %v7756_v29 = vld [vmem:[%s10051_s21 + $0x8] sm:$0xff]  }
 0x9f2   : > { %v7908_v33 = vpop.eup %7907  ;;  %5535 = vst.msk [vmem:[%s8770_s24 + $0xe] sm:$0x1] %vm1933_vm13, %v5531_v6  ;;  %7431 = vmatpush3.bf16.msra.mxu1 %v7751_v48 }
 0x9f3   : > { %7444 = vmatprep.subr.bf16.mxu1 %v8313_v2  ;;  %v5725_v25 = vmul.f32 %v7908_v33, %v5724_v14 }
 0x9f5   : > { %7433 = vmatmul.mubr.msk.bf16.vlgmr.msra.gmra.mrb[140].mxu1 %vm1301_vm3, %v5729_v54  ;;  %v5727_v60 = vadd.f32 %v5726_v55, %v5725_v25 }
 0x9f6   : > { %7445 = vmatpush3.bf16.msra.mxu1 %v7753_v8  ;;  %7448 = vmatprep.mubr.msk.bf16.mxu1 %vm8314_vm1, %v8313_v2 }
 0x9f7   : > { %v5728_v43 = vpack.c.bf16 %v5727_v60, %v5727_v60  ;;  %7446 = vmatprep.subr.bf16.mxu1 %v8313_v2  ;;  %6137 = vst.msk [vmem:[#allocation2] sm:$0x3] %vm6136_vm6, %v5727_v60 }
 0x9f9   : > { %7425 = vmatmul.mubr.msk.bf16.vlgmr.msra.gmra.mrb[140].mxu0 %vm1301_vm3, %v5728_v43 }
 0x9fa   : > { %7437 = vmatpush3.bf16.msra.mxu0 %v7754_v22  ;;  %7447 = vmatpush3.bf16.msra.mxu1 %v7755_v16 }
 0x9fb   : > { %7438 = vmatprep.subr.bf16.mxu0 %v8313_v2  ;;  %7440 = vmatprep.mubr.msk.bf16.mxu0 %vm8314_vm1, %v8313_v2 }
 0x9fd   : > { %7449 = vmatmul.mubr.msk.bf16.vlgmr.msra.gmra.mrb[144].mxu1 %vm1301_vm3, %v5728_v43 }
 0x9fe   : > { %7439 = vmatpush3.bf16.msra.mxu0 %v7756_v29 }
 0x9ff   : > { %7452 = vmatprep.subr.bf16.mxu0 %v8313_v2 }
 0xa01   : > { %7441 = vmatmul.mubr.msk.bf16.vlgmr.msra.gmra.mrb[144].mxu0 %vm1301_vm3, %v5728_v43 }
 0xa02   : > { %7453 = vmatpush3.bf16.msra.mxu0 %v7757_v34  ;;  %7456 = vmatprep.mubr.msk.bf16.mxu0 %vm8314_vm1, %v8313_v2  ;;  %vm6102_vm1 = vcmp.eq.s32.totalorder %v9178_v32, 1 }
 0xa03   : > { %7454 = vmatprep.subr.bf16.mxu0 %v8313_v2 }
 0xa06   : > { %7455 = vmatpush3.bf16.msra.mxu0 %v7758_v30 }
 0xa09   : > { %7457 = vmatmul.mubr.msk.bf16.vlgmr.msra.gmra.mrb[148].mxu0 %vm1301_vm3, %v5729_v54 }
 0xac0   : > { %v5795_v17 = vpop.f32.mrb[136].mxu1 }
 0xac1   : > { %v7418_v28 = vpop.f32.mrb[137].mxu1 }
 0xac2   : > { %v5798_v52 = vpop.f32.mrb[138].mxu1 }
 0xac3   : > { %v7419_v19 = vpop.f32.mrb[139].mxu1 }
 0xac8   : > { %v5913_v35 = vpop.f32.mrb[140].mxu1 }
 0xac9   : > { %v7434_v11 = vpop.f32.mrb[141].mxu1 }
 0xaca   : > { %v5916_v37 = vpop.f32.mrb[142].mxu1 }
 0xacb   : > { %v7435_v5 = vpop.f32.mrb[143].mxu1 }
 0xacc   : > { %v5850_v63 = vpop.f32.mrb[140].mxu0 }
 0xacd   : > { %v5851_v15 = vadd.f32 %v5850_v63, %v5795_v17  ;;  %v7426_v38 = vpop.f32.mrb[141].mxu0 }
 0xace   : > { %v5853_v40 = vpop.f32.mrb[142].mxu0 }
 0xacf   : > { %v5856_v27 = vadd.f32 %v9795_v45, %v5851_v15  ;;  %v7427_v44 = vpop.f32.mrb[143].mxu0 }
 0xad0   : > { %v6024_v56 = vpop.f32.mrb[144].mxu1 }
 0xad1   : > { %v6624_v2 = vmul.f32 -1.442695, %v5856_v27  ;;  %v7450_v46 = vpop.f32.mrb[145].mxu1  ;;  %v6025_v53 = vadd.f32 %v9819_v7, %v6024_v56 }
 0xad2   : > { %v6027_v13 = vpop.f32.mrb[146].mxu1 }
 0xad3   : > { %7909 = vpow2.f32 %v6624_v2  ;;  %v7451_v12 = vpop.f32.mrb[147].mxu1 }
 0xad4   : > { %v5965_v10 = vpop.f32.mrb[144].mxu0 }
 0xad5   : > { %v5966_v20 = vadd.f32 %v5965_v10, %v5913_v35  ;;  %v7442_v41 = vpop.f32.mrb[145].mxu0 }
 0xad6   : > { %v5968_v57 = vpop.f32.mrb[146].mxu0 }
 0xad7   : > { %v5971_v47 = vadd.f32 %v9801_v3, %v5966_v20  ;;  %v7443_v58 = vpop.f32.mrb[147].mxu0 }
 0xad9   : > { %v6631_v23 = vmul.f32 -1.442695, %v5971_v47 }
 0xadb   : > { %7911 = vpow2.f32 %v6631_v23 }
 0xadc   : > { %v6080_v61 = vpop.f32.mrb[148].mxu0 }
 0xadd   : > { %v7910_v59 = vpop.eup %7909  ;;  %v7458_v4 = vpop.f32.mrb[149].mxu0  ;;  %v6081_v42 = vadd.f32 %v9813_v49, %v6080_v61 }
 0xade   : > { %v5860_v45 = vadd.f32 1.0, %v7910_v59  ;;  %v6083_v1 = vpop.f32.mrb[150].mxu0  ;;  %v6106_v49 = vpop.permute.xlu1 %6105 }
 0xadf   : > { %v7459_v0 = vpop.f32.mrb[151].mxu0 }
 0xae0   : > { %7913 = vrcp.f32 %v5860_v45 }
 0xae5   : > { %v7912_v50 = vpop.eup %7911 }
 0xae6   : > { %v5975_v51 = vadd.f32 1.0, %v7912_v50 }
 0xae8   : > { %7915 = vrcp.f32 %v5975_v51 }
 0xaea   : > { %v7914_v24 = vpop.eup %7913 }
 0xaeb   : > { %v6086_v3 = vmul.f32 %v7914_v24, %v6081_v42 }
 0xaed   : > { %v6087_v39 = vadd.f32 %v6086_v3, %v6025_v53 }
 0xaef   : > { %7917 = vtanh.f32 %v6087_v39 }
 0xaf2   : > { %v7916_v18 = vpop.eup %7915 }
 0xaf3   : > { %v6089_v54 = vsub.f32 1.0, %v7916_v18  ;;  %v6091_v26 = vmul.f32 %v7916_v18, %v9826_v9 }
 0xaf9   : > { %v7918_v36 = vpop.eup %7917 }
 0xafa   : > { %v6090_v62 = vmul.f32 %v7918_v36, %v6089_v54 }
 0xafc   : > { %v6092_v48 = vadd.f32 %v6091_v26, %v6090_v62 }
 0xafe   : > { %v6108_v7 = vsel %vm6102_vm1, %v6092_v48, %v6106_v49  ;;  %6138 = vst.msk [vmem:[#allocation2 + $0x2] sm:$0x3] %vm6136_vm6, %v6092_v48 }
 0xaff   : > { %v6116_v31 = vrot.slane %v6108_v7, %v8785_v21 }
 0xb01   : > { %v6117_v14 = vcombine.high %v6116_v31, %v6116_v31  ;;  %v6124_v6 = vrot.slane %v6116_v31, %v8785_v21 }
 0xb03   : > { %v6131_v32 = vrot.slane %v6117_v14, %v8785_v21  ;;  %6134 = vst.msk [vmem:[%s8770_s24 + $0x7] sm:$0x1] %vm1933_vm13, %v6124_v6 }
 0xb05   : > { %6135 = vst.msk [vmem:[%s8770_s24 + $0xf] sm:$0x1] %vm1933_vm13, %v6131_v32 }
 0xb06   : > { %8226 = shalt.err (!%p8223_p8)
}
 0xb07   : > { %s8227_s3 = scalar_lea.hbm %s9886_s23, 256  ;;  %s8231_s29 = scalar_lea.hbm %s10058_s25, 512 }
 0xb08   : > { %p8228_p12 = scmp.ne.s32.totalorder %s9886_s23, %s8227_s3  ;;  %p8232_p6 = scmp.lt.u32.totalorder %s9886_s23, %s10058_s25 }
 0xb09   : > { %p8233_p9 = scmp.lt.u32.totalorder %s8231_s29, %s8227_s3  ;;  %p8235_p1 = scmp.lt.u32.totalorder %s8227_s3, %s9886_s23 }
 0xb0a   : > { %p8229_p0 = pnand %p8228_p12, %p10059_p11 }
 0xb0b   : > { %p8234_p5 = por %p8233_p9, %p8232_p6 }
 0xb0c   : > { %p8230_p2 = pneg %p8229_p0 }
 0xb0d   : > { %p8236_p10 = por %p8235_p1, %p8234_p5 }
 0xb0f   : > { %p8237_p3 = pnand %p8236_p10, %p8230_p2 }
 0xb11   : > { %8240 = shalt.err (!%p8237_p3)
}
 0xb12   : > { %s8319_s28 = smov 128   ;;  %s8320_s27 = smov 256  }
 0xb13   : > { %s8321_s2 = smov 8  }
 0xb14   : > { %7500 = dma.vmem_to_hbm [thread:$0]  (%p10059_p11), %s9888_s1, 256, %s9886_s23, %s9897_s6, %s8319_s28, %s8320_s27, %s8321_s2  }
 0xb15 PF: > { %s10060_s24 = sld [smem:[#allocation30_spill]]  ;;  %s10061_s20 = sld [smem:[#allocation28_spill]] }
 0xb16   : > { %s10062_s0 = sld [smem:[#allocation34_spill]] }
 0xb1b   : > { %p7557_p4 = scmp.ge.s32.totalorder %s10060_s24, 2  ;;  %s6167_s29 = sand.u32 1, %s10061_s20  }
 0xb1c   : > { %p10063_p13 = scmp.ne.s32.totalorder %s10062_s0, 0  ;;  %s6168_s3 = scalar_lea.sflag [#allocation5], %s6167_s29 }
 0xb1e   : > { %p7534_p7 = pnand %p7557_p4, %p10063_p13 }
 0xb20   : > { %8282 = dma.done.wait (!%p7534_p7), %s6168_s3, 256  }
 0xb21   : > { %8284 = vsyncadd (!%p7534_p7), %s6168_s3, 4294967040  ;;  %s10064_s28 = sld [smem:[#allocation31_spill]]  ;;  %s10065_s4 = sld [smem:[#allocation29_spill]] }
 0xb22   : > { %s10066_s27 = sld [smem:[#allocation32_spill]]  ;;  %s10067_s5 = smov %s8291_s26 }
 0xb27   : > { %p40_p8 = scmp.ge.s32.totalorder %s10064_s28, 4   ;;  %s10068_s26 = smov %s10065_s4 }
 0xb29   :  { %42 = sbr.rel (!%p40_p8) target bundleno = 27 (0x1b), region = 218 }
 0xb30   :  { %6173 = vsyncpa [#allocation4], 1 }
 0xb31   :  { %6175 = vsyncpa [#allocation4 + $0x1], 1 }
 0xb32   :  { %6176 = vsyncpa [#allocation7], 1 }
 0xb33   :  { %6177 = vsyncpa [#allocation10], 1 }
 0xb34   :  { %6178 = vsyncpa [#allocation13], 1 }
 0xb35   :  { %6179 = vsyncpa [#allocation16], 1 }
 0xb36   :  { %6180 = vsyncpa [#allocation19], 1 }
 0xb37   :  { %6181 = vsyncpa [#allocation5], 1 }
 0xb38   :  { %6183 = vsyncpa [#allocation5 + $0x1], 1 }

</bundles_post_ra>
